<compile_context>
chip_gen: v7x
topology: tpu7x:2x2x1
jax: 0.10.0
libtpu: 0.0.40
codegen_flags: <defaults>
</compile_context>

<pallas_src>
import jax
import jax.numpy as jnp
from jax.experimental import pallas as pl
from jax.experimental.pallas import tpu as pltpu


def _silu(z):
    # z * sigmoid(z), computed in f32 (exp goes to the EUP).
    return z * (1.0 / (1.0 + jnp.exp(-z)))


def make_c3_kernel(n_bottlenecks, H, W):
    HW = H * W

    def kernel(x_ref, w1_ref, b1_ref, w2_ref, b2_ref,
               wb1_ref, bb1_ref, wb2_ref, bb2_ref,
               w3a_ref, w3b_ref, b3_ref, out_ref, pad_ref):
        c_ = w1_ref.shape[1]
        x = x_ref[0]                                        # (HW, C1) bf16

        # cv1 / cv2 branches: 1x1 conv == (HW, C1) @ (C1, c_) matmul (bf16 -> f32 acc).
        b = _silu(jnp.dot(x, w1_ref[...],
                          preferred_element_type=jnp.float32) + b1_ref[...])
        c = _silu(jnp.dot(x, w2_ref[...],
                          preferred_element_type=jnp.float32) + b2_ref[...])

        # Column-validity masks for the +-1 horizontal taps of the 3x3 conv.
        col = jax.lax.rem(jax.lax.broadcasted_iota(jnp.int32, (HW, 1), 0),
                          jnp.int32(W))
        mask_left = col >= 1            # dx = -1 invalid at w == 0
        mask_right = col <= W - 2       # dx = +1 invalid at w == W-1

        pad_ref[...] = jnp.zeros_like(pad_ref)              # zero halo rows

        for i in range(n_bottlenecks):
            # Bottleneck cv1 (1x1).
            t = _silu(jnp.dot(b.astype(jnp.bfloat16), wb1_ref[i],
                              preferred_element_type=jnp.float32) + bb1_ref[i])
            # Bottleneck cv2 (3x3, pad=1): 9 shifted matmuls on flattened HW.
            pad_ref[pl.ds(W + 1, HW), :] = t
            acc = jnp.zeros((HW, c_), jnp.float32)
            for dy in (-1, 0, 1):
                for dx in (-1, 0, 1):
                    tap = pad_ref[pl.ds((W + 1) + dy * W + dx, HW), :]
                    if dx == -1:
                        tap = jnp.where(mask_left, tap, 0.0)
                    elif dx == 1:
                        tap = jnp.where(mask_right, tap, 0.0)
                    k = (dy + 1) * 3 + (dx + 1)
                    acc = acc + jnp.dot(tap.astype(jnp.bfloat16), wb2_ref[i, k],
                                        preferred_element_type=jnp.float32)
            u = _silu(acc + bb2_ref[i])
            b = b + u                                       # shortcut (c_in == c_out)

        # cv3 on concat([b, c], channel) without materializing the concat.
        # Weight as LHS (rhs-transposed contraction) -> channels-first (c2, HW):
        # lane-dense store and NCHW output with no wrapper transpose.
        out = jax.lax.dot_general(
            w3a_ref[...], b.astype(jnp.bfloat16),
            (((1,), (1,)), ((), ())), preferred_element_type=jnp.float32)
        out = out + jax.lax.dot_general(
            w3b_ref[...], c.astype(jnp.bfloat16),
            (((1,), (1,)), ((), ())), preferred_element_type=jnp.float32)
        out_ref[0] = _silu(out + b3_ref[...]).astype(out_ref.dtype)

    return kernel


def c3_forward(x_nchw, params):
    """x_nchw: (N, C1, H, W) float32 -> (N, C2, H, W) float32."""
    (w1, b1, w2, b2, wb1, bb1, wb2, bb2, w3a, w3b, b3) = params
    N, C1, H, W = x_nchw.shape
    HW = H * W
    c_ = w1.shape[1]
    c2 = w3a.shape[0]
    n = wb1.shape[0]

    # NCHW -> (N, HW, C1): channels on lanes for the 1x1-conv matmuls.
    x = jnp.transpose(x_nchw, (0, 2, 3, 1)).reshape(N, HW, C1).astype(jnp.bfloat16)

    kernel = make_c3_kernel(n, H, W)

    flops = 2 * N * HW * (2 * C1 * c_ + n * 10 * c_ * c_ + 2 * c_ * c2)
    transcend = N * HW * ((2 + 2 * n) * c_ + c2)
    bytes_acc = (x.size * 2
                 + (w1.size + w2.size + wb1.size + wb2.size
                    + w3a.size + w3b.size) * 2
                 + (b1.size + b2.size + bb1.size + bb2.size + b3.size) * 4
                 + N * c2 * HW * 4)

    out = pl.pallas_call(
        kernel,
        out_shape=jax.ShapeDtypeStruct((N, c2, HW), jnp.float32),
        grid_spec=pltpu.PrefetchScalarGridSpec(
            num_scalar_prefetch=0,
            grid=(N,),
            in_specs=[
                pl.BlockSpec((1, HW, C1), lambda i: (i, 0, 0)),        # x
                pl.BlockSpec((C1, c_), lambda i: (0, 0)),              # cv1 w
                pl.BlockSpec((1, c_), lambda i: (0, 0)),               # cv1 bias
                pl.BlockSpec((C1, c_), lambda i: (0, 0)),              # cv2 w
                pl.BlockSpec((1, c_), lambda i: (0, 0)),               # cv2 bias
                pl.BlockSpec((n, c_, c_), lambda i: (0, 0, 0)),        # m[i].cv1 w
                pl.BlockSpec((n, 1, c_), lambda i: (0, 0, 0)),         # m[i].cv1 bias
                pl.BlockSpec((n, 9, c_, c_), lambda i: (0, 0, 0, 0)),  # m[i].cv2 w (3x3)
                pl.BlockSpec((n, 1, c_), lambda i: (0, 0, 0)),         # m[i].cv2 bias
                pl.BlockSpec((c2, c_), lambda i: (0, 0)),              # cv3 w (b half)
                pl.BlockSpec((c2, c_), lambda i: (0, 0)),              # cv3 w (c half)
                pl.BlockSpec((c2, 1), lambda i: (0, 0)),               # cv3 bias
            ],
            out_specs=pl.BlockSpec((1, c2, HW), lambda i: (i, 0, 0)),
            scratch_shapes=[pltpu.VMEM((HW + 2 * W + 2, c_), jnp.float32)],
        ),
        compiler_params=pltpu.CompilerParams(
            dimension_semantics=("parallel",),
            vmem_limit_bytes=32 * 1024 * 1024),
        cost_estimate=pl.CostEstimate(
            flops=flops, transcendentals=transcend, bytes_accessed=bytes_acc),
    )(x, w1, b1, w2, b2, wb1, bb1, wb2, bb2, w3a, w3b, b3)

    return out.reshape(N, c2, H, W)


def _fold_conv_bn(key, cin, cout, k):
    """Synthetic Conv2d(bias=False) + BatchNorm2d(eval) folded into (w, bias)."""
    k1, k2, k3, k4, k5 = jax.random.split(key, 5)
    fan_in = cin * k * k
    w = jax.random.normal(k1, (cout, cin, k, k), jnp.float32) * (fan_in ** -0.5)
    gamma = 1.0 + 0.1 * jax.random.normal(k2, (cout,), jnp.float32)
    beta = 0.1 * jax.random.normal(k3, (cout,), jnp.float32)
    running_mean = 0.1 * jax.random.normal(k4, (cout,), jnp.float32)
    running_var = 1.0 + 0.1 * jax.random.uniform(k5, (cout,), jnp.float32)
    scale = gamma / jnp.sqrt(running_var + 1e-5)
    bias = beta - running_mean * scale
    return w * scale[:, None, None, None], bias


def init_params(key, c1, c2, n=1, e=0.5):
    """Deterministic synthetic parameters matching C3.__init__ shapes (BN folded)."""
    c_ = int(c2 * e)
    keys = jax.random.split(key, 3 + 2 * n)
    bf16 = jnp.bfloat16

    w, b = _fold_conv_bn(keys[0], c1, c_, 1)                  # cv1
    w1, b1 = w.reshape(c_, c1).T.astype(bf16), b.reshape(1, c_)
    w, b = _fold_conv_bn(keys[1], c1, c_, 1)                  # cv2
    w2, b2 = w.reshape(c_, c1).T.astype(bf16), b.reshape(1, c_)

    wb1_l, bb1_l, wb2_l, bb2_l = [], [], [], []
    for i in range(n):
        w, b = _fold_conv_bn(keys[3 + 2 * i], c_, c_, 1)      # m[i].cv1 (1x1)
        wb1_l.append(w.reshape(c_, c_).T)                     # (c_in, c_out)
        bb1_l.append(b.reshape(1, c_))
        w, b = _fold_conv_bn(keys[4 + 2 * i], c_, c_, 3)      # m[i].cv2 (3x3)
        wb2_l.append(jnp.transpose(w, (2, 3, 1, 0)).reshape(9, c_, c_))
        bb2_l.append(b.reshape(1, c_))
    wb1 = jnp.stack(wb1_l).astype(bf16)                       # (n, c_, c_)
    bb1 = jnp.stack(bb1_l)                                    # (n, 1, c_)
    wb2 = jnp.stack(wb2_l).astype(bf16)                       # (n, 9, c_, c_)
    bb2 = jnp.stack(bb2_l)                                    # (n, 1, c_)

    w, b = _fold_conv_bn(keys[2], 2 * c_, c2, 1)              # cv3
    w = w.reshape(c2, 2 * c_)
    w3a = w[:, :c_].astype(bf16)                              # x bottleneck branch
    w3b = w[:, c_:].astype(bf16)                              # x cv2 branch
    b3 = b.reshape(c2, 1)

    return (w1, b1, w2, b2, wb1, bb1, wb2, bb2, w3a, w3b, b3)


def c3_reference(x_nchw, params):
    """Plain-JAX reference with the same bf16 matmul inputs / f32 accumulation."""
    (w1, b1, w2, b2, wb1, bb1, wb2, bb2, w3a, w3b, b3) = params
    N, C1, H, W = x_nchw.shape
    HW = H * W
    n = wb1.shape[0]
    c_ = w1.shape[1]

    x = jnp.transpose(x_nchw, (0, 2, 3, 1)).reshape(N, HW, C1).astype(jnp.bfloat16)

    def mm(a, w):
        return jnp.einsum("nsc,cd->nsd", a, w, preferred_element_type=jnp.float32)

    b = _silu(mm(x, w1) + b1)
    c = _silu(mm(x, w2) + b2)
    for i in range(n):
        t = _silu(mm(b.astype(jnp.bfloat16), wb1[i]) + bb1[i])
        tp = jnp.pad(t.astype(jnp.bfloat16).reshape(N, H, W, c_),
                     ((0, 0), (1, 1), (1, 1), (0, 0)))
        acc = jnp.zeros((N, HW, c_), jnp.float32)
        for ky in range(3):
            for kx in range(3):
                tap = tp[:, ky:ky + H, kx:kx + W, :].reshape(N, HW, c_)
                acc = acc + mm(tap, wb2[i, ky * 3 + kx])
        b = b + _silu(acc + bb2[i])
    out = (jnp.einsum("oc,nsc->nos", w3a, b.astype(jnp.bfloat16),
                      preferred_element_type=jnp.float32)
           + jnp.einsum("oc,nsc->nos", w3b, c.astype(jnp.bfloat16),
                        preferred_element_type=jnp.float32))
    out = _silu(out + b3)
    return out.reshape(N, -1, H, W)


if __name__ == "__main__":
    N, c1, c2 = 2, 4, 32
    H = W = 16
    n = 1

    key = jax.random.PRNGKey(0)
    kx_, kp = jax.random.split(key)
    x = jax.random.normal(kx_, (N, c1, H, W), jnp.float32)
    params = init_params(kp, c1, c2, n=n)

    out = c3_forward(x, params)
    out = jax.block_until_ready(out)

    ref = c3_reference(x, params)
    assert out.shape == (N, c2, H, W), out.shape
    max_err = float(jnp.max(jnp.abs(out - ref)))
    assert jnp.allclose(out, ref, atol=3e-2, rtol=3e-2), f"mismatch: {max_err}"

    print("KERNEL_OK")
</pallas_src>

<mosaic_0001>
module attributes {stable_mosaic.version = 11 : i64} {
  func.func @kernel(%arg0: i32, %arg1: memref<1x256x4xbf16, #tpu.memory_space<vmem>>, %arg2: memref<4x16xbf16, #tpu.memory_space<vmem>>, %arg3: memref<1x16xf32, #tpu.memory_space<vmem>>, %arg4: memref<4x16xbf16, #tpu.memory_space<vmem>>, %arg5: memref<1x16xf32, #tpu.memory_space<vmem>>, %arg6: memref<1x16x16xbf16, #tpu.memory_space<vmem>>, %arg7: memref<1x1x16xf32, #tpu.memory_space<vmem>>, %arg8: memref<1x9x16x16xbf16, #tpu.memory_space<vmem>>, %arg9: memref<1x1x16xf32, #tpu.memory_space<vmem>>, %arg10: memref<32x16xbf16, #tpu.memory_space<vmem>>, %arg11: memref<32x16xbf16, #tpu.memory_space<vmem>>, %arg12: memref<32x1xf32, #tpu.memory_space<vmem>>, %arg13: memref<1x32x256xf32, #tpu.memory_space<vmem>>, %arg14: memref<290x16xf32, #tpu.memory_space<vmem>>) attributes {dimension_semantics = [#tpu.dimension_semantics<parallel>], iteration_bounds = array<i64: 2>, scalar_prefetch = 0 : i64, scratch_operands = 1 : i64, tpu.core_type = #tpu.core_type<tc>, window_params = [{transform_indices = @transform_0, window_bounds = array<i64: 1, 256, 4>}, {pipeline_mode = #tpu.pipeline_mode<synchronous>, transform_indices = @transform_1, window_bounds = array<i64: 4, 16>}, {pipeline_mode = #tpu.pipeline_mode<synchronous>, transform_indices = @transform_2, window_bounds = array<i64: 1, 16>}, {pipeline_mode = #tpu.pipeline_mode<synchronous>, transform_indices = @transform_3, window_bounds = array<i64: 4, 16>}, {pipeline_mode = #tpu.pipeline_mode<synchronous>, transform_indices = @transform_4, window_bounds = array<i64: 1, 16>}, {pipeline_mode = #tpu.pipeline_mode<synchronous>, transform_indices = @transform_5, window_bounds = array<i64: 1, 16, 16>}, {pipeline_mode = #tpu.pipeline_mode<synchronous>, transform_indices = @transform_6, window_bounds = array<i64: 1, 1, 16>}, {pipeline_mode = #tpu.pipeline_mode<synchronous>, transform_indices = @transform_7, window_bounds = array<i64: 1, 9, 16, 16>}, {pipeline_mode = #tpu.pipeline_mode<synchronous>, transform_indices = @transform_8, window_bounds = array<i64: 1, 1, 16>}, {pipeline_mode = #tpu.pipeline_mode<synchronous>, transform_indices = @transform_9, window_bounds = array<i64: 32, 16>}, {pipeline_mode = #tpu.pipeline_mode<synchronous>, transform_indices = @transform_10, window_bounds = array<i64: 32, 16>}, {pipeline_mode = #tpu.pipeline_mode<synchronous>, transform_indices = @transform_11, window_bounds = array<i64: 32, 1>}, {transform_indices = @transform_12, window_bounds = array<i64: 1, 32, 256>}]} {
    %c0 = arith.constant 0 : index
    %c0_0 = arith.constant 0 : index
    %c0_1 = arith.constant 0 : index
    %0 = vector.load %arg1[%c0, %c0_0, %c0_1] : memref<1x256x4xbf16, #tpu.memory_space<vmem>>, vector<1x256x4xbf16>
    %1 = vector.shape_cast %0 : vector<1x256x4xbf16> to vector<256x4xbf16>
    %c0_2 = arith.constant 0 : index
    %c0_3 = arith.constant 0 : index
    %2 = vector.load %arg2[%c0_2, %c0_3] : memref<4x16xbf16, #tpu.memory_space<vmem>>, vector<4x16xbf16>
    %cst = arith.constant dense<0.000000e+00> : vector<256x16xf32>
    %3 = tpu.matmul %1, %2, %cst {dimension_numbers = #tpu.dot_dimension_numbers<[1], [0], [0], [1], [0, 0, 1, 1], [], []>} : vector<256x4xbf16>, vector<4x16xbf16>, vector<256x16xf32> -> vector<256x16xf32>
    %c0_4 = arith.constant 0 : index
    %c0_5 = arith.constant 0 : index
    %4 = vector.load %arg3[%c0_4, %c0_5] : memref<1x16xf32, #tpu.memory_space<vmem>>, vector<1x16xf32>
    %5 = vector.broadcast %4 : vector<1x16xf32> to vector<256x16xf32>
    %6 = arith.addf %3, %5 : vector<256x16xf32>
    %cst_6 = arith.constant 0.000000e+00 : f32
    %7 = vector.broadcast %cst_6 : f32 to vector<256x16xf32>
    %8 = arith.subf %7, %6 : vector<256x16xf32>
    %9 = math.exp %8 : vector<256x16xf32>
    %cst_7 = arith.constant 1.000000e+00 : f32
    %10 = vector.broadcast %cst_7 : f32 to vector<256x16xf32>
    %11 = arith.addf %10, %9 : vector<256x16xf32>
    %cst_8 = arith.constant 1.000000e+00 : f32
    %12 = vector.broadcast %cst_8 : f32 to vector<256x16xf32>
    %13 = arith.divf %12, %11 : vector<256x16xf32>
    %14 = arith.mulf %6, %13 : vector<256x16xf32>
    %c0_9 = arith.constant 0 : index
    %c0_10 = arith.constant 0 : index
    %15 = vector.load %arg4[%c0_9, %c0_10] : memref<4x16xbf16, #tpu.memory_space<vmem>>, vector<4x16xbf16>
    %cst_11 = arith.constant dense<0.000000e+00> : vector<256x16xf32>
    %16 = tpu.matmul %1, %15, %cst_11 {dimension_numbers = #tpu.dot_dimension_numbers<[1], [0], [0], [1], [0, 0, 1, 1], [], []>} : vector<256x4xbf16>, vector<4x16xbf16>, vector<256x16xf32> -> vector<256x16xf32>
    %c0_12 = arith.constant 0 : index
    %c0_13 = arith.constant 0 : index
    %17 = vector.load %arg5[%c0_12, %c0_13] : memref<1x16xf32, #tpu.memory_space<vmem>>, vector<1x16xf32>
    %18 = vector.broadcast %17 : vector<1x16xf32> to vector<256x16xf32>
    %19 = arith.addf %16, %18 : vector<256x16xf32>
    %cst_14 = arith.constant 0.000000e+00 : f32
    %20 = vector.broadcast %cst_14 : f32 to vector<256x16xf32>
    %21 = arith.subf %20, %19 : vector<256x16xf32>
    %22 = math.exp %21 : vector<256x16xf32>
    %cst_15 = arith.constant 1.000000e+00 : f32
    %23 = vector.broadcast %cst_15 : f32 to vector<256x16xf32>
    %24 = arith.addf %23, %22 : vector<256x16xf32>
    %cst_16 = arith.constant 1.000000e+00 : f32
    %25 = vector.broadcast %cst_16 : f32 to vector<256x16xf32>
    %26 = arith.divf %25, %24 : vector<256x16xf32>
    %27 = arith.mulf %19, %26 : vector<256x16xf32>
    %28 = tpu.iota {dimensions = array<i32: 0>} : vector<256x1xi32>
    %c16_i32 = arith.constant 16 : i32
    %29 = vector.broadcast %c16_i32 : i32 to vector<256x1xi32>
    %30 = arith.remsi %28, %29 : vector<256x1xi32>
    %c1_i32 = arith.constant 1 : i32
    %31 = vector.broadcast %c1_i32 : i32 to vector<256x1xi32>
    %32 = arith.cmpi sge, %30, %31 : vector<256x1xi32>
    %c14_i32 = arith.constant 14 : i32
    %33 = vector.broadcast %c14_i32 : i32 to vector<256x1xi32>
    %34 = arith.cmpi sle, %30, %33 : vector<256x1xi32>
    %cst_17 = arith.constant 0.000000e+00 : f32
    %35 = vector.broadcast %cst_17 : f32 to vector<290x16xf32>
    %c0_18 = arith.constant 0 : index
    %c0_19 = arith.constant 0 : index
    %36 = vector.load %arg14[%c0_18, %c0_19] : memref<290x16xf32, #tpu.memory_space<vmem>>, vector<290x16xf32>
    tpu.vector_store %arg14[%c0_18, %c0_19], %35 {strides = array<i32>} : memref<290x16xf32, #tpu.memory_space<vmem>>, vector<290x16xf32>,
    %37 = arith.truncf %14 : vector<256x16xf32> to vector<256x16xbf16>
    %c0_20 = arith.constant 0 : index
    %c0_21 = arith.constant 0 : index
    %c0_22 = arith.constant 0 : index
    %38 = vector.load %arg6[%c0_20, %c0_21, %c0_22] : memref<1x16x16xbf16, #tpu.memory_space<vmem>>, vector<1x16x16xbf16>
    %39 = vector.shape_cast %38 : vector<1x16x16xbf16> to vector<16x16xbf16>
    %cst_23 = arith.constant dense<0.000000e+00> : vector<256x16xf32>
    %40 = tpu.matmul %37, %39, %cst_23 {dimension_numbers = #tpu.dot_dimension_numbers<[1], [0], [0], [1], [0, 0, 1, 1], [], []>} : vector<256x16xbf16>, vector<16x16xbf16>, vector<256x16xf32> -> vector<256x16xf32>
    %c0_24 = arith.constant 0 : index
    %c0_25 = arith.constant 0 : index
    %c0_26 = arith.constant 0 : index
    %41 = vector.load %arg7[%c0_24, %c0_25, %c0_26] : memref<1x1x16xf32, #tpu.memory_space<vmem>>, vector<1x1x16xf32>
    %42 = vector.shape_cast %41 : vector<1x1x16xf32> to vector<1x16xf32>
    %43 = vector.broadcast %42 : vector<1x16xf32> to vector<256x16xf32>
    %44 = arith.addf %40, %43 : vector<256x16xf32>
    %cst_27 = arith.constant 0.000000e+00 : f32
    %45 = vector.broadcast %cst_27 : f32 to vector<256x16xf32>
    %46 = arith.subf %45, %44 : vector<256x16xf32>
    %47 = math.exp %46 : vector<256x16xf32>
    %cst_28 = arith.constant 1.000000e+00 : f32
    %48 = vector.broadcast %cst_28 : f32 to vector<256x16xf32>
    %49 = arith.addf %48, %47 : vector<256x16xf32>
    %cst_29 = arith.constant 1.000000e+00 : f32
    %50 = vector.broadcast %cst_29 : f32 to vector<256x16xf32>
    %51 = arith.divf %50, %49 : vector<256x16xf32>
    %52 = arith.mulf %44, %51 : vector<256x16xf32>
    %c17 = arith.constant 17 : index
    %c0_30 = arith.constant 0 : index
    %53 = vector.load %arg14[%c17, %c0_30] : memref<290x16xf32, #tpu.memory_space<vmem>>, vector<256x16xf32>
    tpu.vector_store %arg14[%c17, %c0_30], %52 {strides = array<i32>} : memref<290x16xf32, #tpu.memory_space<vmem>>, vector<256x16xf32>,
    %cst_31 = arith.constant 0.000000e+00 : f32
    %54 = vector.broadcast %cst_31 : f32 to vector<256x16xf32>
    %c0_32 = arith.constant 0 : index
    %c0_33 = arith.constant 0 : index
    %55 = vector.load %arg14[%c0_32, %c0_33] : memref<290x16xf32, #tpu.memory_space<vmem>>, vector<256x16xf32>
    %cst_34 = arith.constant 0.000000e+00 : f32
    %56 = vector.shape_cast %32 : vector<256x1xi1> to vector<256x1xi1>
    %57 = vector.broadcast %56 : vector<256x1xi1> to vector<256x16xi1>
    %58 = vector.broadcast %cst_34 : f32 to vector<256x16xf32>
    %59 = arith.select %57, %55, %58 : vector<256x16xi1>, vector<256x16xf32>
    %60 = arith.truncf %59 : vector<256x16xf32> to vector<256x16xbf16>
    %c0_35 = arith.constant 0 : index
    %c0_36 = arith.constant 0 : index
    %c0_37 = arith.constant 0 : index
    %c0_38 = arith.constant 0 : index
    %61 = vector.load %arg8[%c0_35, %c0_36, %c0_37, %c0_38] : memref<1x9x16x16xbf16, #tpu.memory_space<vmem>>, vector<1x1x16x16xbf16>
    %62 = vector.shape_cast %61 : vector<1x1x16x16xbf16> to vector<16x16xbf16>
    %cst_39 = arith.constant dense<0.000000e+00> : vector<256x16xf32>
    %63 = tpu.matmul %60, %62, %cst_39 {dimension_numbers = #tpu.dot_dimension_numbers<[1], [0], [0], [1], [0, 0, 1, 1], [], []>} : vector<256x16xbf16>, vector<16x16xbf16>, vector<256x16xf32> -> vector<256x16xf32>
    %64 = arith.addf %54, %63 : vector<256x16xf32>
    %c1 = arith.constant 1 : index
    %c0_40 = arith.constant 0 : index
    %65 = vector.load %arg14[%c1, %c0_40] : memref<290x16xf32, #tpu.memory_space<vmem>>, vector<256x16xf32>
    %66 = arith.truncf %65 : vector<256x16xf32> to vector<256x16xbf16>
    %c0_41 = arith.constant 0 : index
    %c1_42 = arith.constant 1 : index
    %c0_43 = arith.constant 0 : index
    %c0_44 = arith.constant 0 : index
    %67 = vector.load %arg8[%c0_41, %c1_42, %c0_43, %c0_44] : memref<1x9x16x16xbf16, #tpu.memory_space<vmem>>, vector<1x1x16x16xbf16>
    %68 = vector.shape_cast %67 : vector<1x1x16x16xbf16> to vector<16x16xbf16>
    %cst_45 = arith.constant dense<0.000000e+00> : vector<256x16xf32>
    %69 = tpu.matmul %66, %68, %cst_45 {dimension_numbers = #tpu.dot_dimension_numbers<[1], [0], [0], [1], [0, 0, 1, 1], [], []>} : vector<256x16xbf16>, vector<16x16xbf16>, vector<256x16xf32> -> vector<256x16xf32>
    %70 = arith.addf %64, %69 : vector<256x16xf32>
    %c2 = arith.constant 2 : index
    %c0_46 = arith.constant 0 : index
    %71 = vector.load %arg14[%c2, %c0_46] : memref<290x16xf32, #tpu.memory_space<vmem>>, vector<256x16xf32>
    %cst_47 = arith.constant 0.000000e+00 : f32
    %72 = vector.shape_cast %34 : vector<256x1xi1> to vector<256x1xi1>
    %73 = vector.broadcast %72 : vector<256x1xi1> to vector<256x16xi1>
    %74 = vector.broadcast %cst_47 : f32 to vector<256x16xf32>
    %75 = arith.select %73, %71, %74 : vector<256x16xi1>, vector<256x16xf32>
    %76 = arith.truncf %75 : vector<256x16xf32> to vector<256x16xbf16>
    %c0_48 = arith.constant 0 : index
    %c2_49 = arith.constant 2 : index
    %c0_50 = arith.constant 0 : index
    %c0_51 = arith.constant 0 : index
    %77 = vector.load %arg8[%c0_48, %c2_49, %c0_50, %c0_51] : memref<1x9x16x16xbf16, #tpu.memory_space<vmem>>, vector<1x1x16x16xbf16>
    %78 = vector.shape_cast %77 : vector<1x1x16x16xbf16> to vector<16x16xbf16>
    %cst_52 = arith.constant dense<0.000000e+00> : vector<256x16xf32>
    %79 = tpu.matmul %76, %78, %cst_52 {dimension_numbers = #tpu.dot_dimension_numbers<[1], [0], [0], [1], [0, 0, 1, 1], [], []>} : vector<256x16xbf16>, vector<16x16xbf16>, vector<256x16xf32> -> vector<256x16xf32>
    %80 = arith.addf %70, %79 : vector<256x16xf32>
    %c16 = arith.constant 16 : index
    %c0_53 = arith.constant 0 : index
    %81 = vector.load %arg14[%c16, %c0_53] : memref<290x16xf32, #tpu.memory_space<vmem>>, vector<256x16xf32>
    %cst_54 = arith.constant 0.000000e+00 : f32
    %82 = vector.shape_cast %32 : vector<256x1xi1> to vector<256x1xi1>
    %83 = vector.broadcast %82 : vector<256x1xi1> to vector<256x16xi1>
    %84 = vector.broadcast %cst_54 : f32 to vector<256x16xf32>
    %85 = arith.select %83, %81, %84 : vector<256x16xi1>, vector<256x16xf32>
    %86 = arith.truncf %85 : vector<256x16xf32> to vector<256x16xbf16>
    %c0_55 = arith.constant 0 : index
    %c3 = arith.constant 3 : index
    %c0_56 = arith.constant 0 : index
    %c0_57 = arith.constant 0 : index
    %87 = vector.load %arg8[%c0_55, %c3, %c0_56, %c0_57] : memref<1x9x16x16xbf16, #tpu.memory_space<vmem>>, vector<1x1x16x16xbf16>
    %88 = vector.shape_cast %87 : vector<1x1x16x16xbf16> to vector<16x16xbf16>
    %cst_58 = arith.constant dense<0.000000e+00> : vector<256x16xf32>
    %89 = tpu.matmul %86, %88, %cst_58 {dimension_numbers = #tpu.dot_dimension_numbers<[1], [0], [0], [1], [0, 0, 1, 1], [], []>} : vector<256x16xbf16>, vector<16x16xbf16>, vector<256x16xf32> -> vector<256x16xf32>
    %90 = arith.addf %80, %89 : vector<256x16xf32>
    %c17_59 = arith.constant 17 : index
    %c0_60 = arith.constant 0 : index
    %91 = vector.load %arg14[%c17_59, %c0_60] : memref<290x16xf32, #tpu.memory_space<vmem>>, vector<256x16xf32>
    %92 = arith.truncf %91 : vector<256x16xf32> to vector<256x16xbf16>
    %c0_61 = arith.constant 0 : index
    %c4 = arith.constant 4 : index
    %c0_62 = arith.constant 0 : index
    %c0_63 = arith.constant 0 : index
    %93 = vector.load %arg8[%c0_61, %c4, %c0_62, %c0_63] : memref<1x9x16x16xbf16, #tpu.memory_space<vmem>>, vector<1x1x16x16xbf16>
    %94 = vector.shape_cast %93 : vector<1x1x16x16xbf16> to vector<16x16xbf16>
    %cst_64 = arith.constant dense<0.000000e+00> : vector<256x16xf32>
    %95 = tpu.matmul %92, %94, %cst_64 {dimension_numbers = #tpu.dot_dimension_numbers<[1], [0], [0], [1], [0, 0, 1, 1], [], []>} : vector<256x16xbf16>, vector<16x16xbf16>, vector<256x16xf32> -> vector<256x16xf32>
    %96 = arith.addf %90, %95 : vector<256x16xf32>
    %c18 = arith.constant 18 : index
    %c0_65 = arith.constant 0 : index
    %97 = vector.load %arg14[%c18, %c0_65] : memref<290x16xf32, #tpu.memory_space<vmem>>, vector<256x16xf32>
    %cst_66 = arith.constant 0.000000e+00 : f32
    %98 = vector.shape_cast %34 : vector<256x1xi1> to vector<256x1xi1>
    %99 = vector.broadcast %98 : vector<256x1xi1> to vector<256x16xi1>
    %100 = vector.broadcast %cst_66 : f32 to vector<256x16xf32>
    %101 = arith.select %99, %97, %100 : vector<256x16xi1>, vector<256x16xf32>
    %102 = arith.truncf %101 : vector<256x16xf32> to vector<256x16xbf16>
    %c0_67 = arith.constant 0 : index
    %c5 = arith.constant 5 : index
    %c0_68 = arith.constant 0 : index
    %c0_69 = arith.constant 0 : index
    %103 = vector.load %arg8[%c0_67, %c5, %c0_68, %c0_69] : memref<1x9x16x16xbf16, #tpu.memory_space<vmem>>, vector<1x1x16x16xbf16>
    %104 = vector.shape_cast %103 : vector<1x1x16x16xbf16> to vector<16x16xbf16>
    %cst_70 = arith.constant dense<0.000000e+00> : vector<256x16xf32>
    %105 = tpu.matmul %102, %104, %cst_70 {dimension_numbers = #tpu.dot_dimension_numbers<[1], [0], [0], [1], [0, 0, 1, 1], [], []>} : vector<256x16xbf16>, vector<16x16xbf16>, vector<256x16xf32> -> vector<256x16xf32>
    %106 = arith.addf %96, %105 : vector<256x16xf32>
    %c32 = arith.constant 32 : index
    %c0_71 = arith.constant 0 : index
    %107 = vector.load %arg14[%c32, %c0_71] : memref<290x16xf32, #tpu.memory_space<vmem>>, vector<256x16xf32>
    %cst_72 = arith.constant 0.000000e+00 : f32
    %108 = vector.shape_cast %32 : vector<256x1xi1> to vector<256x1xi1>
    %109 = vector.broadcast %108 : vector<256x1xi1> to vector<256x16xi1>
    %110 = vector.broadcast %cst_72 : f32 to vector<256x16xf32>
    %111 = arith.select %109, %107, %110 : vector<256x16xi1>, vector<256x16xf32>
    %112 = arith.truncf %111 : vector<256x16xf32> to vector<256x16xbf16>
    %c0_73 = arith.constant 0 : index
    %c6 = arith.constant 6 : index
    %c0_74 = arith.constant 0 : index
    %c0_75 = arith.constant 0 : index
    %113 = vector.load %arg8[%c0_73, %c6, %c0_74, %c0_75] : memref<1x9x16x16xbf16, #tpu.memory_space<vmem>>, vector<1x1x16x16xbf16>
    %114 = vector.shape_cast %113 : vector<1x1x16x16xbf16> to vector<16x16xbf16>
    %cst_76 = arith.constant dense<0.000000e+00> : vector<256x16xf32>
    %115 = tpu.matmul %112, %114, %cst_76 {dimension_numbers = #tpu.dot_dimension_numbers<[1], [0], [0], [1], [0, 0, 1, 1], [], []>} : vector<256x16xbf16>, vector<16x16xbf16>, vector<256x16xf32> -> vector<256x16xf32>
    %116 = arith.addf %106, %115 : vector<256x16xf32>
    %c33 = arith.constant 33 : index
    %c0_77 = arith.constant 0 : index
    %117 = vector.load %arg14[%c33, %c0_77] : memref<290x16xf32, #tpu.memory_space<vmem>>, vector<256x16xf32>
    %118 = arith.truncf %117 : vector<256x16xf32> to vector<256x16xbf16>
    %c0_78 = arith.constant 0 : index
    %c7 = arith.constant 7 : index
    %c0_79 = arith.constant 0 : index
    %c0_80 = arith.constant 0 : index
    %119 = vector.load %arg8[%c0_78, %c7, %c0_79, %c0_80] : memref<1x9x16x16xbf16, #tpu.memory_space<vmem>>, vector<1x1x16x16xbf16>
    %120 = vector.shape_cast %119 : vector<1x1x16x16xbf16> to vector<16x16xbf16>
    %cst_81 = arith.constant dense<0.000000e+00> : vector<256x16xf32>
    %121 = tpu.matmul %118, %120, %cst_81 {dimension_numbers = #tpu.dot_dimension_numbers<[1], [0], [0], [1], [0, 0, 1, 1], [], []>} : vector<256x16xbf16>, vector<16x16xbf16>, vector<256x16xf32> -> vector<256x16xf32>
    %122 = arith.addf %116, %121 : vector<256x16xf32>
    %c34 = arith.constant 34 : index
    %c0_82 = arith.constant 0 : index
    %123 = vector.load %arg14[%c34, %c0_82] : memref<290x16xf32, #tpu.memory_space<vmem>>, vector<256x16xf32>
    %cst_83 = arith.constant 0.000000e+00 : f32
    %124 = vector.shape_cast %34 : vector<256x1xi1> to vector<256x1xi1>
    %125 = vector.broadcast %124 : vector<256x1xi1> to vector<256x16xi1>
    %126 = vector.broadcast %cst_83 : f32 to vector<256x16xf32>
    %127 = arith.select %125, %123, %126 : vector<256x16xi1>, vector<256x16xf32>
    %128 = arith.truncf %127 : vector<256x16xf32> to vector<256x16xbf16>
    %c0_84 = arith.constant 0 : index
    %c8 = arith.constant 8 : index
    %c0_85 = arith.constant 0 : index
    %c0_86 = arith.constant 0 : index
    %129 = vector.load %arg8[%c0_84, %c8, %c0_85, %c0_86] : memref<1x9x16x16xbf16, #tpu.memory_space<vmem>>, vector<1x1x16x16xbf16>
    %130 = vector.shape_cast %129 : vector<1x1x16x16xbf16> to vector<16x16xbf16>
    %cst_87 = arith.constant dense<0.000000e+00> : vector<256x16xf32>
    %131 = tpu.matmul %128, %130, %cst_87 {dimension_numbers = #tpu.dot_dimension_numbers<[1], [0], [0], [1], [0, 0, 1, 1], [], []>} : vector<256x16xbf16>, vector<16x16xbf16>, vector<256x16xf32> -> vector<256x16xf32>
    %132 = arith.addf %122, %131 : vector<256x16xf32>
    %c0_88 = arith.constant 0 : index
    %c0_89 = arith.constant 0 : index
    %c0_90 = arith.constant 0 : index
    %133 = vector.load %arg9[%c0_88, %c0_89, %c0_90] : memref<1x1x16xf32, #tpu.memory_space<vmem>>, vector<1x1x16xf32>
    %134 = vector.shape_cast %133 : vector<1x1x16xf32> to vector<1x16xf32>
    %135 = vector.broadcast %134 : vector<1x16xf32> to vector<256x16xf32>
    %136 = arith.addf %132, %135 : vector<256x16xf32>
    %cst_91 = arith.constant 0.000000e+00 : f32
    %137 = vector.broadcast %cst_91 : f32 to vector<256x16xf32>
    %138 = arith.subf %137, %136 : vector<256x16xf32>
    %139 = math.exp %138 : vector<256x16xf32>
    %cst_92 = arith.constant 1.000000e+00 : f32
    %140 = vector.broadcast %cst_92 : f32 to vector<256x16xf32>
    %141 = arith.addf %140, %139 : vector<256x16xf32>
    %cst_93 = arith.constant 1.000000e+00 : f32
    %142 = vector.broadcast %cst_93 : f32 to vector<256x16xf32>
    %143 = arith.divf %142, %141 : vector<256x16xf32>
    %144 = arith.mulf %136, %143 : vector<256x16xf32>
    %145 = arith.addf %14, %144 : vector<256x16xf32>
    %c0_94 = arith.constant 0 : index
    %c0_95 = arith.constant 0 : index
    %146 = vector.load %arg10[%c0_94, %c0_95] : memref<32x16xbf16, #tpu.memory_space<vmem>>, vector<32x16xbf16>
    %147 = arith.truncf %145 : vector<256x16xf32> to vector<256x16xbf16>
    %cst_96 = arith.constant dense<0.000000e+00> : vector<32x256xf32>
    %148 = tpu.matmul %146, %147, %cst_96 {dimension_numbers = #tpu.dot_dimension_numbers<[1], [1], [0], [0], [0, 0, 1, 0], [], []>} : vector<32x16xbf16>, vector<256x16xbf16>, vector<32x256xf32> -> vector<32x256xf32>
    %c0_97 = arith.constant 0 : index
    %c0_98 = arith.constant 0 : index
    %149 = vector.load %arg11[%c0_97, %c0_98] : memref<32x16xbf16, #tpu.memory_space<vmem>>, vector<32x16xbf16>
    %150 = arith.truncf %27 : vector<256x16xf32> to vector<256x16xbf16>
    %cst_99 = arith.constant dense<0.000000e+00> : vector<32x256xf32>
    %151 = tpu.matmul %149, %150, %cst_99 {dimension_numbers = #tpu.dot_dimension_numbers<[1], [1], [0], [0], [0, 0, 1, 0], [], []>} : vector<32x16xbf16>, vector<256x16xbf16>, vector<32x256xf32> -> vector<32x256xf32>
    %152 = arith.addf %148, %151 : vector<32x256xf32>
    %c0_100 = arith.constant 0 : index
    %c0_101 = arith.constant 0 : index
    %153 = vector.load %arg12[%c0_100, %c0_101] : memref<32x1xf32, #tpu.memory_space<vmem>>, vector<32x1xf32>
    %154 = vector.broadcast %153 : vector<32x1xf32> to vector<32x256xf32>
    %155 = arith.addf %152, %154 : vector<32x256xf32>
    %cst_102 = arith.constant 0.000000e+00 : f32
    %156 = vector.broadcast %cst_102 : f32 to vector<32x256xf32>
    %157 = arith.subf %156, %155 : vector<32x256xf32>
    %158 = math.exp %157 : vector<32x256xf32>
    %cst_103 = arith.constant 1.000000e+00 : f32
    %159 = vector.broadcast %cst_103 : f32 to vector<32x256xf32>
    %160 = arith.addf %159, %158 : vector<32x256xf32>
    %cst_104 = arith.constant 1.000000e+00 : f32
    %161 = vector.broadcast %cst_104 : f32 to vector<32x256xf32>
    %162 = arith.divf %161, %160 : vector<32x256xf32>
    %163 = arith.mulf %155, %162 : vector<32x256xf32>
    %c0_105 = arith.constant 0 : index
    %c0_106 = arith.constant 0 : index
    %c0_107 = arith.constant 0 : index
    %164 = vector.load %arg13[%c0_105, %c0_106, %c0_107] : memref<1x32x256xf32, #tpu.memory_space<vmem>>, vector<1x32x256xf32>
    %165 = vector.shape_cast %164 : vector<1x32x256xf32> to vector<32x256xf32>
    %166 = vector.shape_cast %163 : vector<32x256xf32> to vector<1x32x256xf32>
    tpu.vector_store %arg13[%c0_105, %c0_106, %c0_107], %166 {strides = array<i32>} : memref<1x32x256xf32, #tpu.memory_space<vmem>>, vector<1x32x256xf32>,
    return
  }
  func.func @transform_0(%arg0: i32) -> (i32, i32, i32) {
    %c0_i32 = arith.constant 0 : i32
    %c0_i32_0 = arith.constant 0 : i32
    %c0_i32_1 = arith.constant 0 : i32
    return %arg0, %c0_i32, %c0_i32_0 : i32, i32, i32
  }
  func.func @transform_1(%arg0: i32) -> (i32, i32) {
    %c0_i32 = arith.constant 0 : i32
    %c0_i32_0 = arith.constant 0 : i32
    %c0_i32_1 = arith.constant 0 : i32
    return %c0_i32, %c0_i32_0 : i32, i32
  }
  func.func @transform_2(%arg0: i32) -> (i32, i32) {
    %c0_i32 = arith.constant 0 : i32
    %c0_i32_0 = arith.constant 0 : i32
    %c0_i32_1 = arith.constant 0 : i32
    return %c0_i32, %c0_i32_0 : i32, i32
  }
  func.func @transform_3(%arg0: i32) -> (i32, i32) {
    %c0_i32 = arith.constant 0 : i32
    %c0_i32_0 = arith.constant 0 : i32
    %c0_i32_1 = arith.constant 0 : i32
    return %c0_i32, %c0_i32_0 : i32, i32
  }
  func.func @transform_4(%arg0: i32) -> (i32, i32) {
    %c0_i32 = arith.constant 0 : i32
    %c0_i32_0 = arith.constant 0 : i32
    %c0_i32_1 = arith.constant 0 : i32
    return %c0_i32, %c0_i32_0 : i32, i32
  }
  func.func @transform_5(%arg0: i32) -> (i32, i32, i32) {
    %c0_i32 = arith.constant 0 : i32
    %c0_i32_0 = arith.constant 0 : i32
    %c0_i32_1 = arith.constant 0 : i32
    %c0_i32_2 = arith.constant 0 : i32
    return %c0_i32, %c0_i32_0, %c0_i32_1 : i32, i32, i32
  }
  func.func @transform_6(%arg0: i32) -> (i32, i32, i32) {
    %c0_i32 = arith.constant 0 : i32
    %c0_i32_0 = arith.constant 0 : i32
    %c0_i32_1 = arith.constant 0 : i32
    %c0_i32_2 = arith.constant 0 : i32
    return %c0_i32, %c0_i32_0, %c0_i32_1 : i32, i32, i32
  }
  func.func @transform_7(%arg0: i32) -> (i32, i32, i32, i32) {
    %c0_i32 = arith.constant 0 : i32
    %c0_i32_0 = arith.constant 0 : i32
    %c0_i32_1 = arith.constant 0 : i32
    %c0_i32_2 = arith.constant 0 : i32
    %c0_i32_3 = arith.constant 0 : i32
    return %c0_i32, %c0_i32_0, %c0_i32_1, %c0_i32_2 : i32, i32, i32, i32
  }
  func.func @transform_8(%arg0: i32) -> (i32, i32, i32) {
    %c0_i32 = arith.constant 0 : i32
    %c0_i32_0 = arith.constant 0 : i32
    %c0_i32_1 = arith.constant 0 : i32
    %c0_i32_2 = arith.constant 0 : i32
    return %c0_i32, %c0_i32_0, %c0_i32_1 : i32, i32, i32
  }
  func.func @transform_9(%arg0: i32) -> (i32, i32) {
    %c0_i32 = arith.constant 0 : i32
    %c0_i32_0 = arith.constant 0 : i32
    %c0_i32_1 = arith.constant 0 : i32
    return %c0_i32, %c0_i32_0 : i32, i32
  }
  func.func @transform_10(%arg0: i32) -> (i32, i32) {
    %c0_i32 = arith.constant 0 : i32
    %c0_i32_0 = arith.constant 0 : i32
    %c0_i32_1 = arith.constant 0 : i32
    return %c0_i32, %c0_i32_0 : i32, i32
  }
  func.func @transform_11(%arg0: i32) -> (i32, i32) {
    %c0_i32 = arith.constant 0 : i32
    %c0_i32_0 = arith.constant 0 : i32
    %c0_i32_1 = arith.constant 0 : i32
    return %c0_i32, %c0_i32_0 : i32, i32
  }
  func.func @transform_12(%arg0: i32) -> (i32, i32, i32) {
    %c0_i32 = arith.constant 0 : i32
    %c0_i32_0 = arith.constant 0 : i32
    %c0_i32_1 = arith.constant 0 : i32
    return %arg0, %c0_i32, %c0_i32_0 : i32, i32, i32
  }
}

</mosaic_0001>

<bundles_post_ra>
// kernel: tpu_custom_call.1
= control target key start
LH: loop header
LB: loop body
LE: loop exit
PB: predicated region body
PF: predicated region fallthrough
CT: control target
= control target key end

     0   :  { %s10394_s0 = inlined_call_operand.vmem [shape: bf16[2,256,4], index: 0, kind: input, shape index: {}]   ;;  %s10395_s1 = inlined_call_operand.vmem [shape: bf16[4,16], index: 1, kind: input, shape index: {}]   ;;  %s10396_s2 = inlined_call_operand.vmem [shape: f32[1,16], index: 2, kind: input, shape index: {}]   ;;  %s10397_s3 = inlined_call_operand.vmem [shape: bf16[4,16], index: 3, kind: input, shape index: {}]   ;;  %s10398_s4 = inlined_call_operand.vmem [shape: f32[1,16], index: 4, kind: input, shape index: {}]   ;;  %s10399_s5 = inlined_call_operand.vmem [shape: bf16[1,16,16], index: 5, kind: input, shape index: {}]   ;;  %s10400_s6 = inlined_call_operand.vmem [shape: f32[1,1,16], index: 6, kind: input, shape index: {}]   ;;  %s10401_s7 = inlined_call_operand.vmem [shape: bf16[1,9,16,16], index: 7, kind: input, shape index: {}]   ;;  %s10402_s8 = inlined_call_operand.vmem [shape: f32[1,1,16], index: 8, kind: input, shape index: {}]   ;;  %s10403_s9 = inlined_call_operand.vmem [shape: bf16[32,16], index: 9, kind: input, shape index: {}]   ;;  %s10404_s10 = inlined_call_operand.vmem [shape: bf16[32,16], index: 10, kind: input, shape index: {}]   ;;  %s10405_s11 = inlined_call_operand.vmem [shape: f32[32,1], index: 11, kind: input, shape index: {}]   ;;  %s10406_s12 = inlined_call_operand.hbm [shape: f32[2,32,256], index: 12, kind: output, shape index: {}]  }
   0x1   :  { %10521 = sst [smem:[#allocation122_spill]] %s10394_s0 }
   0x2   :  { %17 = vsyncpa [#allocation4], 0 }
   0x3   :  { %19 = vsyncpa [#allocation4 + $0x1], 0  ;;  %s7848_s21 = smov 0   ;;  %s7850_s22 = smov 0  }
   0x4   :  { %s7852_s23 = smov 0   ;;  %s7854_s24 = smov 0  }
   0x5 LB: > { %s7869_s25 = sadd.s32 4294967295, %s7776_s24   ;;  %s5901_s26 = sadd.s32 4294967294, %s7776_s24   ;;  %s7776_s24 = sphi %s7854_s24, %s11022_s24   ;;  %s7772_s23 = sphi %s7852_s23, %s11021_s23   ;;  %s7768_s22 = sphi %s7850_s22, %s11020_s22   ;;  %s7764_s21 = sphi %s7848_s21, %s11019_s21  }
   0x6   : > { %s7873_s27 = sadd.s32 1, %s7776_s24   ;;  %s289_s28 = sadd.s32 1, %s7772_s23 }
   0x7   : > { %s286_s29 = ssub.s32 %s7776_s24, %s7873_s27  ;;  %p299_p0 = scmp.ne.s32.totalorder %s7772_s23, %s7768_s22 }
   0x8   : > { %p287_p1 = scmp.eq.s32.totalorder %s286_s29, 0  ;;  %p300_p2 = scmp.eq.s32.totalorder %s7869_s25, 1 }
   0x9   : > { %p305_p3 = scmp.ne.s32.totalorder %s7768_s22, %s7764_s21  ;;  %p306_p4 = scmp.eq.s32.totalorder %s5901_s26, 1 }
   0xa   : > { %s7884_s30 = scalar_select %p287_p1, %s7772_s23, %s289_s28  }
   0xb   : > { %p7886_p5 = por %p300_p2, %p299_p0  ;;  %p7890_p6 = por %p306_p4, %p305_p3 }
   0xc   : > { %p5904_p7 = scmp.ge.s32.totalorder %s7776_s24, 1  ;;  %p365_p8 = scmp.lt.s32.totalorder %s7776_s24, 3 }
   0xe   : > { %p366_p9 = pnand %p5904_p7, %p365_p8 }
  0x10   : > { %369 = sbr.rel (%p366_p9) target bundleno = 1573 (0x625), region = 68 }
  0x17   : > { %v445_v0 = vld [vmem:[%s10395_s1] sm:$0x3]  ;;  %vm582_vm0 = vcmask 1041408   ;;  %p407_p10 = scmp.lt.s32.totalorder %s7869_s25, 1  ;;  %vm533_vm1 = vcmask 31744   ;;  %s10524_s0 = sld [smem:[#allocation122_spill]] }
  0x18   : > { %7077 = vmatprep.subr.msk.bf16.mxu0 %vm582_vm0, %v445_v0  ;;  %v584_v1 = vsel %vm582_vm0, %v445_v0, 0  ;;  %v971_v2 = vld [vmem:[%s10397_s3] sm:$0x3]  ;;  %vm10490_vm2 = vcmask 130048   ;;  %s6160_s17 = sshll.u32 %s7869_s25, 10 }
  0x19   : > { %6406 = vmatpush3.bf16.msra.mxu0 %v584_v1  ;;  %s408_s19 = scalar_select %p407_p10, %s7869_s25, 1  ;;  %v7156_v3 = vld [vmem:[%s10399_s5] sm:$0xff]   ;;  %v980_v6 = vsel %vm582_vm0, %v971_v2, 0 }
  0x1a   : > { %7078 = vmatprep.subr.msk.bf16.mxu0 %vm582_vm0, %v971_v2  ;;  %v7963_v21 = vld [vmem:[%s10396_s2] ss:$0 sm:$0xff]  ;;  %s10346_s26 = scalar_lea.hbm %s10406_s12, %s6160_s17 }
  0x1b   : > { %s6159_s20 = sshll.u32 %s408_s19, 7 }
  0x1d   : > { %s7907_s29 = scalar_lea.vmem %s10524_s0, %s6159_s20 }
  0x1e   : > { %v7140_v4 = vld [vmem:[%s7907_s29] sm:$0xff]   ;;  %v7141_v5 = vld [vmem:[%s7907_s29 + $0x8] sm:$0xff]   ;;  %v7142_v7 = vld [vmem:[%s7907_s29 + $0x10] sm:$0xff]  }
  0x1f   : > { %6407 = vmatprep.mubr.msk.bf16.mxu0 %vm533_vm1, %v7140_v4  ;;  %v7143_v8 = vld [vmem:[%s7907_s29 + $0x18] sm:$0xff]   ;;  %v7144_v9 = vld [vmem:[%s7907_s29 + $0x20] sm:$0xff]   ;;  %v7145_v10 = vld [vmem:[%s7907_s29 + $0x28] sm:$0xff]  }
  0x20   : > { %6408 = vmatmul.mubr.msk.bf16.vlgmr.msra.gmra.mrb[0].mxu0 %vm533_vm1, %v7141_v5  ;;  %v7146_v11 = vld [vmem:[%s7907_s29 + $0x30] sm:$0xff]   ;;  %v7147_v12 = vld [vmem:[%s7907_s29 + $0x38] sm:$0xff]   ;;  %v7148_v13 = vld [vmem:[%s7907_s29 + $0x40] sm:$0xff]  }
  0x21   : > { %6411 = vmatprep.mubr.msk.bf16.mxu0 %vm533_vm1, %v7142_v7  ;;  %6440 = vmatpush3.bf16.msra.mxu0 %v980_v6  ;;  %v7149_v14 = vld [vmem:[%s7907_s29 + $0x48] sm:$0xff]   ;;  %v7150_v15 = vld [vmem:[%s7907_s29 + $0x50] sm:$0xff]   ;;  %v7151_v16 = vld [vmem:[%s7907_s29 + $0x58] sm:$0xff]  }
  0x22   : > { %6473 = vmatprep.subr.bf16.mxu0 %v7156_v3  ;;  %v7152_v17 = vld [vmem:[%s7907_s29 + $0x60] sm:$0xff]   ;;  %v7153_v18 = vld [vmem:[%s7907_s29 + $0x68] sm:$0xff]   ;;  %v7154_v19 = vld [vmem:[%s7907_s29 + $0x70] sm:$0xff]  }
  0x23   : > { %v7155_v20 = vld [vmem:[%s7907_s29 + $0x78] sm:$0xff]   ;;  %s404_s29 = sand.u32 1, %s7768_s22  }
  0x24   : > { %s5905_s15 = sshll.u32 %s404_s29, 6  ;;  %s10353_s25 = scalar_lea.sflag [#allocation4], %s404_s29 }
  0x25   : > { %s406_s16 = scalar_lea.vmem [#allocation3], %s5905_s15  ;;  %s7780_s15 = smov [#allocation3]  }
  0x26   : > { %s5839_s18 = sshll.u32 %s406_s16, 4  ;;  %s7718_s17 = sshll.u32 %s7780_s15, 4  ;;  %s10348_s18 = int_to_ptr.vmem [resolvable:$true] %s5839_s18  ;;  %s7719_s17 = int_to_ptr.vmem [resolvable:$false] %s7718_s17 }
  0x27   : > { %s7714_s28 = scalar_lea.vmem %s10348_s18, 1024  ;;  %s7720_s19 = scalar_lea.vmem %s7719_s17, 2048 }
  0x28   : > { %6412 = vmatmul.mubr.msk.bf16.gmra.mrb[4].mxu0 %vm533_vm1, %v7143_v8  ;;  %p7715_p11 = scmp.ne.s32.totalorder %s10348_s18, %s7714_s28  ;;  %p7721_p0 = scmp.lt.s32.totalorder %s10348_s18, %s7719_s17 }
  0x29   : > { %6415 = vmatprep.mubr.msk.bf16.mxu0 %vm533_vm1, %v7144_v9  ;;  %p7722_p1 = scmp.lt.s32.totalorder %s7720_s19, %s7714_s28 }
  0x2a   : > { %p7716_p12 = pnand %p7715_p11, %p7886_p5 }
  0x2b   : > { %p7723_p2 = por %p7722_p1, %p7721_p0 }
  0x2c   : > { %p7717_p13 = pneg %p7716_p12 }
  0x2e   : > { %p7724_p3 = pnand %p7723_p2, %p7717_p13 }
  0x30   : > { %6416 = vmatmul.mubr.msk.bf16.gmra.mrb[8].mxu0 %vm533_vm1, %v7145_v10 }
  0x31   : > { %6419 = vmatprep.mubr.msk.bf16.mxu0 %vm533_vm1, %v7146_v11 }
  0x38   : > { %6420 = vmatmul.mubr.msk.bf16.gmra.mrb[12].mxu0 %vm533_vm1, %v7147_v12 }
  0x39   : > { %6423 = vmatprep.mubr.msk.bf16.mxu0 %vm533_vm1, %v7148_v13 }
  0x40   : > { %6424 = vmatmul.mubr.msk.bf16.gmra.mrb[16].mxu0 %vm533_vm1, %v7149_v14 }
  0x41   : > { %6427 = vmatprep.mubr.msk.bf16.mxu0 %vm533_vm1, %v7150_v15 }
  0x48   : > { %6428 = vmatmul.mubr.msk.bf16.gmra.mrb[20].mxu0 %vm533_vm1, %v7151_v16 }
  0x49   : > { %6431 = vmatprep.mubr.msk.bf16.mxu0 %vm533_vm1, %v7152_v17 }
  0x50   : > { %6432 = vmatmul.mubr.msk.bf16.gmra.mrb[24].mxu0 %vm533_vm1, %v7153_v18 }
  0x51   : > { %6435 = vmatprep.mubr.msk.bf16.mxu0 %vm533_vm1, %v7154_v19 }
  0x58   : > { %6436 = vmatmul.mubr.msk.bf16.gmra.mrb[28].mxu0 %vm533_vm1, %v7155_v20 }
  0x59   : > { %6441 = vmatprep.mubr.msk.bf16.mxu0 %vm533_vm1, %v7140_v4 }
  0x60   : > { %6442 = vmatmul.mubr.msk.bf16.vlgmr.msra.gmra.mrb[32].mxu0 %vm533_vm1, %v7141_v5 }
  0x61   : > { %6445 = vmatprep.mubr.msk.bf16.mxu0 %vm533_vm1, %v7142_v7  ;;  %6474 = vmatpush3.bf16.msra.mxu0 %v7156_v3 }
  0x68   : > { %6446 = vmatmul.mubr.msk.bf16.gmra.mrb[36].mxu0 %vm533_vm1, %v7143_v8 }
  0x69   : > { %6449 = vmatprep.mubr.msk.bf16.mxu0 %vm533_vm1, %v7144_v9 }
  0x70   : > { %6450 = vmatmul.mubr.msk.bf16.gmra.mrb[40].mxu0 %vm533_vm1, %v7145_v10 }
  0x71   : > { %6453 = vmatprep.mubr.msk.bf16.mxu0 %vm533_vm1, %v7146_v11 }
  0x78   : > { %6454 = vmatmul.mubr.msk.bf16.gmra.mrb[44].mxu0 %vm533_vm1, %v7147_v12 }
  0x79   : > { %6457 = vmatprep.mubr.msk.bf16.mxu0 %vm533_vm1, %v7148_v13 }
  0x80   : > { %6458 = vmatmul.mubr.msk.bf16.gmra.mrb[48].mxu0 %vm533_vm1, %v7149_v14 }
  0x81   : > { %6461 = vmatprep.mubr.msk.bf16.mxu0 %vm533_vm1, %v7150_v15 }
  0x88   : > { %6462 = vmatmul.mubr.msk.bf16.gmra.mrb[52].mxu0 %vm533_vm1, %v7151_v16 }
  0x89   : > { %6465 = vmatprep.mubr.msk.bf16.mxu0 %vm533_vm1, %v7152_v17 }
  0x90   : > { %6466 = vmatmul.mubr.msk.bf16.gmra.mrb[56].mxu0 %vm533_vm1, %v7153_v18 }
  0x91   : > { %6469 = vmatprep.mubr.msk.bf16.mxu0 %vm533_vm1, %v7154_v19 }
  0x98   : > { %6470 = vmatmul.mubr.msk.bf16.gmra.mrb[60].mxu0 %vm533_vm1, %v7155_v20 }
  0xf3   : > { %v6409_v22 = vpop.f32.mrb[0].mxu0 }
  0xf4   : > { %v7966_v23 = vadd.f32 %v6409_v22, %v7963_v21  ;;  %v620_v24 = vpop.f32.mrb[1].mxu0 }
  0xf5   : > { %v7969_v25 = vadd.f32 %v7963_v21, %v620_v24  ;;  %v6410_v26 = vpop.f32.mrb[2].mxu0 }
  0xf6   : > { %v749_v27 = vsub.f32 0.0, %v7966_v23  ;;  %v7973_v28 = vadd.f32 %v6410_v26, %v7963_v21  ;;  %v623_v29 = vpop.f32.mrb[3].mxu0 }
  0xf7   : > { %v747_v30 = vsub.f32 0.0, %v7969_v25  ;;  %v7977_v31 = vadd.f32 %v7963_v21, %v623_v29 }
  0xf8   : > { %v783_v32 = vmul.f32 1.442695, %v749_v27  ;;  %v750_v33 = vsub.f32 0.0, %v7973_v28 }
  0xf9   : > { %v779_v34 = vmul.f32 1.442695, %v747_v30  ;;  %v748_v35 = vsub.f32 0.0, %v7977_v31 }
  0xfa   : > { %7170 = vpow2.f32 %v783_v32  ;;  %v785_v36 = vmul.f32 1.442695, %v750_v33 }
  0xfb   : > { %7172 = vpow2.f32 %v779_v34  ;;  %v781_v37 = vmul.f32 1.442695, %v748_v35  ;;  %v6413_v38 = vpop.f32.mrb[4].mxu0 }
  0xfc   : > { %7174 = vpow2.f32 %v785_v36  ;;  %v7982_v39 = vadd.f32 %v6413_v38, %v7963_v21  ;;  %v636_v40 = vpop.f32.mrb[5].mxu0 }
  0xfd   : > { %7176 = vpow2.f32 %v781_v37  ;;  %v7985_v41 = vadd.f32 %v7963_v21, %v636_v40  ;;  %v6414_v42 = vpop.f32.mrb[6].mxu0 }
  0xfe   : > { %v753_v43 = vsub.f32 0.0, %v7982_v39  ;;  %v7989_v44 = vadd.f32 %v6414_v42, %v7963_v21  ;;  %v639_v45 = vpop.f32.mrb[7].mxu0 }
  0xff   : > { %v751_v46 = vsub.f32 0.0, %v7985_v41  ;;  %v7993_v47 = vadd.f32 %v7963_v21, %v639_v45 }
 0x100   : > { %v791_v48 = vmul.f32 1.442695, %v753_v43  ;;  %v754_v49 = vsub.f32 0.0, %v7989_v44 }
 0x101   : > { %v787_v50 = vmul.f32 1.442695, %v751_v46  ;;  %v752_v51 = vsub.f32 0.0, %v7993_v47 }
 0x102   : > { %7178 = vpow2.f32 %v791_v48  ;;  %v793_v52 = vmul.f32 1.442695, %v754_v49 }
 0x103   : > { %7180 = vpow2.f32 %v787_v50  ;;  %v789_v53 = vmul.f32 1.442695, %v752_v51  ;;  %v6417_v54 = vpop.f32.mrb[8].mxu0 }
 0x104   : > { %v7171_v55 = vpop.eup %7170  ;;  %7182 = vpow2.f32 %v793_v52  ;;  %v7998_v56 = vadd.f32 %v6417_v54, %v7963_v21  ;;  %v652_v57 = vpop.f32.mrb[9].mxu0 }
 0x105   : > { %v7173_v58 = vpop.eup %7172  ;;  %v845_v59 = vadd.f32 1.0, %v7171_v55  ;;  %7184 = vpow2.f32 %v789_v53  ;;  %v8001_v60 = vadd.f32 %v7963_v21, %v652_v57  ;;  %v6418_v61 = vpop.f32.mrb[10].mxu0 }
 0x106   : > { %v7175_v62 = vpop.eup %7174  ;;  %v843_v63 = vadd.f32 1.0, %v7173_v58  ;;  %v757_v0 = vsub.f32 0.0, %v7998_v56  ;;  %v8005_v1 = vadd.f32 %v6418_v61, %v7963_v21  ;;  %v655_v2 = vpop.f32.mrb[11].mxu0 }
 0x107   : > { %v7177_v3 = vpop.eup %7176  ;;  %7186 = vrcp.f32 %v845_v59  ;;  %v846_v4 = vadd.f32 1.0, %v7175_v62  ;;  %v755_v5 = vsub.f32 0.0, %v8001_v60  ;;  %v8009_v6 = vadd.f32 %v7963_v21, %v655_v2 }
 0x108   : > { %7188 = vrcp.f32 %v843_v63  ;;  %v844_v7 = vadd.f32 1.0, %v7177_v3  ;;  %v799_v8 = vmul.f32 1.442695, %v757_v0  ;;  %v758_v9 = vsub.f32 0.0, %v8005_v1 }
 0x109   : > { %7190 = vrcp.f32 %v846_v4  ;;  %v795_v10 = vmul.f32 1.442695, %v755_v5  ;;  %v756_v11 = vsub.f32 0.0, %v8009_v6  ;;  %v10407_v2 = vmov 0.0  }
 0x10a   : > { %7192 = vrcp.f32 %v844_v7  ;;  %v801_v12 = vmul.f32 1.442695, %v758_v9  ;;  %1693 = vst.msk [vmem:[#allocation2 + $0x20] sm:$0xff] %vm10490_vm2, %v10407_v2  ;;  %1694 = vst.msk [vmem:[#allocation2 + $0x28] sm:$0xff] %vm10490_vm2, %v10407_v2 }
 0x10b   : > { %7194 = vpow2.f32 %v799_v8  ;;  %v797_v13 = vmul.f32 1.442695, %v756_v11  ;;  %v6421_v14 = vpop.f32.mrb[12].mxu0  ;;  %1689 = vst.msk [vmem:[#allocation2] sm:$0xff] %vm10490_vm2, %v10407_v2  ;;  %1690 = vst.msk [vmem:[#allocation2 + $0x8] sm:$0xff] %vm10490_vm2, %v10407_v2 }
 0x10c   : > { %v7179_v15 = vpop.eup %7178  ;;  %7196 = vpow2.f32 %v795_v10  ;;  %v8014_v16 = vadd.f32 %v6421_v14, %v7963_v21  ;;  %v668_v17 = vpop.f32.mrb[13].mxu0  ;;  %1691 = vst.msk [vmem:[#allocation2 + $0x10] sm:$0xff] %vm10490_vm2, %v10407_v2  ;;  %1692 = vst.msk [vmem:[#allocation2 + $0x18] sm:$0xff] %vm10490_vm2, %v10407_v2 }
 0x10d   : > { %v7181_v18 = vpop.eup %7180  ;;  %v849_v19 = vadd.f32 1.0, %v7179_v15  ;;  %7198 = vpow2.f32 %v801_v12  ;;  %v8017_v20 = vadd.f32 %v7963_v21, %v668_v17  ;;  %v6422_v22 = vpop.f32.mrb[14].mxu0  ;;  %1695 = vst.msk [vmem:[#allocation2 + $0x30] sm:$0xff] %vm10490_vm2, %v10407_v2  ;;  %1696 = vst.msk [vmem:[#allocation2 + $0x38] sm:$0xff] %vm10490_vm2, %v10407_v2 }
 0x10e   : > { %v7183_v24 = vpop.eup %7182  ;;  %v847_v26 = vadd.f32 1.0, %v7181_v18  ;;  %7200 = vpow2.f32 %v797_v13  ;;  %v761_v27 = vsub.f32 0.0, %v8014_v16  ;;  %v8021_v29 = vadd.f32 %v6422_v22, %v7963_v21  ;;  %v671_v30 = vpop.f32.mrb[15].mxu0  ;;  %1697 = vst.msk [vmem:[#allocation2 + $0x40] sm:$0xff] %vm10490_vm2, %v10407_v2  ;;  %1698 = vst.msk [vmem:[#allocation2 + $0x48] sm:$0xff] %vm10490_vm2, %v10407_v2 }
 0x10f   : > { %v7185_v32 = vpop.eup %7184  ;;  %7202 = vrcp.f32 %v849_v19  ;;  %v850_v33 = vadd.f32 1.0, %v7183_v24  ;;  %v759_v34 = vsub.f32 0.0, %v8017_v20  ;;  %v8025_v35 = vadd.f32 %v7963_v21, %v671_v30  ;;  %1699 = vst.msk [vmem:[#allocation2 + $0x50] sm:$0xff] %vm10490_vm2, %v10407_v2  ;;  %1700 = vst.msk [vmem:[#allocation2 + $0x58] sm:$0xff] %vm10490_vm2, %v10407_v2 }
 0x110   : > { %7204 = vrcp.f32 %v847_v26  ;;  %v848_v36 = vadd.f32 1.0, %v7185_v32  ;;  %v807_v37 = vmul.f32 1.442695, %v761_v27  ;;  %v762_v38 = vsub.f32 0.0, %v8021_v29  ;;  %1701 = vst.msk [vmem:[#allocation2 + $0x60] sm:$0xff] %vm10490_vm2, %v10407_v2  ;;  %1702 = vst.msk [vmem:[#allocation2 + $0x68] sm:$0xff] %vm10490_vm2, %v10407_v2 }
 0x111   : > { %v7187_v40 = vpop.eup %7186  ;;  %7206 = vrcp.f32 %v850_v33  ;;  %v803_v42 = vmul.f32 1.442695, %v759_v34  ;;  %v760_v43 = vsub.f32 0.0, %v8025_v35  ;;  %1703 = vst.msk [vmem:[#allocation2 + $0x70] sm:$0xff] %vm10490_vm2, %v10407_v2  ;;  %1704 = vst.msk [vmem:[#allocation2 + $0x78] sm:$0xff] %vm10490_vm2, %v10407_v2 }
 0x112   : > { %v7189_v45 = vpop.eup %7188  ;;  %7208 = vrcp.f32 %v848_v36  ;;  %v809_v46 = vmul.f32 1.442695, %v762_v38  ;;  %v8030_v49 = vmul.f32 %v7187_v40, %v7966_v23  ;;  %1705 = vst.msk [vmem:[#allocation2 + $0x80] sm:$0xff] %vm10490_vm2, %v10407_v2  ;;  %1706 = vst.msk [vmem:[#allocation2 + $0x88] sm:$0xff] %vm10490_vm2, %v10407_v2 }
 0x113   : > { %v7191_v48 = vpop.eup %7190  ;;  %7210 = vpow2.f32 %v807_v37  ;;  %v805_v50 = vmul.f32 1.442695, %v760_v43  ;;  %v6425_v51 = vpop.f32.mrb[16].mxu0  ;;  %v8033_v53 = vmul.f32 %v7189_v45, %v7969_v25  ;;  %1707 = vst.msk [vmem:[#allocation2 + $0x90] sm:$0xff] %vm10490_vm2, %v10407_v2  ;;  %1708 = vst.msk [vmem:[#allocation2 + $0x98] sm:$0xff] %vm10490_vm2, %v10407_v2 }
 0x114   : > { %10525 = vst [vmem:[#allocation6_spill] sm:$0xff] %v8030_v49  ;;  %v7193_v52 = vpop.eup %7192  ;;  %v8036_v54 = vmul.f32 %v7191_v48, %v7973_v28  ;;  %7212 = vpow2.f32 %v803_v42  ;;  %v8039_v55 = vadd.f32 %v6425_v51, %v7963_v21  ;;  %v684_v57 = vpop.f32.mrb[17].mxu0  ;;  %1709 = vst.msk [vmem:[#allocation2 + $0xa0] sm:$0xff] %vm10490_vm2, %v10407_v2 }
 0x115   : > { %10526 = vst [vmem:[#allocation7_spill] sm:$0xff] %v8033_v53  ;;  %v7195_v58 = vpop.eup %7194  ;;  %v8042_v23 = vmul.f32 %v7193_v52, %v7977_v31  ;;  %7214 = vpow2.f32 %v809_v46  ;;  %v8045_v59 = vadd.f32 %v7963_v21, %v684_v57  ;;  %v6426_v61 = vpop.f32.mrb[18].mxu0  ;;  %1710 = vst.msk [vmem:[#allocation2 + $0xa8] sm:$0xff] %vm10490_vm2, %v10407_v2 }
 0x116   : > { %10527 = vst [vmem:[#allocation8_spill] sm:$0xff] %v8036_v54  ;;  %v7197_v62 = vpop.eup %7196  ;;  %v1728_v25 = vpack.c.bf16 %v8036_v54, %v8030_v49  ;;  %v853_v28 = vadd.f32 1.0, %v7195_v58  ;;  %7216 = vpow2.f32 %v805_v50  ;;  %v765_v63 = vsub.f32 0.0, %v8039_v55  ;;  %v687_v0 = vpop.f32.mrb[19].mxu0  ;;  %1711 = vst.msk [vmem:[#allocation2 + $0xb0] sm:$0xff] %vm10490_vm2, %v10407_v2 }
 0x117   : > { %10528 = vst [vmem:[#allocation9_spill] sm:$0xff] %v8042_v23  ;;  %1712 = vst.msk [vmem:[#allocation2 + $0xb8] sm:$0xff] %vm10490_vm2, %v10407_v2  ;;  %v7199_v31 = vpop.eup %7198  ;;  %v1727_v3 = vpack.c.bf16 %v8042_v23, %v8033_v53  ;;  %v851_v4 = vadd.f32 1.0, %v7197_v62  ;;  %v763_v5 = vsub.f32 0.0, %v8045_v59  ;;  %v8126_v7 = vadd.f32 %v6426_v61, %v7963_v21 }
 0x118   : > { %1713 = vst.msk [vmem:[#allocation2 + $0xc0] sm:$0xff] %vm10490_vm2, %v10407_v2  ;;  %1714 = vst.msk [vmem:[#allocation2 + $0xc8] sm:$0xff] %vm10490_vm2, %v10407_v2  ;;  %v7201_v8 = vpop.eup %7200  ;;  %7218 = vrcp.f32 %v853_v28  ;;  %v854_v9 = vadd.f32 1.0, %v7199_v31  ;;  %v815_v10 = vmul.f32 1.442695, %v765_v63  ;;  %v8129_v11 = vadd.f32 %v7963_v21, %v687_v0 }
 0x119   : > { %1715 = vst.msk [vmem:[#allocation2 + $0xd0] sm:$0xff] %vm10490_vm2, %v10407_v2  ;;  %1716 = vst.msk [vmem:[#allocation2 + $0xd8] sm:$0xff] %vm10490_vm2, %v10407_v2  ;;  %v7203_v12 = vpop.eup %7202  ;;  %7220 = vrcp.f32 %v851_v4  ;;  %v852_v13 = vadd.f32 1.0, %v7201_v8  ;;  %v811_v14 = vmul.f32 1.442695, %v763_v5  ;;  %v766_v15 = vsub.f32 0.0, %v8126_v7  ;;  %6475 = vmatprep.mubr.msk.bf16.mxu0 %vm10490_vm2, %v1727_v3 }
 0x11a   : > { %1717 = vst.msk [vmem:[#allocation2 + $0xe0] sm:$0xff] %vm10490_vm2, %v10407_v2  ;;  %1718 = vst.msk [vmem:[#allocation2 + $0xe8] sm:$0xff] %vm10490_vm2, %v10407_v2  ;;  %v7205_v17 = vpop.eup %7204  ;;  %7222 = vrcp.f32 %v854_v9  ;;  %v764_v18 = vsub.f32 0.0, %v8129_v11  ;;  %6476 = vmatmul.mubr.msk.bf16.vlgmr.msra.gmra.mrb[64].mxu0 %vm10490_vm2, %v1728_v25  ;;  %v8136_v22 = vmul.f32 %v7203_v12, %v7982_v39 }
 0x11b   : > { %1719 = vst.msk [vmem:[#allocation2 + $0xf0] sm:$0xff] %vm10490_vm2, %v10407_v2  ;;  %1720 = vst.msk [vmem:[#allocation2 + $0xf8] sm:$0xff] %vm10490_vm2, %v10407_v2  ;;  %v7207_v19 = vpop.eup %7206  ;;  %7224 = vrcp.f32 %v852_v13  ;;  %v817_v24 = vmul.f32 1.442695, %v766_v15  ;;  %v6429_v26 = vpop.f32.mrb[20].mxu0  ;;  %v8145_v37 = vmul.f32 %v7205_v17, %v7985_v41 }
 0x11c   : > { %1721 = vst.msk [vmem:[#allocation2 + $0x100] sm:$0xff] %vm10490_vm2, %v10407_v2  ;;  %1722 = vst.msk [vmem:[#allocation2 + $0x108] sm:$0xff] %vm10490_vm2, %v10407_v2  ;;  %v7209_v27 = vpop.eup %7208  ;;  %v8139_v30 = vmul.f32 %v7207_v19, %v7989_v44  ;;  %7226 = vpow2.f32 %v815_v10  ;;  %v813_v32 = vmul.f32 1.442695, %v764_v18  ;;  %v8142_v33 = vadd.f32 %v6429_v26, %v7963_v21  ;;  %v700_v34 = vpop.f32.mrb[21].mxu0 }
 0x11d   : > { %1723 = vst.msk [vmem:[#allocation2 + $0x110] sm:$0xff] %vm10490_vm2, %v10407_v2  ;;  %1724 = vst.msk [vmem:[#allocation2 + $0x118] sm:$0xff] %vm10490_vm2, %v10407_v2  ;;  %v7211_v36 = vpop.eup %7210  ;;  %v8148_v39 = vmul.f32 %v7209_v27, %v7993_v47  ;;  %7228 = vpow2.f32 %v811_v14  ;;  %v8151_v38 = vadd.f32 %v7963_v21, %v700_v34  ;;  %v6430_v40 = vpop.f32.mrb[22].mxu0 }
 0x11e   : > { %10529 = vst [vmem:[#allocation10_spill] sm:$0xff] %v8136_v22  ;;  %10530 = vst [vmem:[#allocation11_spill] sm:$0xff] %v8139_v30  ;;  %v7213_v44 = vpop.eup %7212  ;;  %v1730_v42 = vpack.c.bf16 %v8139_v30, %v8136_v22  ;;  %v857_v43 = vadd.f32 1.0, %v7211_v36  ;;  %7230 = vpow2.f32 %v817_v24  ;;  %v769_v45 = vsub.f32 0.0, %v8142_v33  ;;  %v703_v46 = vpop.f32.mrb[23].mxu0 }
 0x11f   : > { %10531 = vst [vmem:[#allocation12_spill] sm:$0xff] %v8145_v37  ;;  %10532 = vst [vmem:[#allocation13_spill] sm:$0xff] %v8148_v39  ;;  %v7215_v48 = vpop.eup %7214  ;;  %v1729_v41 = vpack.c.bf16 %v8148_v39, %v8145_v37  ;;  %v855_v47 = vadd.f32 1.0, %v7213_v44  ;;  %7232 = vpow2.f32 %v813_v32  ;;  %v767_v50 = vsub.f32 0.0, %v8151_v38 }
 0x120   : > { %v7217_v51 = vpop.eup %7216  ;;  %7234 = vrcp.f32 %v857_v43  ;;  %v858_v52 = vadd.f32 1.0, %v7215_v48  ;;  %v823_v57 = vmul.f32 1.442695, %v769_v45  ;;  %v8160_v58 = vadd.f32 %v6430_v40, %v7963_v21 }
 0x121   : > { %7236 = vrcp.f32 %v855_v47  ;;  %v856_v61 = vadd.f32 1.0, %v7217_v51  ;;  %v819_v62 = vmul.f32 1.442695, %v767_v50  ;;  %v8163_v25 = vadd.f32 %v7963_v21, %v703_v46  ;;  %6479 = vmatprep.mubr.msk.bf16.mxu0 %vm10490_vm2, %v1729_v41 }
 0x122   : > { %v7219_v28 = vpop.eup %7218  ;;  %7238 = vrcp.f32 %v858_v52  ;;  %v770_v63 = vsub.f32 0.0, %v8160_v58  ;;  %6480 = vmatmul.mubr.msk.bf16.gmra.mrb[68].mxu0 %vm10490_vm2, %v1730_v42 }
 0x123   : > { %v7221_v0 = vpop.eup %7220  ;;  %v8169_v31 = vmul.f32 %v7219_v28, %v7998_v56  ;;  %7240 = vrcp.f32 %v856_v61  ;;  %v768_v3 = vsub.f32 0.0, %v8163_v25  ;;  %v6433_v4 = vpop.f32.mrb[24].mxu0 }
 0x124   : > { %v7223_v5 = vpop.eup %7222  ;;  %v8173_v8 = vmul.f32 %v7221_v0, %v8001_v60  ;;  %7242 = vpow2.f32 %v823_v57  ;;  %v825_v9 = vmul.f32 1.442695, %v770_v63  ;;  %v8176_v10 = vadd.f32 %v6433_v4, %v7963_v21  ;;  %v716_v12 = vpop.f32.mrb[25].mxu0 }
 0x125   : > { %10533 = vst [vmem:[#allocation14_spill] sm:$0xff] %v8169_v31  ;;  %v7225_v13 = vpop.eup %7224  ;;  %v8179_v14 = vmul.f32 %v7223_v5, %v8005_v1  ;;  %7244 = vpow2.f32 %v819_v62  ;;  %v821_v56 = vmul.f32 1.442695, %v768_v3  ;;  %v8182_v15 = vadd.f32 %v7963_v21, %v716_v12  ;;  %v6434_v17 = vpop.f32.mrb[26].mxu0 }
 0x126   : > { %10534 = vst [vmem:[#allocation15_spill] sm:$0xff] %v8173_v8  ;;  %v7227_v18 = vpop.eup %7226  ;;  %v8185_v60 = vmul.f32 %v7225_v13, %v8009_v6  ;;  %7246 = vpow2.f32 %v825_v9  ;;  %v773_v19 = vsub.f32 0.0, %v8176_v10  ;;  %v8189_v24 = vadd.f32 %v6434_v17, %v7963_v21  ;;  %v719_v26 = vpop.f32.mrb[27].mxu0 }
 0x127   : > { %10535 = vst [vmem:[#allocation16_spill] sm:$0xff] %v8179_v14  ;;  %v7229_v27 = vpop.eup %7228  ;;  %v861_v1 = vadd.f32 1.0, %v7227_v18  ;;  %7248 = vpow2.f32 %v821_v56  ;;  %v771_v32 = vsub.f32 0.0, %v8182_v15  ;;  %v1732_v36 = vpack.c.bf16 %v8179_v14, %v8169_v31 }
 0x128   : > { %10536 = vst [vmem:[#allocation17_spill] sm:$0xff] %v8185_v60  ;;  %v7231_v34 = vpop.eup %7230  ;;  %v1731_v6 = vpack.c.bf16 %v8185_v60, %v8173_v8  ;;  %v859_v40 = vadd.f32 1.0, %v7229_v27  ;;  %v774_v44 = vsub.f32 0.0, %v8189_v24  ;;  %v831_v45 = vmul.f32 1.442695, %v773_v19 }
 0x129   : > { %v7233_v42 = vpop.eup %7232  ;;  %7250 = vrcp.f32 %v861_v1  ;;  %v862_v43 = vadd.f32 1.0, %v7231_v34  ;;  %v8198_v46 = vadd.f32 %v7963_v21, %v719_v26  ;;  %v827_v47 = vmul.f32 1.442695, %v771_v32 }
 0x12a   : > { %v7235_v48 = vpop.eup %7234  ;;  %7252 = vrcp.f32 %v859_v40  ;;  %v860_v41 = vadd.f32 1.0, %v7233_v42  ;;  %6483 = vmatprep.mubr.msk.bf16.mxu0 %vm10490_vm2, %v1731_v6  ;;  %v833_v51 = vmul.f32 1.442695, %v774_v44  ;;  %v8234_v40 = vld [vmem:[%s10398_s4] ss:$0 sm:$0xff] }
 0x12b   : > { %v7237_v50 = vpop.eup %7236  ;;  %7254 = vrcp.f32 %v862_v43  ;;  %v772_v52 = vsub.f32 0.0, %v8198_v46  ;;  %6484 = vmatmul.mubr.msk.bf16.gmra.mrb[72].mxu0 %vm10490_vm2, %v1732_v36  ;;  %v6437_v57 = vpop.f32.mrb[28].mxu0  ;;  %v8204_v62 = vmul.f32 %v7235_v48, %v8014_v16 }
 0x12c   : > { %v7239_v61 = vpop.eup %7238  ;;  %v8207_v28 = vmul.f32 %v7237_v50, %v8017_v20  ;;  %7256 = vrcp.f32 %v860_v41  ;;  %v8210_v63 = vadd.f32 %v6437_v57, %v7963_v21  ;;  %v732_v0 = vpop.f32.mrb[29].mxu0 }
 0x12d   : > { %10537 = vst [vmem:[#allocation18_spill] sm:$0xff] %v8204_v62  ;;  %v7241_v3 = vpop.eup %7240  ;;  %v8213_v4 = vmul.f32 %v7239_v61, %v8021_v29  ;;  %7258 = vpow2.f32 %v831_v45  ;;  %v829_v5 = vmul.f32 1.442695, %v772_v52  ;;  %v8216_v9 = vadd.f32 %v7963_v21, %v732_v0  ;;  %v6438_v12 = vpop.f32.mrb[30].mxu0 }
 0x12e   : > { %10538 = vst [vmem:[#allocation19_spill] sm:$0xff] %v8207_v28  ;;  %v7243_v16 = vpop.eup %7242  ;;  %v8219_v13 = vmul.f32 %v7241_v3, %v8025_v35  ;;  %7260 = vpow2.f32 %v827_v47  ;;  %v777_v20 = vsub.f32 0.0, %v8210_v63  ;;  %v8223_v56 = vadd.f32 %v6438_v12, %v7963_v21  ;;  %v735_v17 = vpop.f32.mrb[31].mxu0 }
 0x12f   : > { %10539 = vst [vmem:[#allocation20_spill] sm:$0xff] %v8213_v4  ;;  %v7245_v18 = vpop.eup %7244  ;;  %v865_v29 = vadd.f32 1.0, %v7243_v16  ;;  %7262 = vpow2.f32 %v833_v51  ;;  %v775_v19 = vsub.f32 0.0, %v8216_v9  ;;  %v1734_v27 = vpack.c.bf16 %v8213_v4, %v8204_v62 }
 0x130   : > { %10540 = vst [vmem:[#allocation21_spill] sm:$0xff] %v8219_v13  ;;  %v7247_v26 = vpop.eup %7246  ;;  %v1733_v35 = vpack.c.bf16 %v8219_v13, %v8207_v28  ;;  %v863_v1 = vadd.f32 1.0, %v7245_v18  ;;  %7264 = vpow2.f32 %v829_v5  ;;  %v839_v36 = vmul.f32 1.442695, %v777_v20 }
 0x131   : > { %v7249_v32 = vpop.eup %7248  ;;  %7266 = vrcp.f32 %v865_v29  ;;  %v866_v34 = vadd.f32 1.0, %v7247_v26  ;;  %v778_v6 = vsub.f32 0.0, %v8223_v56  ;;  %v835_v42 = vmul.f32 1.442695, %v775_v19 }
 0x132   : > { %7268 = vrcp.f32 %v863_v1  ;;  %v864_v44 = vadd.f32 1.0, %v7249_v32  ;;  %v8237_v43 = vadd.f32 %v7963_v21, %v735_v17  ;;  %6487 = vmatprep.mubr.msk.bf16.mxu0 %vm10490_vm2, %v1733_v35  ;;  %v1367_v4 = vlaneseq }
 0x133   : > { %v7251_v45 = vpop.eup %7250  ;;  %7270 = vrcp.f32 %v866_v34  ;;  %v841_v48 = vmul.f32 1.442695, %v778_v6  ;;  %6488 = vmatmul.mubr.msk.bf16.gmra.mrb[76].mxu0 %vm10490_vm2, %v1734_v27  ;;  %v6443_v41 = vpop.f32.mrb[32].mxu0 }
 0x134   : > { %v7253_v47 = vpop.eup %7252  ;;  %7272 = vrcp.f32 %v864_v44  ;;  %v776_v50 = vsub.f32 0.0, %v8237_v43  ;;  %v8243_v51 = vadd.f32 %v6443_v41, %v8234_v40  ;;  %v1016_v52 = vpop.f32.mrb[33].mxu0  ;;  %v8246_v21 = vmul.f32 %v7251_v45, %v8039_v55 }
 0x135   : > { %v7255_v57 = vpop.eup %7254  ;;  %v8249_v61 = vmul.f32 %v7253_v47, %v8045_v59  ;;  %7274 = vpow2.f32 %v839_v36  ;;  %v8252_v0 = vadd.f32 %v8234_v40, %v1016_v52  ;;  %v6444_v3 = vpop.f32.mrb[34].mxu0 }
 0x136   : > { %10541 = vst [vmem:[#allocation22_spill] sm:$0xff] %v8246_v21  ;;  %v7257_v5 = vpop.eup %7256  ;;  %v8255_v12 = vmul.f32 %v7255_v57, %v8126_v7  ;;  %7276 = vpow2.f32 %v835_v42  ;;  %v837_v16 = vmul.f32 1.442695, %v776_v50  ;;  %v1145_v20 = vsub.f32 0.0, %v8243_v51  ;;  %v1019_v17 = vpop.f32.mrb[35].mxu0 }
 0x137   : > { %10542 = vst [vmem:[#allocation23_spill] sm:$0xff] %v8249_v61  ;;  %v7259_v18 = vpop.eup %7258  ;;  %v8259_v55 = vmul.f32 %v7257_v5, %v8129_v11  ;;  %7278 = vpow2.f32 %v841_v48  ;;  %v1143_v59 = vsub.f32 0.0, %v8252_v0  ;;  %v8263_v29 = vadd.f32 %v6444_v3, %v8234_v40 }
 0x138   : > { %10543 = vst [vmem:[#allocation24_spill] sm:$0xff] %v8255_v12  ;;  %v7261_v19 = vpop.eup %7260  ;;  %v869_v26 = vadd.f32 1.0, %v7259_v18  ;;  %7280 = vpow2.f32 %v837_v16  ;;  %v1736_v27 = vpack.c.bf16 %v8255_v12, %v8246_v21  ;;  %v1179_v36 = vmul.f32 1.442695, %v1145_v20 }
 0x139   : > { %10544 = vst [vmem:[#allocation25_spill] sm:$0xff] %v8259_v55  ;;  %v7263_v7 = vpop.eup %7262  ;;  %v1735_v35 = vpack.c.bf16 %v8259_v55, %v8249_v61  ;;  %v867_v1 = vadd.f32 1.0, %v7261_v19  ;;  %v1146_v11 = vsub.f32 0.0, %v8263_v29  ;;  %v8271_v6 = vadd.f32 %v8234_v40, %v1019_v17 }
 0x13a   : > { %v7265_v32 = vpop.eup %7264  ;;  %7282 = vrcp.f32 %v869_v26  ;;  %v870_v34 = vadd.f32 1.0, %v7263_v7  ;;  %v1175_v45 = vmul.f32 1.442695, %v1143_v59 }
 0x13b   : > { %v7267_v44 = vpop.eup %7266  ;;  %7284 = vrcp.f32 %v867_v1  ;;  %v868_v42 = vadd.f32 1.0, %v7265_v32  ;;  %6491 = vmatprep.mubr.msk.bf16.mxu0 %vm10490_vm2, %v1735_v35  ;;  %v6447_v48 = vpop.f32.mrb[36].mxu0  ;;  %v1181_v47 = vmul.f32 1.442695, %v1146_v11  ;;  %v1144_v50 = vsub.f32 0.0, %v8271_v6 }
 0x13c   : > { %v7269_v41 = vpop.eup %7268  ;;  %7286 = vrcp.f32 %v870_v34  ;;  %6492 = vmatmul.mubr.msk.bf16.gmra.mrb[80].mxu0 %vm10490_vm2, %v1736_v27  ;;  %v8277_v52 = vadd.f32 %v6447_v48, %v8234_v40  ;;  %v1032_v57 = vpop.f32.mrb[37].mxu0  ;;  %v8280_v5 = vmul.f32 %v7267_v44, %v8142_v33 }
 0x13d   : > { %v7271_v3 = vpop.eup %7270  ;;  %v8283_v16 = vmul.f32 %v7269_v41, %v8151_v38  ;;  %7288 = vrcp.f32 %v868_v42  ;;  %v8286_v20 = vadd.f32 %v8234_v40, %v1032_v57  ;;  %v6448_v17 = vpop.f32.mrb[38].mxu0  ;;  %v1177_v19 = vmul.f32 1.442695, %v1144_v50 }
 0x13e   : > { %10545 = vst [vmem:[#allocation26_spill] sm:$0xff] %v8280_v5  ;;  %v7273_v18 = vpop.eup %7272  ;;  %v8289_v59 = vmul.f32 %v7271_v3, %v8160_v58  ;;  %7290 = vpow2.f32 %v1179_v36  ;;  %v1149_v26 = vsub.f32 0.0, %v8277_v52  ;;  %v1035_v7 = vpop.f32.mrb[39].mxu0  ;;  %v8297_v35 = vadd.f32 %v6448_v17, %v8234_v40 }
 0x13f   : > { %10546 = vst [vmem:[#allocation27_spill] sm:$0xff] %v8283_v16  ;;  %v7275_v27 = vpop.eup %7274  ;;  %v8293_v33 = vmul.f32 %v7273_v18, %v8163_v25  ;;  %7292 = vpow2.f32 %v1175_v45  ;;  %v1147_v38 = vsub.f32 0.0, %v8286_v20  ;;  %v8305_v48 = vadd.f32 %v8234_v40, %v1035_v7 }
 0x140   : > { %10547 = vst [vmem:[#allocation28_spill] sm:$0xff] %v8289_v59  ;;  %v7277_v1 = vpop.eup %7276  ;;  %v1738_v58 = vpack.c.bf16 %v8289_v59, %v8280_v5  ;;  %v873_v11 = vadd.f32 1.0, %v7275_v27  ;;  %7294 = vpow2.f32 %v1181_v47  ;;  %v1187_v25 = vmul.f32 1.442695, %v1149_v26 }
 0x141   : > { %10548 = vst [vmem:[#allocation29_spill] sm:$0xff] %v8293_v33  ;;  %v7279_v32 = vpop.eup %7278  ;;  %v1737_v34 = vpack.c.bf16 %v8293_v33, %v8283_v16  ;;  %v871_v36 = vadd.f32 1.0, %v7277_v1  ;;  %7296 = vpow2.f32 %v1177_v19  ;;  %v1150_v45 = vsub.f32 0.0, %v8297_v35 }
 0x142   : > { %v7281_v44 = vpop.eup %7280  ;;  %7298 = vrcp.f32 %v873_v11  ;;  %v874_v42 = vadd.f32 1.0, %v7279_v32  ;;  %v1183_v47 = vmul.f32 1.442695, %v1147_v38  ;;  %v1148_v17 = vsub.f32 0.0, %v8305_v48 }
 0x143   : > { %7300 = vrcp.f32 %v871_v36  ;;  %v872_v41 = vadd.f32 1.0, %v7281_v44  ;;  %6495 = vmatprep.mubr.msk.bf16.mxu0 %vm10490_vm2, %v1737_v34  ;;  %v6451_v50 = vpop.f32.mrb[40].mxu0  ;;  %v1189_v3 = vmul.f32 1.442695, %v1150_v45 }
 0x144   : > { %v7283_v57 = vpop.eup %7282  ;;  %7302 = vrcp.f32 %v874_v42  ;;  %6496 = vmatmul.mubr.msk.bf16.gmra.mrb[84].mxu0 %vm10490_vm2, %v1738_v58  ;;  %v8311_v18 = vadd.f32 %v6451_v50, %v8234_v40  ;;  %v1048_v19 = vpop.f32.mrb[41].mxu0  ;;  %v1185_v58 = vmul.f32 1.442695, %v1148_v17 }
 0x145   : > { %v7285_v26 = vpop.eup %7284  ;;  %v8314_v7 = vmul.f32 %v7283_v57, %v8176_v10  ;;  %7304 = vrcp.f32 %v872_v41  ;;  %v8317_v27 = vadd.f32 %v8234_v40, %v1048_v19  ;;  %v6452_v38 = vpop.f32.mrb[42].mxu0 }
 0x146   : > { %v7287_v1 = vpop.eup %7286  ;;  %v8320_v11 = vmul.f32 %v7285_v26, %v8182_v15  ;;  %7306 = vpow2.f32 %v1187_v25  ;;  %v1153_v32 = vsub.f32 0.0, %v8311_v18  ;;  %v1051_v34 = vpop.f32.mrb[43].mxu0  ;;  %v8328_v42 = vadd.f32 %v6452_v38, %v8234_v40 }
 0x147   : > { %10549 = vst [vmem:[#allocation30_spill] sm:$0xff] %v8314_v7  ;;  %v7289_v36 = vpop.eup %7288  ;;  %v8324_v44 = vmul.f32 %v7287_v1, %v8189_v24  ;;  %7308 = vpow2.f32 %v1183_v47  ;;  %v1151_v10 = vsub.f32 0.0, %v8317_v27  ;;  %v8334_v25 = vadd.f32 %v8234_v40, %v1051_v34 }
 0x148   : > { %10550 = vst [vmem:[#allocation31_spill] sm:$0xff] %v8320_v11  ;;  %v7291_v45 = vpop.eup %7290  ;;  %v8331_v41 = vmul.f32 %v7289_v36, %v8198_v46  ;;  %7310 = vpow2.f32 %v1189_v3  ;;  %v1195_v15 = vmul.f32 1.442695, %v1153_v32  ;;  %v1154_v46 = vsub.f32 0.0, %v8328_v42 }
 0x149   : > { %10551 = vst [vmem:[#allocation32_spill] sm:$0xff] %v8324_v44  ;;  %v7293_v50 = vpop.eup %7292  ;;  %v1740_v24 = vpack.c.bf16 %v8324_v44, %v8314_v7  ;;  %v1241_v57 = vadd.f32 1.0, %v7291_v45  ;;  %7312 = vpow2.f32 %v1185_v58  ;;  %v1191_v38 = vmul.f32 1.442695, %v1151_v10 }
 0x14a   : > { %10552 = vst [vmem:[#allocation33_spill] sm:$0xff] %v8331_v41  ;;  %v7295_v47 = vpop.eup %7294  ;;  %v1739_v17 = vpack.c.bf16 %v8331_v41, %v8320_v11  ;;  %v1239_v19 = vadd.f32 1.0, %v7293_v50  ;;  %7314 = vpow2.f32 %v1195_v15  ;;  %v1152_v1 = vsub.f32 0.0, %v8334_v25 }
 0x14b   : > { %v7297_v26 = vpop.eup %7296  ;;  %7316 = vrcp.f32 %v1241_v57  ;;  %v1242_v3 = vadd.f32 1.0, %v7295_v47  ;;  %v6455_v32 = vpop.f32.mrb[44].mxu0  ;;  %v1197_v36 = vmul.f32 1.442695, %v1154_v46 }
 0x14c   : > { %v7299_v34 = vpop.eup %7298  ;;  %6499 = vmatprep.mubr.msk.bf16.mxu0 %vm10490_vm2, %v1739_v17  ;;  %7318 = vrcp.f32 %v1239_v19  ;;  %v1240_v58 = vadd.f32 1.0, %v7297_v26  ;;  %v8344_v45 = vadd.f32 %v6455_v32, %v8234_v40  ;;  %v1064_v50 = vpop.f32.mrb[45].mxu0  ;;  %v1193_v10 = vmul.f32 1.442695, %v1152_v1 }
 0x14d   : > { %v7301_v15 = vpop.eup %7300  ;;  %v8347_v2 = vmul.f32 %v7299_v34, %v8210_v63  ;;  %6500 = vmatmul.mubr.msk.bf16.gmra.mrb[88].mxu0 %vm10490_vm2, %v1740_v24  ;;  %7320 = vrcp.f32 %v1242_v3  ;;  %v8351_v57 = vadd.f32 %v8234_v40, %v1064_v50  ;;  %v6456_v47 = vpop.f32.mrb[46].mxu0 }
 0x14e   : > { %v7303_v17 = vpop.eup %7302  ;;  %v8354_v19 = vmul.f32 %v7301_v15, %v8216_v9  ;;  %7322 = vrcp.f32 %v1240_v58  ;;  %v1157_v46 = vsub.f32 0.0, %v8344_v45  ;;  %v8358_v26 = vadd.f32 %v6456_v47, %v8234_v40  ;;  %v1067_v63 = vpop.f32.mrb[47].mxu0 }
 0x14f   : > { %10553 = vst [vmem:[#allocation34_spill] sm:$0xff] %v8347_v2  ;;  %v7305_v32 = vpop.eup %7304  ;;  %v8361_v24 = vmul.f32 %v7303_v17, %v8223_v56  ;;  %7324 = vpow2.f32 %v1191_v38  ;;  %v1155_v3 = vsub.f32 0.0, %v8351_v57  ;;  %v8365_v1 = vadd.f32 %v8234_v40, %v1067_v63 }
 0x150   : > { %10554 = vst [vmem:[#allocation35_spill] sm:$0xff] %v8354_v19  ;;  %v7307_v34 = vpop.eup %7306  ;;  %v8368_v9 = vmul.f32 %v7305_v32, %v8237_v43  ;;  %7326 = vpow2.f32 %v1197_v36  ;;  %v1203_v58 = vmul.f32 1.442695, %v1157_v46  ;;  %v1158_v50 = vsub.f32 0.0, %v8358_v26 }
 0x151   : > { %10555 = vst [vmem:[#allocation36_spill] sm:$0xff] %v8361_v24  ;;  %v7309_v15 = vpop.eup %7308  ;;  %v1245_v47 = vadd.f32 1.0, %v7307_v34  ;;  %7328 = vpow2.f32 %v1193_v10  ;;  %v1742_v56 = vpack.c.bf16 %v8361_v24, %v8347_v2  ;;  %v1199_v32 = vmul.f32 1.442695, %v1155_v3 }
 0x152   : > { %10556 = vst [vmem:[#allocation37_spill] sm:$0xff] %v8368_v9  ;;  %v7311_v41 = vpop.eup %7310  ;;  %v1741_v38 = vpack.c.bf16 %v8368_v9, %v8354_v19  ;;  %v1243_v17 = vadd.f32 1.0, %v7309_v15  ;;  %7330 = vpow2.f32 %v1203_v58  ;;  %v1156_v36 = vsub.f32 0.0, %v8365_v1 }
 0x153   : > { %v7313_v63 = vpop.eup %7312  ;;  %7332 = vrcp.f32 %v1245_v47  ;;  %v1246_v43 = vadd.f32 1.0, %v7311_v41  ;;  %v6459_v46 = vpop.f32.mrb[48].mxu0  ;;  %v1205_v34 = vmul.f32 1.442695, %v1158_v50 }
 0x154   : > { %v7315_v11 = vpop.eup %7314  ;;  %6503 = vmatprep.mubr.msk.bf16.mxu0 %vm10490_vm2, %v1741_v38  ;;  %7334 = vrcp.f32 %v1243_v17  ;;  %v1244_v10 = vadd.f32 1.0, %v7313_v63  ;;  %v8378_v24 = vadd.f32 %v6459_v46, %v8234_v40  ;;  %v1080_v2 = vpop.f32.mrb[49].mxu0  ;;  %v1201_v41 = vmul.f32 1.442695, %v1156_v36 }
 0x155   : > { %v7317_v9 = vpop.eup %7316  ;;  %6504 = vmatmul.mubr.msk.bf16.gmra.mrb[92].mxu0 %vm10490_vm2, %v1742_v56  ;;  %7336 = vrcp.f32 %v1246_v43  ;;  %v1249_v58 = vadd.f32 1.0, %v7315_v11  ;;  %v8382_v3 = vadd.f32 %v8234_v40, %v1080_v2  ;;  %v6460_v15 = vpop.f32.mrb[50].mxu0 }
 0x156   : > { %v7319_v47 = vpop.eup %7318  ;;  %v8385_v38 = vmul.f32 %v7317_v9, %v8243_v51  ;;  %7338 = vrcp.f32 %v1244_v10  ;;  %v1161_v50 = vsub.f32 0.0, %v8378_v24  ;;  %v8389_v17 = vadd.f32 %v6460_v15, %v8234_v40  ;;  %v1083_v63 = vpop.f32.mrb[51].mxu0 }
 0x157   : > { %v7321_v46 = vpop.eup %7320  ;;  %v8392_v56 = vmul.f32 %v7319_v47, %v8252_v0  ;;  %7340 = vrcp.f32 %v1249_v58  ;;  %v1159_v2 = vsub.f32 0.0, %v8382_v3  ;;  %v8396_v11 = vadd.f32 %v8234_v40, %v1083_v63 }
 0x158   : > { %10557 = vst [vmem:[#allocation38_spill] sm:$0xff] %v8385_v38  ;;  %v7323_v43 = vpop.eup %7322  ;;  %v8399_v51 = vmul.f32 %v7321_v46, %v8263_v29  ;;  %7342 = vpow2.f32 %v1199_v32  ;;  %v1211_v9 = vmul.f32 1.442695, %v1161_v50  ;;  %v1162_v36 = vsub.f32 0.0, %v8389_v17 }
 0x159   : > { %10558 = vst [vmem:[#allocation39_spill] sm:$0xff] %v8392_v56  ;;  %v7325_v10 = vpop.eup %7324  ;;  %v8403_v15 = vmul.f32 %v7323_v43, %v8271_v6  ;;  %7344 = vpow2.f32 %v1205_v34  ;;  %v1160_v0 = vsub.f32 0.0, %v8396_v11  ;;  %v1207_v50 = vmul.f32 1.442695, %v1159_v2 }
 0x15a   : > { %10559 = vst [vmem:[#allocation40_spill] sm:$0xff] %v8399_v51  ;;  %v7327_v58 = vpop.eup %7326  ;;  %v1247_v63 = vadd.f32 1.0, %v7325_v10  ;;  %7346 = vpow2.f32 %v1201_v41  ;;  %v1213_v34 = vmul.f32 1.442695, %v1162_v36 }
 0x15b   : > { %v7329_v19 = vpop.eup %7328  ;;  %v1250_v32 = vadd.f32 1.0, %v7327_v58  ;;  %7348 = vpow2.f32 %v1211_v9  ;;  %v6463_v46 = vpop.f32.mrb[52].mxu0  ;;  %v1209_v41 = vmul.f32 1.442695, %v1160_v0 }
 0x15c   : > { %v7331_v44 = vpop.eup %7330  ;;  %7350 = vrcp.f32 %v1247_v63  ;;  %v1248_v6 = vadd.f32 1.0, %v7329_v19  ;;  %v8411_v43 = vadd.f32 %v6463_v46, %v8234_v40  ;;  %v1096_v7 = vpop.f32.mrb[53].mxu0 }
 0x15d   : > { %v7333_v33 = vpop.eup %7332  ;;  %7352 = vrcp.f32 %v1250_v32  ;;  %v1253_v10 = vadd.f32 1.0, %v7331_v44  ;;  %v8414_v47 = vadd.f32 %v8234_v40, %v1096_v7  ;;  %v6464_v29 = vpop.f32.mrb[54].mxu0 }
 0x15e   : > { %v7335_v58 = vpop.eup %7334  ;;  %v8417_v2 = vmul.f32 %v7333_v33, %v8277_v52  ;;  %7354 = vrcp.f32 %v1248_v6  ;;  %v1165_v19 = vsub.f32 0.0, %v8411_v43  ;;  %v8421_v9 = vadd.f32 %v6464_v29, %v8234_v40  ;;  %v1099_v36 = vpop.f32.mrb[55].mxu0 }
 0x15f   : > { %v7337_v63 = vpop.eup %7336  ;;  %v8424_v32 = vmul.f32 %v7335_v58, %v8286_v20  ;;  %7356 = vrcp.f32 %v1253_v10  ;;  %v1163_v7 = vsub.f32 0.0, %v8414_v47  ;;  %v8428_v44 = vadd.f32 %v8234_v40, %v1099_v36 }
 0x160   : > { %10560 = vst [vmem:[#allocation41_spill] sm:$0xff] %v8417_v2  ;;  %v7339_v0 = vpop.eup %7338  ;;  %v8431_v52 = vmul.f32 %v7337_v63, %v8297_v35  ;;  %7358 = vpow2.f32 %v1207_v50  ;;  %v1219_v33 = vmul.f32 1.442695, %v1165_v19  ;;  %v1166_v29 = vsub.f32 0.0, %v8421_v9 }
 0x161   : > { %10561 = vst [vmem:[#allocation42_spill] sm:$0xff] %v8424_v32  ;;  %v7341_v46 = vpop.eup %7340  ;;  %v8435_v6 = vmul.f32 %v7339_v0, %v8305_v48  ;;  %7360 = vpow2.f32 %v1213_v34  ;;  %v1215_v20 = vmul.f32 1.442695, %v1163_v7  ;;  %v1164_v10 = vsub.f32 0.0, %v8428_v44 }
 0x162   : > { %10562 = vst [vmem:[#allocation43_spill] sm:$0xff] %v8431_v52  ;;  %v7343_v58 = vpop.eup %7342  ;;  %7362 = vpow2.f32 %v1209_v41  ;;  %v8443_v50 = vmul.f32 %v7341_v46, %v8311_v18  ;;  %v1221_v7 = vmul.f32 1.442695, %v1166_v29 }
 0x163   : > { %10563 = vst [vmem:[#allocation44_spill] sm:$0xff] %v8435_v6  ;;  %v7345_v16 = vpop.eup %7344  ;;  %v1251_v19 = vadd.f32 1.0, %v7343_v58  ;;  %7364 = vpow2.f32 %v1219_v33  ;;  %v6467_v48 = vpop.f32.mrb[56].mxu0  ;;  %v1217_v5 = vmul.f32 1.442695, %v1164_v10 }
 0x164   : > { %10564 = vst [vmem:[#allocation45_spill] sm:$0xff] %v8443_v50  ;;  %v7347_v63 = vpop.eup %7346  ;;  %v1254_v34 = vadd.f32 1.0, %v7345_v16  ;;  %7366 = vpow2.f32 %v1215_v20  ;;  %v8446_v0 = vadd.f32 %v6467_v48, %v8234_v40  ;;  %v1112_v59 = vpop.f32.mrb[57].mxu0 }
 0x165   : > { %v7349_v36 = vpop.eup %7348  ;;  %7368 = vrcp.f32 %v1251_v19  ;;  %v1252_v41 = vadd.f32 1.0, %v7347_v63  ;;  %v8449_v35 = vadd.f32 %v8234_v40, %v1112_v59  ;;  %v6468_v18 = vpop.f32.mrb[58].mxu0 }
 0x166   : > { %v7351_v46 = vpop.eup %7350  ;;  %7370 = vrcp.f32 %v1254_v34  ;;  %v1257_v33 = vadd.f32 1.0, %v7349_v36  ;;  %v1169_v58 = vsub.f32 0.0, %v8446_v0  ;;  %v8453_v16 = vadd.f32 %v6468_v18, %v8234_v40  ;;  %v1115_v29 = vpop.f32.mrb[59].mxu0 }
 0x167   : > { %v7353_v20 = vpop.eup %7352  ;;  %v8456_v48 = vmul.f32 %v7351_v46, %v8317_v27  ;;  %7372 = vrcp.f32 %v1252_v41  ;;  %v1167_v10 = vsub.f32 0.0, %v8449_v35  ;;  %v8460_v59 = vadd.f32 %v8234_v40, %v1115_v29 }
 0x168   : > { %v7355_v19 = vpop.eup %7354  ;;  %v8463_v63 = vmul.f32 %v7353_v20, %v8328_v42  ;;  %7374 = vrcp.f32 %v1257_v33  ;;  %v1227_v36 = vmul.f32 1.442695, %v1169_v58  ;;  %v1170_v34 = vsub.f32 0.0, %v8453_v16 }
 0x169   : > { %10565 = vst [vmem:[#allocation46_spill] sm:$0xff] %v8456_v48  ;;  %v7357_v18 = vpop.eup %7356  ;;  %v8467_v55 = vmul.f32 %v7355_v19, %v8334_v25  ;;  %7376 = vpow2.f32 %v1221_v7  ;;  %v1223_v27 = vmul.f32 1.442695, %v1167_v10  ;;  %v1168_v41 = vsub.f32 0.0, %v8460_v59 }
 0x16a   : > { %10566 = vst [vmem:[#allocation47_spill] sm:$0xff] %v8463_v63  ;;  %v7359_v46 = vpop.eup %7358  ;;  %7378 = vpow2.f32 %v1217_v5  ;;  %v8475_v33 = vmul.f32 %v7357_v18, %v8344_v45  ;;  %v1229_v10 = vmul.f32 1.442695, %v1170_v34 }
 0x16b   : > { %10567 = vst [vmem:[#allocation48_spill] sm:$0xff] %v8467_v55  ;;  %v7361_v61 = vpop.eup %7360  ;;  %v1255_v58 = vadd.f32 1.0, %v7359_v46  ;;  %7380 = vpow2.f32 %v1227_v36  ;;  %v6471_v25 = vpop.f32.mrb[60].mxu0  ;;  %v1225_v28 = vmul.f32 1.442695, %v1168_v41 }
 0x16c   : > { %10568 = vst [vmem:[#allocation49_spill] sm:$0xff] %v8475_v33  ;;  %v7363_v20 = vpop.eup %7362  ;;  %v1258_v7 = vadd.f32 1.0, %v7361_v61  ;;  %7382 = vpow2.f32 %v1223_v27  ;;  %v8478_v19 = vadd.f32 %v6471_v25, %v8234_v40  ;;  %v1128_v62 = vpop.f32.mrb[61].mxu0 }
 0x16d   : > { %v7365_v29 = vpop.eup %7364  ;;  %7384 = vrcp.f32 %v1255_v58  ;;  %v1256_v5 = vadd.f32 1.0, %v7363_v20  ;;  %v8481_v42 = vadd.f32 %v8234_v40, %v1128_v62  ;;  %v6472_v45 = vpop.f32.mrb[62].mxu0 }
 0x16e   : > { %v7367_v18 = vpop.eup %7366  ;;  %7386 = vrcp.f32 %v1258_v7  ;;  %v1261_v36 = vadd.f32 1.0, %v7365_v29  ;;  %v1173_v46 = vsub.f32 0.0, %v8478_v19  ;;  %v8485_v61 = vadd.f32 %v6472_v45, %v8234_v40  ;;  %v1131_v34 = vpop.f32.mrb[63].mxu0 }
 0x16f   : > { %v7369_v27 = vpop.eup %7368  ;;  %7388 = vrcp.f32 %v1256_v5  ;;  %v1259_v25 = vadd.f32 1.0, %v7367_v18  ;;  %v1171_v58 = vsub.f32 0.0, %v8481_v42  ;;  %v8489_v41 = vadd.f32 %v8234_v40, %v1131_v34 }
 0x170   : > { %v7371_v62 = vpop.eup %7370  ;;  %v8492_v20 = vmul.f32 %v7369_v27, %v8351_v57  ;;  %7390 = vrcp.f32 %v1261_v36  ;;  %v1235_v29 = vmul.f32 1.442695, %v1173_v46  ;;  %v1174_v40 = vsub.f32 0.0, %v8485_v61 }
 0x171   : > { %v7373_v7 = vpop.eup %7372  ;;  %v8495_v12 = vmul.f32 %v7371_v62, %v8358_v26  ;;  %7392 = vrcp.f32 %v1259_v25  ;;  %v1231_v45 = vmul.f32 1.442695, %v1171_v58  ;;  %v1172_v36 = vsub.f32 0.0, %v8489_v41 }
 0x172   : > { %10569 = vst [vmem:[#allocation50_spill] sm:$0xff] %v8492_v20  ;;  %v7375_v21 = vpop.eup %7374  ;;  %v8498_v5 = vmul.f32 %v7373_v7, %v8365_v1  ;;  %7394 = vpow2.f32 %v1229_v10  ;;  %v1237_v58 = vmul.f32 1.442695, %v1174_v40 }
 0x173   : > { %10570 = vst [vmem:[#allocation51_spill] sm:$0xff] %v8495_v12  ;;  %v7377_v18 = vpop.eup %7376  ;;  %7396 = vpow2.f32 %v1225_v28  ;;  %v8507_v7 = vmul.f32 %v7375_v21, %v8378_v24  ;;  %v1233_v28 = vmul.f32 1.442695, %v1172_v36 }
 0x174   : > { %10571 = vst [vmem:[#allocation52_spill] sm:$0xff] %v8498_v5  ;;  %v7379_v46 = vpop.eup %7378  ;;  %v1262_v34 = vadd.f32 1.0, %v7377_v18  ;;  %7398 = vpow2.f32 %v1235_v29 }
 0x175   : > { %v7381_v27 = vpop.eup %7380  ;;  %v1260_v25 = vadd.f32 1.0, %v7379_v46  ;;  %7400 = vpow2.f32 %v1231_v45  ;;  %10572 = vst [vmem:[#allocation53_spill] sm:$0xff] %v8507_v7 }
 0x176   : > { %v7383_v1 = vpop.eup %7382  ;;  %7402 = vrcp.f32 %v1262_v34  ;;  %v1265_v10 = vadd.f32 1.0, %v7381_v27 }
 0x177   : > { %v7385_v62 = vpop.eup %7384  ;;  %7404 = vrcp.f32 %v1260_v25  ;;  %v1263_v26 = vadd.f32 1.0, %v7383_v1 }
 0x178   : > { %v7387_v57 = vpop.eup %7386  ;;  %v8510_v13 = vmul.f32 %v7385_v62, %v8382_v3  ;;  %7406 = vrcp.f32 %v1265_v10 }
 0x179   : > { %v7389_v18 = vpop.eup %7388  ;;  %v8513_v29 = vmul.f32 %v7387_v57, %v8389_v17  ;;  %7408 = vpow2.f32 %v1237_v58 }
 0x17a   : > { %v7391_v45 = vpop.eup %7390  ;;  %v8516_v46 = vmul.f32 %v7389_v18, %v8396_v11  ;;  %7410 = vpow2.f32 %v1233_v28 }
 0x17b   : > { %10573 = vst [vmem:[#allocation54_spill] sm:$0xff] %v8513_v29  ;;  %v7393_v40 = vpop.eup %7392  ;;  %7412 = vrcp.f32 %v1263_v26  ;;  %v8523_v25 = vmul.f32 %v7391_v45, %v8411_v43 }
 0x17c   : > { %v7395_v24 = vpop.eup %7394  ;;  %v8526_v10 = vmul.f32 %v7393_v40, %v8414_v47 }
 0x17d   : > { %v7397_v36 = vpop.eup %7396  ;;  %v1266_v34 = vadd.f32 1.0, %v7395_v24  ;;  %10574 = vst [vmem:[#allocation55_spill] sm:$0xff] %v8523_v25 }
 0x17e   : > { %v7399_v17 = vpop.eup %7398  ;;  %v1264_v57 = vadd.f32 1.0, %v7397_v36  ;;  %10575 = vst [vmem:[#allocation56_spill] sm:$0xff] %v8526_v10 }
 0x17f   : > { %v7401_v27 = vpop.eup %7400  ;;  %7414 = vrcp.f32 %v1266_v34  ;;  %v1269_v11 = vadd.f32 1.0, %v7399_v17 }
 0x180   : > { %v7403_v1 = vpop.eup %7402  ;;  %7416 = vrcp.f32 %v1264_v57  ;;  %v1267_v58 = vadd.f32 1.0, %v7401_v27 }
 0x181   : > { %v7405_v62 = vpop.eup %7404  ;;  %v8529_v28 = vmul.f32 %v7403_v1, %v8421_v9  ;;  %7418 = vrcp.f32 %v1269_v11 }
 0x182   : > { %v8532_v26 = vmul.f32 %v7405_v62, %v8428_v44  ;;  %v7407_v18 = vpop.eup %7406  ;;  %7420 = vrcp.f32 %v1267_v58 }
 0x183   : > { %10576 = vst [vmem:[#allocation57_spill] sm:$0xff] %v8529_v28  ;;  %v7409_v45 = vpop.eup %7408  ;;  %v8539_v9 = vmul.f32 %v7407_v18, %v8446_v0 }
 0x184   : > { %10577 = vst [vmem:[#allocation58_spill] sm:$0xff] %v8532_v26  ;;  %v7411_v47 = vpop.eup %7410  ;;  %v1270_v40 = vadd.f32 1.0, %v7409_v45 }
 0x185   : > { %v7413_v36 = vpop.eup %7412  ;;  %v1268_v34 = vadd.f32 1.0, %v7411_v47  ;;  %10578 = vst [vmem:[#allocation59_spill] sm:$0xff] %v8539_v9 }
 0x186   : > { %7422 = vrcp.f32 %v1270_v40  ;;  %v8542_v17 = vmul.f32 %v7413_v36, %v8449_v35 }
 0x187   : > { %7424 = vrcp.f32 %v1268_v34  ;;  %v2370_v34 = vld [vmem:[#allocation2 + $0x9] sm:$0xff] }
 0x188   : > { %10579 = vst [vmem:[#allocation60_spill] sm:$0xff] %v8542_v17 }
 0x189   : > { %v7415_v44 = vpop.eup %7414 }
 0x18a   : > { %v7417_v57 = vpop.eup %7416  ;;  %v8545_v27 = vmul.f32 %v7415_v44, %v8453_v16  ;;  %v8579_v44 = vld [vmem:[%s10401_s7] sm:$0xff]  }
 0x18b   : > { %v8548_v11 = vmul.f32 %v7417_v57, %v8460_v59  ;;  %v7419_v58 = vpop.eup %7418  ;;  %v8586_v57 = vld [vmem:[%s10401_s7 + $0x18] sm:$0xff]   ;;  %v10747_v56 = vld [vmem:[#allocation58_spill] sm:$0xff] }
 0x18c   : > { %10580 = vst [vmem:[#allocation61_spill] sm:$0xff] %v8545_v27  ;;  %v7421_v62 = vpop.eup %7420  ;;  %v8555_v18 = vmul.f32 %v7419_v58, %v8478_v19  ;;  %v7157_v19 = vld [vmem:[%s10401_s7 + $0x8] sm:$0xff]   ;;  %v8592_v58 = vld [vmem:[%s10400_s6] ss:$0 sm:$0xff] }
 0x18d   : > { %10581 = vst [vmem:[#allocation62_spill] sm:$0xff] %v8548_v11  ;;  %v8558_v45 = vmul.f32 %v7421_v62, %v8481_v42  ;;  %6507 = vmatprep.subr.bf16.mxu0 %v7157_v19  ;;  %v7158_v42 = vld [vmem:[%s10401_s7 + $0x10] sm:$0xff]  }
 0x18e   : > { %10582 = vst [vmem:[#allocation63_spill] sm:$0xff] %v8555_v18  ;;  %6508 = vmatpush3.bf16.msra.mxu0 %v7157_v19  ;;  %6575 = vmatprep.subr.bf16.mxu1 %v7158_v42 }
 0x18f   : > { %10583 = vst [vmem:[#allocation64_spill] sm:$0xff] %v8558_v45  ;;  %6576 = vmatpush3.bf16.msra.mxu1 %v7158_v42  ;;  %6541 = vmatprep.subr.bf16.mxu0 %v8579_v44 }
 0x190   : > { %v7423_v35 = vpop.eup %7422  ;;  %6609 = vmatprep.subr.bf16.mxu1 %v8586_v57 }
 0x191   : > { %v7425_v16 = vpop.eup %7424  ;;  %v8561_v47 = vmul.f32 %v7423_v35, %v8485_v61  ;;  %v2369_v61 = vld [vmem:[#allocation2 + $0x1] sm:$0xff] }
 0x192   : > { %v8564_v59 = vmul.f32 %v7425_v16, %v8489_v41  ;;  %v2401_v41 = vpack.c.bf16 %v2370_v34, %v2369_v61 }
 0x193   : > { %10584 = vst [vmem:[#allocation65_spill] sm:$0xff] %v8561_v47 }
 0x194   : > { %10585 = vst [vmem:[#allocation66_spill] sm:$0xff] %v8564_v59  ;;  %6509 = vmatprep.mubr.msk.bf16.mxu0 %vm10490_vm2, %v2401_v41 }
 0x1ed   : > { %v6477_v62 = vpop.f32.mrb[64].mxu0 }
 0x1ee   : > { %v8595_v35 = vadd.f32 %v6477_v62, %v8592_v58  ;;  %v1840_v16 = vpop.f32.mrb[65].mxu0 }
 0x1ef   : > { %v8598_v19 = vadd.f32 %v8592_v58, %v1840_v16  ;;  %v6478_v42 = vpop.f32.mrb[66].mxu0 }
 0x1f0   : > { %v1969_v61 = vsub.f32 0.0, %v8595_v35  ;;  %v8602_v34 = vadd.f32 %v6478_v42, %v8592_v58  ;;  %v1843_v41 = vpop.f32.mrb[67].mxu0 }
 0x1f1   : > { %v1967_v40 = vsub.f32 0.0, %v8598_v19  ;;  %v8606_v36 = vadd.f32 %v8592_v58, %v1843_v41 }
 0x1f2   : > { %v2003_v1 = vmul.f32 1.442695, %v1969_v61  ;;  %v1970_v62 = vsub.f32 0.0, %v8602_v34 }
 0x1f3   : > { %v1999_v0 = vmul.f32 1.442695, %v1967_v40  ;;  %v1968_v43 = vsub.f32 0.0, %v8606_v36 }
 0x1f4   : > { %7426 = vpow2.f32 %v2003_v1  ;;  %v2005_v16 = vmul.f32 1.442695, %v1970_v62 }
 0x1f5   : > { %7428 = vpow2.f32 %v1999_v0  ;;  %v2001_v24 = vmul.f32 1.442695, %v1968_v43  ;;  %v6481_v21 = vpop.f32.mrb[68].mxu0 }
 0x1f6   : > { %7430 = vpow2.f32 %v2005_v16  ;;  %v8611_v42 = vadd.f32 %v6481_v21, %v8592_v58  ;;  %v1856_v3 = vpop.f32.mrb[69].mxu0  ;;  %v8626_v16 = vshrl.u32 %v1367_v4, 7 }
 0x1f7   : > { %7432 = vpow2.f32 %v2001_v24  ;;  %v8614_v41 = vadd.f32 %v8592_v58, %v1856_v3  ;;  %v6482_v61 = vpop.f32.mrb[70].mxu0 }
 0x1f8   : > { %v1973_v40 = vsub.f32 0.0, %v8611_v42  ;;  %v8618_v60 = vadd.f32 %v6482_v61, %v8592_v58  ;;  %v1859_v1 = vpop.f32.mrb[71].mxu0  ;;  %v8672_v18 = vadd.s32 104, %v8626_v16  ;;  %v8694_v63 = vadd.s32 136, %v8626_v16 }
 0x1f9   : > { %v1971_v43 = vsub.f32 0.0, %v8614_v41  ;;  %v8622_v0 = vadd.f32 %v8592_v58, %v1859_v1  ;;  %v9093_v38 = vadd.s32 176, %v8626_v16 }
 0x1fa   : > { %v2011_v21 = vmul.f32 1.442695, %v1973_v40  ;;  %v1974_v62 = vsub.f32 0.0, %v8618_v60 }
 0x1fb   : > { %v2007_v24 = vmul.f32 1.442695, %v1971_v43  ;;  %v1972_v3 = vsub.f32 0.0, %v8622_v0  ;;  %v8632_v43 = vadd.s32 8, %v8626_v16 }
 0x1fc   : > { %7434 = vpow2.f32 %v2011_v21  ;;  %v2013_v14 = vmul.f32 1.442695, %v1974_v62 }
 0x1fd   : > { %7436 = vpow2.f32 %v2007_v24  ;;  %v2009_v8 = vmul.f32 1.442695, %v1972_v3  ;;  %v8638_v24 = vadd.s32 24, %v8626_v16  ;;  %v1411_v49 = vand.u32 15, %v8632_v43 }
 0x1fe   : > { %v7427_v61 = vpop.eup %7426  ;;  %7438 = vpow2.f32 %v2013_v14  ;;  %v6485_v31 = vpop.f32.mrb[72].mxu0  ;;  %v8641_v14 = vadd.s32 40, %v8626_v16  ;;  %v8666_v43 = vadd.s32 88, %v8626_v16 }
 0x1ff   : > { %v7429_v39 = vpop.eup %7428  ;;  %v2065_v30 = vadd.f32 1.0, %v7427_v61  ;;  %7440 = vpow2.f32 %v2009_v8  ;;  %v8629_v1 = vadd.f32 %v6485_v31, %v8592_v58  ;;  %v1872_v40 = vpop.f32.mrb[73].mxu0  ;;  %vm8688_vm3 = vcmp.le.s32.totalorder %v1411_v49, 14 }
 0x200   : > { %v7431_v37 = vpop.eup %7430  ;;  %v2063_v4 = vadd.f32 1.0, %v7429_v39  ;;  %v8635_v21 = vadd.f32 %v8592_v58, %v1872_v40  ;;  %v6486_v62 = vpop.f32.mrb[74].mxu0  ;;  %v10589_v48 = vand.u32 15, %v8638_v24 }
 0x201   : > { %v7433_v8 = vpop.eup %7432  ;;  %7442 = vrcp.f32 %v2065_v30  ;;  %v2066_v31 = vadd.f32 1.0, %v7431_v37  ;;  %v1977_v3 = vsub.f32 0.0, %v8629_v1  ;;  %v8645_v61 = vadd.f32 %v6486_v62, %v8592_v58  ;;  %v1875_v22 = vpop.f32.mrb[75].mxu0 }
 0x202   : > { %7444 = vrcp.f32 %v2063_v4  ;;  %v2064_v39 = vadd.f32 1.0, %v7433_v8  ;;  %v1975_v40 = vsub.f32 0.0, %v8635_v21  ;;  %v8649_v23 = vadd.f32 %v8592_v58, %v1875_v22 }
 0x203   : > { %7446 = vrcp.f32 %v2066_v31  ;;  %v2019_v54 = vmul.f32 1.442695, %v1977_v3  ;;  %v1978_v53 = vsub.f32 0.0, %v8645_v61  ;;  %v8657_v31 = vadd.s32 56, %v8626_v16 }
 0x204   : > { %7448 = vrcp.f32 %v2064_v39  ;;  %v2015_v30 = vmul.f32 1.442695, %v1975_v40  ;;  %v1976_v37 = vsub.f32 0.0, %v8649_v23  ;;  %v8660_v3 = vadd.s32 72, %v8626_v16 }
 0x205   : > { %7450 = vpow2.f32 %v2019_v54  ;;  %v2021_v62 = vmul.f32 1.442695, %v1978_v53  ;;  %vm8728_vm4 = vcmp.le.s32.totalorder %v10589_v48, 14 }
 0x206   : > { %v7435_v33 = vpop.eup %7434  ;;  %7452 = vpow2.f32 %v2015_v30  ;;  %v2017_v22 = vmul.f32 1.442695, %v1976_v37  ;;  %v6489_v12 = vpop.f32.mrb[76].mxu0 }
 0x207   : > { %v7437_v39 = vpop.eup %7436  ;;  %v2069_v40 = vadd.f32 1.0, %v7435_v33  ;;  %7454 = vpow2.f32 %v2021_v62  ;;  %v8663_v54 = vadd.f32 %v6489_v12, %v8592_v58  ;;  %v1888_v53 = vpop.f32.mrb[77].mxu0 }
 0x208   : > { %v7439_v8 = vpop.eup %7438  ;;  %v2067_v30 = vadd.f32 1.0, %v7437_v39  ;;  %7456 = vpow2.f32 %v2017_v22  ;;  %v8669_v37 = vadd.f32 %v8592_v58, %v1888_v53  ;;  %v6490_v4 = vpop.f32.mrb[78].mxu0 }
 0x209   : > { %v7441_v47 = vpop.eup %7440  ;;  %7458 = vrcp.f32 %v2069_v40  ;;  %v2070_v33 = vadd.f32 1.0, %v7439_v8  ;;  %v1981_v12 = vsub.f32 0.0, %v8663_v54  ;;  %v8676_v62 = vadd.f32 %v6490_v4, %v8592_v58  ;;  %v1891_v20 = vpop.f32.mrb[79].mxu0 }
 0x20a   : > { %7460 = vrcp.f32 %v2067_v30  ;;  %v2068_v5 = vadd.f32 1.0, %v7441_v47  ;;  %v1979_v22 = vsub.f32 0.0, %v8669_v37  ;;  %v8680_v39 = vadd.f32 %v8592_v58, %v1891_v20 }
 0x20b   : > { %v7443_v53 = vpop.eup %7442  ;;  %7462 = vrcp.f32 %v2070_v33  ;;  %v2027_v45 = vmul.f32 1.442695, %v1981_v12  ;;  %v1982_v59 = vsub.f32 0.0, %v8676_v62  ;;  %v8684_v8 = vadd.s32 120, %v8626_v16 }
 0x20c   : > { %v7445_v40 = vpop.eup %7444  ;;  %v2161_v4 = vmul.f32 %v7443_v53, %v8595_v35  ;;  %7464 = vrcp.f32 %v2068_v5  ;;  %v2023_v50 = vmul.f32 1.442695, %v1979_v22  ;;  %v1980_v47 = vsub.f32 0.0, %v8680_v39 }
 0x20d   : > { %v10586_v30 = vmov 0  ;;  %v7447_v20 = vpop.eup %7446  ;;  %v2159_v33 = vmul.f32 %v7445_v40, %v8598_v19  ;;  %7466 = vpow2.f32 %v2027_v45  ;;  %v2029_v12 = vmul.f32 1.442695, %v1982_v59 }
 0x20e   : > { %v10587_v30 = vsel %vm8688_vm3, 4294967295, %v10586_v30  ;;  %v7449_v9 = vpop.eup %7448  ;;  %2193 = vst.msk [vmem:[#allocation2 + $0x21] sm:$0xff] %vm10490_vm2, %v2161_v4  ;;  %v2162_v5 = vmul.f32 %v7447_v20, %v8602_v34  ;;  %7468 = vpow2.f32 %v2023_v50  ;;  %v2025_v35 = vmul.f32 1.442695, %v1980_v47 }
 0x20f   : > { %10588 = vst [vmem:[#allocation67_spill] sm:$0xff] %v10587_v30  ;;  %v7451_v22 = vpop.eup %7450  ;;  %2191 = vst.msk [vmem:[#allocation2 + $0x11] sm:$0xff] %vm10490_vm2, %v2159_v33  ;;  %v2160_v53 = vmul.f32 %v7449_v9, %v8606_v36  ;;  %7470 = vpow2.f32 %v2029_v12  ;;  %v6493_v45 = vpop.f32.mrb[80].mxu0 }
 0x210   : > { %v7453_v40 = vpop.eup %7452  ;;  %2194 = vst.msk [vmem:[#allocation2 + $0x29] sm:$0xff] %vm10490_vm2, %v2162_v5  ;;  %v2073_v4 = vadd.f32 1.0, %v7451_v22  ;;  %7472 = vpow2.f32 %v2025_v35  ;;  %v8705_v50 = vadd.f32 %v6493_v45, %v8592_v58  ;;  %v1904_v34 = vpop.f32.mrb[81].mxu0 }
 0x211   : > { %v7455_v20 = vpop.eup %7454  ;;  %2192 = vst.msk [vmem:[#allocation2 + $0x19] sm:$0xff] %vm10490_vm2, %v2160_v53  ;;  %v2071_v9 = vadd.f32 1.0, %v7453_v40  ;;  %v8710_v36 = vadd.f32 %v8592_v58, %v1904_v34  ;;  %v6494_v33 = vpop.f32.mrb[82].mxu0 }
 0x212   : > { %v7457_v22 = vpop.eup %7456  ;;  %7474 = vrcp.f32 %v2073_v4  ;;  %v2074_v35 = vadd.f32 1.0, %v7455_v20  ;;  %v1985_v45 = vsub.f32 0.0, %v8705_v50  ;;  %v8716_v19 = vadd.f32 %v6494_v33, %v8592_v58  ;;  %v1907_v47 = vpop.f32.mrb[83].mxu0 }
 0x213   : > { %v7459_v59 = vpop.eup %7458  ;;  %7476 = vrcp.f32 %v2071_v9  ;;  %v2072_v53 = vadd.f32 1.0, %v7457_v22  ;;  %v1983_v40 = vsub.f32 0.0, %v8710_v36  ;;  %v8720_v34 = vadd.f32 %v8592_v58, %v1907_v47  ;;  %v2850_v22 = vld [vmem:[#allocation2 + $0x2] sm:$0xff] }
 0x214   : > { %v7461_v12 = vpop.eup %7460  ;;  %v2165_v5 = vmul.f32 %v7459_v59, %v8611_v42  ;;  %7478 = vrcp.f32 %v2074_v35  ;;  %v2035_v4 = vmul.f32 1.442695, %v1985_v45  ;;  %v1986_v20 = vsub.f32 0.0, %v8716_v19 }
 0x215   : > { %v7463_v49 = vpop.eup %7462  ;;  %v2163_v33 = vmul.f32 %v7461_v12, %v8614_v41  ;;  %7480 = vrcp.f32 %v2072_v53  ;;  %v2031_v27 = vmul.f32 1.442695, %v1983_v40  ;;  %v1984_v9 = vsub.f32 0.0, %v8720_v34  ;;  %v2373_v2 = vld [vmem:[#allocation2 + $0x21] sm:$0xff] }
 0x216   : > { %v7465_v55 = vpop.eup %7464  ;;  %2197 = vst.msk [vmem:[#allocation2 + $0x41] sm:$0xff] %vm10490_vm2, %v2165_v5  ;;  %v2166_v42 = vmul.f32 %v7463_v49, %v8618_v60  ;;  %7482 = vpow2.f32 %v2035_v4  ;;  %v2037_v59 = vmul.f32 1.442695, %v1986_v20  ;;  %v2851_v35 = vld [vmem:[#allocation2 + $0xa] sm:$0xff]  ;;  %v8735_v41 = vadd.s32 152, %v8626_v16 }
 0x217   : > { %v7467_v12 = vpop.eup %7466  ;;  %2195 = vst.msk [vmem:[#allocation2 + $0x31] sm:$0xff] %vm10490_vm2, %v2163_v33  ;;  %v2164_v24 = vmul.f32 %v7465_v55, %v8622_v0  ;;  %7484 = vpow2.f32 %v2031_v27  ;;  %v2033_v48 = vmul.f32 1.442695, %v1984_v9  ;;  %v6497_v45 = vpop.f32.mrb[84].mxu0  ;;  %v2947_v53 = vsel %vm8688_vm3, %v2851_v35, 0.0 }
 0x218   : > { %v7469_v5 = vpop.eup %7468  ;;  %2198 = vst.msk [vmem:[#allocation2 + $0x49] sm:$0xff] %vm10490_vm2, %v2166_v42  ;;  %v2077_v60 = vadd.f32 1.0, %v7467_v12  ;;  %7486 = vpow2.f32 %v2037_v59  ;;  %v8743_v49 = vadd.f32 %v6497_v45, %v8592_v58  ;;  %v1920_v40 = vpop.f32.mrb[85].mxu0  ;;  %v2978_v4 = vpack.c.bf16 %v2947_v53, %v2850_v22  ;;  %v8745_v20 = vld [vmem:[#allocation2 + $0x1a] sm:$0xff] }
 0x219   : > { %10592 = vst [vmem:[#allocation68_spill] sm:$0xff] %v8745_v20  ;;  %v7471_v33 = vpop.eup %7470  ;;  %2196 = vst.msk [vmem:[#allocation2 + $0x39] sm:$0xff] %vm10490_vm2, %v2164_v24  ;;  %v2075_v55 = vadd.f32 1.0, %v7469_v5  ;;  %7488 = vpow2.f32 %v2033_v48  ;;  %v8749_v27 = vadd.f32 %v8592_v58, %v1920_v40  ;;  %v6498_v0 = vpop.f32.mrb[86].mxu0  ;;  %v2372_v42 = vld [vmem:[#allocation2 + $0x19] sm:$0xff]  ;;  %v2371_v5 = vld [vmem:[#allocation2 + $0x11] sm:$0xff] }
 0x21a   : > { %v7473_v59 = vpop.eup %7472  ;;  %7490 = vrcp.f32 %v2077_v60  ;;  %v2078_v35 = vadd.f32 1.0, %v7471_v33  ;;  %v1989_v22 = vsub.f32 0.0, %v8743_v49  ;;  %v8756_v12 = vadd.f32 %v6498_v0, %v8592_v58  ;;  %v1923_v24 = vpop.f32.mrb[87].mxu0  ;;  %6577 = vmatprep.mubr.msk.bf16.mxu1 %vm10490_vm2, %v2978_v4  ;;  %v2374_v40 = vld [vmem:[#allocation2 + $0x29] sm:$0xff] }
 0x21b   : > { %7492 = vrcp.f32 %v2075_v55  ;;  %v2076_v48 = vadd.f32 1.0, %v7473_v59  ;;  %v1987_v45 = vsub.f32 0.0, %v8749_v27  ;;  %v8761_v53 = vadd.f32 %v8592_v58, %v1923_v24 }
 0x21c   : > { %v7475_v9 = vpop.eup %7474  ;;  %7494 = vrcp.f32 %v2078_v35  ;;  %v2043_v60 = vmul.f32 1.442695, %v1989_v22  ;;  %v1990_v33 = vsub.f32 0.0, %v8756_v12  ;;  %v8764_v17 = vpack.c.bf16 %v2372_v42, %v2371_v5 }
 0x21d   : > { %v10594_v0 = vand.u32 15, %v8641_v14  ;;  %v10595_v4 = vmov 0  ;;  %v7477_v55 = vpop.eup %7476  ;;  %v2169_v59 = vmul.f32 %v7475_v9, %v8629_v1  ;;  %7496 = vrcp.f32 %v2076_v48 }
 0x21e   : > { %10593 = vst [vmem:[#allocation69_spill] sm:$0xff] %v8764_v17  ;;  %v2039_v24 = vmul.f32 1.442695, %v1987_v45  ;;  %v1988_v11 = vsub.f32 0.0, %v8761_v53  ;;  %v7479_v35 = vpop.eup %7478  ;;  %v2167_v22 = vmul.f32 %v7477_v55, %v8635_v21  ;;  %7498 = vpow2.f32 %v2043_v60  ;;  %v8775_v5 = vld [vmem:[#allocation2 + $0x2a] sm:$0xff]  ;;  %6510 = vmatmul.mubr.msk.bf16.vlgmr.msra.gmra.mrb[96].mxu0 %vm10490_vm2, %v8764_v17 }
 0x21f   : > { %vm8768_vm5 = vcmp.le.s32.totalorder %v10594_v0, 14  ;;  %v2045_v42 = vmul.f32 1.442695, %v1990_v33  ;;  %10598 = vst [vmem:[#allocation71_spill] sm:$0xff] %v8775_v5  ;;  %v8779_v14 = vpack.c.bf16 %v2374_v40, %v2373_v2  ;;  %v2852_v0 = vld [vmem:[#allocation2 + $0x12] sm:$0xff]  ;;  %v7481_v52 = vpop.eup %7480  ;;  %2201 = vst.msk [vmem:[#allocation2 + $0x61] sm:$0xff] %vm10490_vm2, %v2169_v59  ;;  %v2170_v1 = vmul.f32 %v7479_v35, %v8645_v61  ;;  %6542 = vmatpush3.bf16.msra.mxu0 %v8579_v44 }
 0x220   : > { %v10596_v4 = vsel %vm8768_vm5, 4294967295, %v10595_v4  ;;  %7500 = vpow2.f32 %v2039_v24  ;;  %v2041_v9 = vmul.f32 1.442695, %v1988_v11  ;;  %v10600_v48 = vand.u32 15, %v8657_v31  ;;  %v7483_v2 = vpop.eup %7482  ;;  %2199 = vst.msk [vmem:[#allocation2 + $0x51] sm:$0xff] %vm10490_vm2, %v2167_v22  ;;  %v3874_v44 = vld [vmem:[#allocation2 + $0x22] sm:$0xff] }
 0x221   : > { %10597 = vst [vmem:[#allocation70_spill] sm:$0xff] %v10596_v4  ;;  %10599 = vst [vmem:[#allocation72_spill] sm:$0xff] %v8779_v14  ;;  %v10601_v45 = vmov 0  ;;  %v2168_v40 = vmul.f32 %v7481_v52, %v8649_v23  ;;  %7502 = vpow2.f32 %v2045_v42  ;;  %6513 = vmatprep.mubr.msk.bf16.mxu0 %vm10490_vm2, %v8779_v14  ;;  %v2949_v11 = vsel %vm8728_vm4, %v8745_v20, 0.0  ;;  %v8803_v31 = vld [vmem:[#allocation2 + $0x32] sm:$0xff]  ;;  %v8805_v60 = vld [vmem:[#allocation2 + $0x3a] sm:$0xff]  ;;  %v7485_v33 = vpop.eup %7484 }
 0x222   : > { %vm8789_vm6 = vcmp.le.s32.totalorder %v10600_v48, 14  ;;  %v3907_v61 = vsel %vm8728_vm4, %v8775_v5, 0.0  ;;  %v10604_v23 = vpack.c.bf16 %v8516_v46, %v8510_v13  ;;  %v6501_v52 = vpop.f32.mrb[88].mxu0  ;;  %2202 = vst.msk [vmem:[#allocation2 + $0x69] sm:$0xff] %vm10490_vm2, %v2170_v1  ;;  %v2081_v55 = vadd.f32 1.0, %v7483_v2  ;;  %v8817_v22 = vld [vmem:[%s10401_s7 + $0x20] sm:$0xff]   ;;  %v7487_v42 = vpop.eup %7486 }
 0x223   : > { %v10602_v45 = vsel %vm8789_vm6, 4294967295, %v10601_v45  ;;  %7504 = vpow2.f32 %v2041_v9  ;;  %v2979_v59 = vpack.c.bf16 %v2949_v11, %v2852_v0  ;;  %v8812_v24 = vpack.c.bf16 %v3907_v61, %v3874_v44  ;;  %v1936_v35 = vpop.f32.mrb[89].mxu0  ;;  %10606 = vst [vmem:[#allocation75_spill] sm:$0xff] %v8817_v22  ;;  %2200 = vst.msk [vmem:[#allocation2 + $0x59] sm:$0xff] %vm10490_vm2, %v2168_v40  ;;  %v7489_v11 = vpop.eup %7488  ;;  %v2378_v21 = vld [vmem:[#allocation2 + $0x49] sm:$0xff] }
 0x224   : > { %10603 = vst [vmem:[#allocation73_spill] sm:$0xff] %v10602_v45  ;;  %7079 = vmatprep.subr.msk.bf16.mxu0 %vm10490_vm2, %v10604_v23  ;;  %v2079_v13 = vadd.f32 1.0, %v7485_v33  ;;  %v4865_v46 = vsel %vm8728_vm4, %v8805_v60, 0.0  ;;  %v8824_v1 = vadd.f32 %v6501_v52, %v8592_v58  ;;  %v8827_v0 = vadd.f32 %v8592_v58, %v1936_v35  ;;  %v6502_v9 = vpop.f32.mrb[90].mxu0  ;;  %v7491_v52 = vpop.eup %7490 }
 0x225   : > { %10605 = vst [vmem:[#allocation74_spill] sm:$0xff] %v8812_v24  ;;  %v10607_v48 = vand.u32 15, %v8660_v3  ;;  %v10608_v2 = vmov 0  ;;  %7506 = vrcp.f32 %v2081_v55  ;;  %v2082_v40 = vadd.f32 1.0, %v7487_v42  ;;  %6578 = vmatmul.mubr.msk.bf16.vlgmr.msra.gmra.mrb[0].mxu1 %vm10490_vm2, %v2979_v59  ;;  %v1939_v23 = vpop.f32.mrb[91].mxu0  ;;  %v7493_v55 = vpop.eup %7492  ;;  %v2375_v24 = vld [vmem:[#allocation2 + $0x31] sm:$0xff] }
 0x226   : > { %v8837_v47 = vpack.c.bf16 %v4865_v46, %v8803_v31  ;;  %v8840_v61 = vadd.f32 %v6502_v9, %v8592_v58  ;;  %7508 = vrcp.f32 %v2079_v13  ;;  %v2080_v33 = vadd.f32 1.0, %v7489_v11  ;;  %6610 = vmatpush3.bf16.msra.mxu1 %v8586_v57  ;;  %v2376_v9 = vld [vmem:[#allocation2 + $0x39] sm:$0xff]  ;;  %v7495_v13 = vpop.eup %7494 }
 0x227   : > { %vm8831_vm7 = vcmp.le.s32.totalorder %v10607_v48, 14  ;;  %v1993_v3 = vsub.f32 0.0, %v8824_v1  ;;  %v1991_v35 = vsub.f32 0.0, %v8827_v0  ;;  %v2173_v42 = vmul.f32 %v7491_v52, %v8663_v54  ;;  %6643 = vmatprep.subr.bf16.mxu1 %v8817_v22 }
 0x228   : > { %v10609_v2 = vsel %vm8831_vm7, 4294967295, %v10608_v2  ;;  %10611 = vst [vmem:[#allocation77_spill] sm:$0xff] %v8837_v47  ;;  %7510 = vrcp.f32 %v2082_v40  ;;  %v1994_v59 = vsub.f32 0.0, %v8840_v61  ;;  %v8848_v46 = vadd.f32 %v8592_v58, %v1939_v23  ;;  %v7497_v47 = vpop.eup %7496 }
 0x229   : > { %10610 = vst [vmem:[#allocation76_spill] sm:$0xff] %v10609_v2  ;;  %v2171_v48 = vmul.f32 %v7493_v55, %v8669_v37  ;;  %7512 = vrcp.f32 %v2080_v33  ;;  %v2051_v57 = vmul.f32 1.442695, %v1993_v3  ;;  %v2047_v11 = vmul.f32 1.442695, %v1991_v35  ;;  %2205 = vst.msk [vmem:[#allocation2 + $0x81] sm:$0xff] %vm10490_vm2, %v2173_v42 }
 0x22a   : > { %v2174_v54 = vmul.f32 %v7495_v13, %v8676_v62  ;;  %v2053_v40 = vmul.f32 1.442695, %v1994_v59  ;;  %v1992_v52 = vsub.f32 0.0, %v8848_v46  ;;  %v2951_v23 = vsel %vm8768_vm5, %v8775_v5, 0.0  ;;  %v7499_v62 = vpop.eup %7498 }
 0x22b   : > { %v10612_v20 = vand.u32 15, %v8666_v43  ;;  %v10613_v37 = vmov 0  ;;  %v10616_v33 = vand.u32 15, %v8672_v18  ;;  %v10617_v3 = vmov 0  ;;  %2203 = vst.msk [vmem:[#allocation2 + $0x71] sm:$0xff] %vm10490_vm2, %v2171_v48  ;;  %v2377_v43 = vld [vmem:[#allocation2 + $0x41] sm:$0xff]  ;;  %v7501_v59 = vpop.eup %7500 }
 0x22c   : > { %v2172_v35 = vmul.f32 %v7497_v47, %v8680_v39  ;;  %7514 = vpow2.f32 %v2051_v57  ;;  %v2980_v55 = vpack.c.bf16 %v2951_v23, %v3874_v44  ;;  %v8872_v42 = vpack.c.bf16 %v2376_v9, %v2375_v24  ;;  %2206 = vst.msk [vmem:[#allocation2 + $0x89] sm:$0xff] %vm10490_vm2, %v2174_v54  ;;  %v7503_v4 = vpop.eup %7502  ;;  %v8887_v24 = vld [vmem:[#allocation2 + $0x4a] sm:$0xff] }
 0x22d   : > { %vm8860_vm8 = vcmp.le.s32.totalorder %v10612_v20, 14  ;;  %vm8866_vm9 = vcmp.le.s32.totalorder %v10616_v33, 14  ;;  %v6505_v20 = vpop.f32.mrb[92].mxu0  ;;  %v2085_v13 = vadd.f32 1.0, %v7499_v62  ;;  %7516 = vpow2.f32 %v2047_v11  ;;  %v7505_v47 = vpop.eup %7504 }
 0x22e   : > { %v10614_v37 = vsel %vm8860_vm8, 4294967295, %v10613_v37  ;;  %v10618_v3 = vsel %vm8866_vm9, 4294967295, %v10617_v3  ;;  %10620 = vst [vmem:[#allocation80_spill] sm:$0xff] %v8872_v42  ;;  %v2049_v18 = vmul.f32 1.442695, %v1992_v52  ;;  %v8875_v33 = vpack.c.bf16 %v2378_v21, %v2377_v43  ;;  %v1952_v5 = vpop.f32.mrb[93].mxu0  ;;  %6581 = vmatprep.mubr.msk.bf16.mxu1 %vm10490_vm2, %v2980_v55  ;;  %6514 = vmatmul.mubr.msk.bf16.gmra.mrb[100].mxu0 %vm10490_vm2, %v8872_v42 }
 0x22f   : > { %10615 = vst [vmem:[#allocation78_spill] sm:$0xff] %v10614_v37  ;;  %10619 = vst [vmem:[#allocation79_spill] sm:$0xff] %v10618_v3  ;;  %v2083_v48 = vadd.f32 1.0, %v7501_v59  ;;  %7518 = vpow2.f32 %v2053_v40  ;;  %v2953_v39 = vsel %vm8789_vm6, %v8805_v60, 0.0  ;;  %v8885_v44 = vadd.f32 %v6505_v20, %v8592_v58  ;;  %v6506_v21 = vpop.f32.mrb[94].mxu0  ;;  %v7507_v62 = vpop.eup %7506  ;;  %v8915_v59 = vld [vmem:[#allocation2 + $0x42] sm:$0xff] }
 0x230   : > { %10621 = vst [vmem:[#allocation81_spill] sm:$0xff] %v8875_v33  ;;  %2204 = vst.msk [vmem:[#allocation2 + $0x79] sm:$0xff] %vm10490_vm2, %v2172_v35  ;;  %7520 = vrcp.f32 %v2085_v13  ;;  %v2086_v9 = vadd.f32 1.0, %v7503_v4  ;;  %6517 = vmatprep.mubr.msk.bf16.mxu0 %vm10490_vm2, %v8875_v33  ;;  %v2981_v57 = vpack.c.bf16 %v2953_v39, %v8803_v31  ;;  %v8893_v11 = vadd.f32 %v8592_v58, %v1952_v5  ;;  %v1955_v54 = vpop.f32.mrb[95].mxu0  ;;  %v7509_v35 = vpop.eup %7508  ;;  %v2380_v13 = vld [vmem:[#allocation2 + $0x59] sm:$0xff] }
 0x231   : > { %v10622_v60 = vand.u32 15, %v8684_v8  ;;  %v10623_v40 = vmov 0  ;;  %7522 = vrcp.f32 %v2083_v48  ;;  %v2084_v52 = vadd.f32 1.0, %v7505_v47  ;;  %v2382_v47 = vld [vmem:[#allocation2 + $0x69] sm:$0xff] }
 0x232   : > { %v1997_v23 = vsub.f32 0.0, %v8885_v44  ;;  %v8903_v4 = vadd.f32 %v6506_v21, %v8592_v58  ;;  %7524 = vrcp.f32 %v2086_v9  ;;  %6582 = vmatmul.mubr.msk.bf16.gmra.mrb[4].mxu1 %vm10490_vm2, %v2981_v57  ;;  %v1995_v5 = vsub.f32 0.0, %v8893_v11  ;;  %v7511_v48 = vpop.eup %7510  ;;  %v8919_v9 = vld [vmem:[#allocation2 + $0x5a] sm:$0xff]  ;;  %v8921_v57 = vld [vmem:[#allocation2 + $0x6a] sm:$0xff] }
 0x233   : > { %vm8897_vm10 = vcmp.le.s32.totalorder %v10622_v60, 14  ;;  %v8908_v31 = vadd.f32 %v8592_v58, %v1955_v54  ;;  %v2955_v8 = vsel %vm8831_vm7, %v8887_v24, 0.0  ;;  %v2177_v55 = vmul.f32 %v7507_v62, %v8705_v50  ;;  %v7513_v50 = vpop.eup %7512 }
 0x234   : > { %v10624_v40 = vsel %vm8897_vm10, 4294967295, %v10623_v40  ;;  %7526 = vrcp.f32 %v2084_v52  ;;  %v2059_v43 = vmul.f32 1.442695, %v1997_v23  ;;  %v1998_v20 = vsub.f32 0.0, %v8903_v4  ;;  %v2379_v23 = vld [vmem:[#allocation2 + $0x51] sm:$0xff] }
 0x235   : > { %10625 = vst [vmem:[#allocation82_spill] sm:$0xff] %v10624_v40  ;;  %v2175_v39 = vmul.f32 %v7509_v35, %v8710_v36  ;;  %7528 = vpow2.f32 %v2049_v18  ;;  %v2055_v58 = vmul.f32 1.442695, %v1995_v5  ;;  %v1996_v21 = vsub.f32 0.0, %v8908_v31  ;;  %2209 = vst.msk [vmem:[#allocation2 + $0xa1] sm:$0xff] %vm10490_vm2, %v2177_v55  ;;  %v8926_v36 = vld [vmem:[#allocation2 + $0x52] sm:$0xff] }
 0x236   : > { %v2178_v54 = vmul.f32 %v7511_v48, %v8716_v19  ;;  %7530 = vpow2.f32 %v2059_v43  ;;  %v2061_v60 = vmul.f32 1.442695, %v1998_v20  ;;  %v2982_v52 = vpack.c.bf16 %v2955_v8, %v8915_v59  ;;  %v2381_v35 = vld [vmem:[#allocation2 + $0x61] sm:$0xff]  ;;  %v7515_v30 = vpop.eup %7514 }
 0x237   : > { %2207 = vst.msk [vmem:[#allocation2 + $0x91] sm:$0xff] %vm10490_vm2, %v2175_v39  ;;  %v2176_v18 = vmul.f32 %v7513_v50, %v8720_v34  ;;  %7532 = vpow2.f32 %v2055_v58  ;;  %v2057_v62 = vmul.f32 1.442695, %v1996_v21  ;;  %v8930_v5 = vpack.c.bf16 %v2380_v13, %v2379_v23  ;;  %v8939_v55 = vld [vmem:[#allocation2 + $0x62] sm:$0xff]  ;;  %v7517_v43 = vpop.eup %7516  ;;  %v8949_v39 = vld [vmem:[#allocation2 + $0x7a] sm:$0xff] }
 0x238   : > { %2210 = vst.msk [vmem:[#allocation2 + $0xa9] sm:$0xff] %vm10490_vm2, %v2178_v54  ;;  %7534 = vpow2.f32 %v2061_v60  ;;  %6585 = vmatprep.mubr.msk.bf16.mxu1 %vm10490_vm2, %v2982_v52  ;;  %v8934_v19 = vpack.c.bf16 %v2382_v47, %v2381_v35  ;;  %v2957_v8 = vsel %vm8860_vm8, %v8919_v9, 0.0  ;;  %v2959_v34 = vsel %vm8866_vm9, %v8921_v57, 0.0  ;;  %v2384_v47 = vld [vmem:[#allocation2 + $0x79] sm:$0xff] }
 0x239   : > { %10626 = vst [vmem:[#allocation83_spill] sm:$0xff] %v8930_v5  ;;  %2208 = vst.msk [vmem:[#allocation2 + $0x99] sm:$0xff] %vm10490_vm2, %v2176_v18  ;;  %v2089_v20 = vadd.f32 1.0, %v7515_v30  ;;  %7536 = vpow2.f32 %v2057_v62  ;;  %6518 = vmatmul.mubr.msk.bf16.gmra.mrb[104].mxu0 %vm10490_vm2, %v8930_v5  ;;  %v2983_v13 = vpack.c.bf16 %v2957_v8, %v8926_v36  ;;  %v2984_v48 = vpack.c.bf16 %v2959_v34, %v8939_v55  ;;  %v7519_v58 = vpop.eup %7518  ;;  %v2383_v18 = vld [vmem:[#allocation2 + $0x71] sm:$0xff]  ;;  %v9351_v40 = vld [vmem:[#allocation2 + $0x80] sm:$0xff] }
 0x23a   : > { %10627 = vst [vmem:[#allocation84_spill] sm:$0xff] %v8934_v19  ;;  %v2087_v21 = vadd.f32 1.0, %v7517_v43  ;;  %6521 = vmatprep.mubr.msk.bf16.mxu0 %vm10490_vm2, %v8934_v19  ;;  %v7521_v50 = vpop.eup %7520  ;;  %v2090_v54 = vadd.f32 1.0, %v7519_v58  ;;  %v10628_v30 = vand.u32 15, %v8694_v63  ;;  %v10629_v60 = vmov 0  ;;  %v8962_v62 = vld [vmem:[#allocation2 + $0x72] sm:$0xff] }
 0x23b   : > { %7538 = vrcp.f32 %v2089_v20  ;;  %6586 = vmatmul.mubr.msk.bf16.gmra.mrb[8].mxu1 %vm10490_vm2, %v2983_v13  ;;  %v7523_v52 = vpop.eup %7522  ;;  %v2181_v23 = vmul.f32 %v7521_v50, %v8743_v49  ;;  %v2961_v35 = vsel %vm8897_vm10, %v8949_v39, 0.0  ;;  %v1389_v8 = vadd.s32 168, %v8626_v16  ;;  %v2386_v20 = vld [vmem:[#allocation2 + $0x89] sm:$0xff] }
 0x23c   : > { %vm8956_vm11 = vcmp.le.s32.totalorder %v10628_v30, 14  ;;  %7540 = vrcp.f32 %v2087_v21  ;;  %6589 = vmatprep.mubr.msk.bf16.mxu1 %vm10490_vm2, %v2984_v48  ;;  %v7525_v63 = vpop.eup %7524  ;;  %v2179_v34 = vmul.f32 %v7523_v52, %v8749_v27  ;;  %v8969_v43 = vpack.c.bf16 %v2384_v47, %v2383_v18  ;;  %v8980_v30 = vld [vmem:[#allocation2 + $0x82] sm:$0xff] }
 0x23d   : > { %v10630_v60 = vsel %vm8956_vm11, 4294967295, %v10629_v60  ;;  %7542 = vrcp.f32 %v2090_v54  ;;  %v1537_v49 = vand.u32 15, %v8735_v41  ;;  %2213 = vst.msk [vmem:[#allocation2 + $0xc1] sm:$0xff] %vm10490_vm2, %v2181_v23  ;;  %v2182_v48 = vmul.f32 %v7525_v63, %v8756_v12  ;;  %v2385_v54 = vld [vmem:[#allocation2 + $0x81] sm:$0xff] }
 0x23e   : > { %10631 = vst [vmem:[#allocation85_spill] sm:$0xff] %v10630_v60  ;;  %10632 = vst [vmem:[#allocation86_spill] sm:$0xff] %v8969_v43  ;;  %v7527_v13 = vpop.eup %7526  ;;  %v8974_v58 = vld [vmem:[#allocation2 + $0x8a] sm:$0xff]  ;;  %v2985_v47 = vpack.c.bf16 %v2961_v35, %v8962_v62  ;;  %v8986_v12 = vadd.s32 16, %v8626_v16  ;;  %v8989_v18 = vpack.c.bf16 %v2386_v20, %v2385_v54  ;;  %v1551_v63 = vand.u32 15, %v1389_v8  ;;  %v9318_v60 = vld [vmem:[#allocation2 + $0x40] sm:$0xff] }
 0x23f   : > { %v7529_v50 = vpop.eup %7528  ;;  %2211 = vst.msk [vmem:[#allocation2 + $0xb1] sm:$0xff] %vm10490_vm2, %v2179_v34  ;;  %v2180_v27 = vmul.f32 %v7527_v13, %v8761_v53  ;;  %v2963_v41 = vsel %vm8956_vm11, %v8974_v58, 0.0  ;;  %2214 = vst.msk [vmem:[#allocation2 + $0xc9] sm:$0xff] %vm10490_vm2, %v2182_v48  ;;  %vm8995_vm12 = vcmp.le.s32.totalorder %v1537_v49, 14  ;;  %v10634_v13 = vmov 0  ;;  %v2390_v33 = vld [vmem:[#allocation2 + $0xa9] sm:$0xff] }
 0x240   : > { %v7531_v52 = vpop.eup %7530  ;;  %v2088_v23 = vadd.f32 1.0, %v7529_v50  ;;  %10633 = vst [vmem:[#allocation87_spill] sm:$0xff] %v8989_v18  ;;  %v2986_v53 = vpack.c.bf16 %v2963_v41, %v8980_v30  ;;  %v10635_v13 = vsel %vm8995_vm12, 4294967295, %v10634_v13  ;;  %v8999_v21 = vld [vmem:[#allocation2 + $0x9a] sm:$0xff]  ;;  %v1391_v48 = vadd.s32 184, %v8626_v16  ;;  %v9021_v19 = vld [vmem:[#allocation2 + $0x92] sm:$0xff] }
 0x241   : > { %v7533_v34 = vpop.eup %7532  ;;  %2212 = vst.msk [vmem:[#allocation2 + $0xb9] sm:$0xff] %vm10490_vm2, %v2180_v27  ;;  %v2093_v35 = vadd.f32 1.0, %v7531_v52  ;;  %6522 = vmatmul.mubr.msk.bf16.gmra.mrb[108].mxu0 %vm10490_vm2, %v8969_v43  ;;  %10636 = vst [vmem:[#allocation88_spill] sm:$0xff] %v10635_v13  ;;  %v9003_v20 = vadd.s32 32, %v8626_v16  ;;  %v2388_v27 = vld [vmem:[#allocation2 + $0x99] sm:$0xff]  ;;  %v9008_v54 = vadd.s32 48, %v8626_v16 }
 0x242   : > { %v7535_v50 = vpop.eup %7534  ;;  %7544 = vrcp.f32 %v2088_v23  ;;  %v2091_v8 = vadd.f32 1.0, %v7533_v34  ;;  %6525 = vmatprep.mubr.msk.bf16.mxu0 %vm10490_vm2, %v8989_v18  ;;  %v9011_v49 = vadd.s32 64, %v8626_v16  ;;  %v9015_v43 = vadd.s32 80, %v8626_v16  ;;  %v2387_v18 = vld [vmem:[#allocation2 + $0x91] sm:$0xff]  ;;  %v9316_v13 = vld [vmem:[#allocation2 + $0x28] sm:$0xff] }
 0x243   : > { %v7537_v41 = vpop.eup %7536  ;;  %7546 = vrcp.f32 %v2093_v35  ;;  %v2094_v52 = vadd.f32 1.0, %v7535_v50  ;;  %6590 = vmatmul.mubr.msk.bf16.gmra.mrb[12].mxu1 %vm10490_vm2, %v2985_v47  ;;  %v9018_v23 = vadd.s32 96, %v8626_v16  ;;  %v2965_v35 = vsel %vm8995_vm12, %v8999_v21, 0.0 }
 0x244   : > { %7548 = vrcp.f32 %v2091_v8  ;;  %v2092_v34 = vadd.f32 1.0, %v7537_v41  ;;  %6593 = vmatprep.mubr.msk.bf16.mxu1 %vm10490_vm2, %v2986_v53  ;;  %vm9026_vm13 = vcmp.le.s32.totalorder %v1551_v63, 14  ;;  %v10637_v50 = vmov 0 }
 0x245   : > { %v10638_v50 = vsel %vm9026_vm13, 4294967295, %v10637_v50  ;;  %v7539_v47 = vpop.eup %7538  ;;  %7550 = vrcp.f32 %v2094_v52  ;;  %v9030_v5 = vpack.c.bf16 %v2388_v27, %v2387_v18  ;;  %v1565_v8 = vand.u32 15, %v1391_v48  ;;  %v2389_v18 = vld [vmem:[#allocation2 + $0xa1] sm:$0xff] }
 0x246   : > { %10639 = vst [vmem:[#allocation89_spill] sm:$0xff] %v10638_v50  ;;  %v9033_v41 = vadd.s32 112, %v8626_v16  ;;  %v7541_v53 = vpop.eup %7540  ;;  %v2185_v42 = vmul.f32 %v7539_v47, %v8824_v1  ;;  %7552 = vrcp.f32 %v2092_v34  ;;  %v9036_v14 = vld [vmem:[#allocation2 + $0xaa] sm:$0xff]  ;;  %v1393_v63 = vadd.s32 200, %v8626_v16  ;;  %v9042_v48 = vld [vmem:[#allocation2 + $0xa2] sm:$0xff] }
 0x247   : > { %10640 = vst [vmem:[#allocation90_spill] sm:$0xff] %v9030_v5  ;;  %v1395_v17 = vadd.s32 216, %v8626_v16  ;;  %v7543_v25 = vpop.eup %7542  ;;  %v2183_v52 = vmul.f32 %v7541_v53, %v8827_v0  ;;  %v2987_v27 = vpack.c.bf16 %v2965_v35, %v9021_v19  ;;  %v2967_v28 = vsel %vm9026_vm13, %v9036_v14, 0.0  ;;  %v2394_v26 = vld [vmem:[#allocation2 + $0xc9] sm:$0xff] }
 0x248   : > { %v1397_v1 = vadd.s32 232, %v8626_v16  ;;  %2217 = vst.msk [vmem:[#allocation2 + $0xe1] sm:$0xff] %vm10490_vm2, %v2185_v42  ;;  %v2186_v34 = vmul.f32 %v7543_v25, %v8840_v61  ;;  %v9050_v47 = vpack.c.bf16 %v2390_v33, %v2389_v18  ;;  %v2988_v32 = vpack.c.bf16 %v2967_v28, %v9042_v48  ;;  %v9061_v53 = vld [vmem:[#allocation2 + $0xba] sm:$0xff]  ;;  %v9369_v2 = vld [vmem:[#allocation2 + $0xb0] sm:$0xff] }
 0x249   : > { %v1399_v0 = vadd.s32 248, %v8626_v16  ;;  %2215 = vst.msk [vmem:[#allocation2 + $0xd1] sm:$0xff] %vm10490_vm2, %v2183_v52  ;;  %6526 = vmatmul.mubr.msk.bf16.gmra.mrb[112].mxu0 %vm10490_vm2, %v9030_v5  ;;  %vm9057_vm14 = vcmp.le.s32.totalorder %v1565_v8, 14  ;;  %v10642_v35 = vmov 0  ;;  %v1418_v42 = vand.u32 15, %v8986_v12  ;;  %v2392_v28 = vld [vmem:[#allocation2 + $0xb9] sm:$0xff] }
 0x24a   : > { %10641 = vst [vmem:[#allocation91_spill] sm:$0xff] %v9050_v47  ;;  %v10643_v35 = vsel %vm9057_vm14, 4294967295, %v10642_v35  ;;  %2218 = vst.msk [vmem:[#allocation2 + $0xe9] sm:$0xff] %vm10490_vm2, %v2186_v34  ;;  %6529 = vmatprep.mubr.msk.bf16.mxu0 %vm10490_vm2, %v9050_v47  ;;  %v1579_v33 = vand.u32 15, %v1393_v63  ;;  %v1593_v52 = vand.u32 15, %v1395_v17  ;;  %v9071_v18 = vadd.s32 128, %v8626_v16 }
 0x24b   : > { %10644 = vst [vmem:[#allocation92_spill] sm:$0xff] %v10643_v35  ;;  %6594 = vmatmul.mubr.msk.bf16.gmra.mrb[16].mxu1 %vm10490_vm2, %v2987_v27  ;;  %v9077_v61 = vadd.s32 144, %v8626_v16  ;;  %v9080_v34 = vadd.s32 160, %v8626_v16  ;;  %v2391_v17 = vld [vmem:[#allocation2 + $0xb1] sm:$0xff]  ;;  %v2969_v27 = vsel %vm9057_vm14, %v9061_v53, 0.0  ;;  %v1607_v8 = vand.u32 15, %v1397_v1 }
 0x24c   : > { %v7545_v47 = vpop.eup %7544  ;;  %6597 = vmatprep.mubr.msk.bf16.mxu1 %vm10490_vm2, %v2988_v32  ;;  %v9083_v63 = vld [vmem:[#allocation2 + $0xb2] sm:$0xff]  ;;  %v1621_v12 = vand.u32 15, %v1399_v0  ;;  %v9090_v10 = vpack.c.bf16 %v2392_v28, %v2391_v17  ;;  %v9096_v32 = vadd.s32 192, %v8626_v16  ;;  %vm9099_vm15 = vcmp.le.s32.totalorder %v1579_v33, 14 }
 0x24d   : > { %v7547_v5 = vpop.eup %7546  ;;  %v2184_v6 = vmul.f32 %v7545_v47, %v8848_v46  ;;  %v10645_v1 = vmov 0  ;;  %vm9103_vm0 = vcmp.le.s32.totalorder %v1593_v52, 14  ;;  %v10648_v0 = vmov 0 }
 0x24e   : > { %v7549_v51 = vpop.eup %7548  ;;  %v2189_v22 = vmul.f32 %v7547_v5, %v8885_v44  ;;  %v10646_v1 = vsel %vm9099_vm15, 4294967295, %v10645_v1  ;;  %v10649_v0 = vsel %vm9103_vm0, 4294967295, %v10648_v0  ;;  %v10651_v46 = vand.u32 15, %v8626_v16  ;;  %v2393_v5 = vld [vmem:[#allocation2 + $0xc1] sm:$0xff] }
 0x24f   : > { %10647 = vst [vmem:[#allocation93_spill] sm:$0xff] %v10646_v1  ;;  %10650 = vst [vmem:[#allocation94_spill] sm:$0xff] %v10649_v0  ;;  %v7551_v17 = vpop.eup %7550  ;;  %v2187_v44 = vmul.f32 %v7549_v51, %v8893_v11  ;;  %v2989_v33 = vpack.c.bf16 %v2969_v27, %v9083_v63  ;;  %v1530_v52 = vand.u32 15, %v9077_v61  ;;  %v1544_v25 = vand.u32 15, %v9080_v34  ;;  %v9302_v1 = vld [vmem:[#allocation2 + $0x38] sm:$0xff] }
 0x250   : > { %vm9109_vm1 = vcmp.ge.s32.totalorder %v10651_v46, 1  ;;  %2216 = vst.msk [vmem:[#allocation2 + $0xd9] sm:$0xff] %vm10490_vm2, %v2184_v6  ;;  %v7553_v7 = vpop.eup %7552  ;;  %2221 = vst.msk [vmem:[#allocation2 + $0x101] sm:$0xff] %vm10490_vm2, %v2189_v22  ;;  %v2190_v46 = vmul.f32 %v7551_v17, %v8903_v4  ;;  %v9121_v29 = vpack.c.bf16 %v2394_v26, %v2393_v5  ;;  %v2875_v28 = vld [vmem:[#allocation2 + $0xca] sm:$0xff]  ;;  %vm9123_vm4 = vcmp.le.s32.totalorder %v1607_v8, 14  ;;  %v2874_v22 = vld [vmem:[#allocation2 + $0xc2] sm:$0xff] }
 0x251   : > { %vm9127_vm5 = vcmp.le.s32.totalorder %v1621_v12, 14  ;;  %v10656_v51 = vmov 0  ;;  %2219 = vst.msk [vmem:[#allocation2 + $0xf1] sm:$0xff] %vm10490_vm2, %v2187_v44  ;;  %v2188_v6 = vmul.f32 %v7553_v7, %v8908_v31  ;;  %6530 = vmatmul.mubr.msk.bf16.gmra.mrb[116].mxu0 %vm10490_vm2, %v9090_v10  ;;  %v2971_v26 = vsel %vm9099_vm15, %v2875_v28, 0.0  ;;  %v9277_v4 = vld [vmem:[#allocation2 + $0x20] sm:$0xff]  ;;  %v9508_v12 = vld [vmem:[%s10401_s7 + $0x28] sm:$0xff]  }
 0x252   : > { %v10657_v51 = vsel %vm9127_vm5, 4294967295, %v10656_v51  ;;  %2222 = vst.msk [vmem:[#allocation2 + $0x109] sm:$0xff] %vm10490_vm2, %v2190_v46  ;;  %6533 = vmatprep.mubr.msk.bf16.mxu0 %vm10490_vm2, %v9121_v29  ;;  %v2990_v8 = vpack.c.bf16 %v2971_v26, %v2874_v22  ;;  %vm9142_vm3 = vcmp.ge.s32.totalorder %v1418_v42, 1  ;;  %v9147_v7 = vadd.s32 208, %v8626_v16  ;;  %v2395_v46 = vld [vmem:[#allocation2 + $0xd1] sm:$0xff] }
 0x253   : > { %10658 = vst [vmem:[#allocation95_spill] sm:$0xff] %v10657_v51  ;;  %v9150_v31 = vadd.s32 224, %v8626_v16  ;;  %v3911_v27 = vsel %vm8789_vm6, %v8887_v24, 0.0  ;;  %2220 = vst.msk [vmem:[#allocation2 + $0xf9] sm:$0xff] %vm10490_vm2, %v2188_v6  ;;  %6598 = vmatmul.mubr.msk.bf16.gmra.mrb[20].mxu1 %vm10490_vm2, %v2989_v33  ;;  %v3913_v42 = vsel %vm8831_vm7, %v8919_v9, 0.0  ;;  %v3915_v44 = vsel %vm8860_vm8, %v8921_v57, 0.0 }
 0x254   : > { %v9158_v17 = vpack.c.bf16 %v3911_v27, %v8915_v59  ;;  %v3917_v5 = vsel %vm8866_vm9, %v8949_v39, 0.0  ;;  %6601 = vmatprep.mubr.msk.bf16.mxu1 %vm10490_vm2, %v2990_v8  ;;  %v9170_v24 = vld [vmem:[#allocation2] sm:$0xff]  ;;  %v9173_v33 = vpack.c.bf16 %v3913_v42, %v8926_v36  ;;  %v9176_v59 = vpack.c.bf16 %v3915_v44, %v8939_v55  ;;  %v2398_v6 = vld [vmem:[#allocation2 + $0xe9] sm:$0xff]  ;;  %v9383_v51 = vld [vmem:[#allocation2 + $0xb8] sm:$0xff] }
 0x255   : > { %v9179_v9 = vpack.c.bf16 %v3917_v5, %v8962_v62  ;;  %v3919_v57 = vsel %vm8897_vm10, %v8974_v58, 0.0  ;;  %v9184_v39 = vld [vmem:[#allocation2 + $0x10] sm:$0xff]  ;;  %v3921_v36 = vsel %vm8956_vm11, %v8999_v21, 0.0  ;;  %v3923_v55 = vsel %vm8995_vm12, %v9036_v14, 0.0 }
 0x256   : > { %10661 = vst [vmem:[#allocation96_spill] sm:$0xff] %v9173_v33  ;;  %10662 = vst [vmem:[#allocation97_spill] sm:$0xff] %v9176_v59  ;;  %v9187_v26 = vpack.c.bf16 %v3919_v57, %v8980_v30  ;;  %v3925_v62 = vsel %vm9026_vm13, %v9061_v53, 0.0  ;;  %v10665_v42 = vand.u32 15, %v9003_v20  ;;  %v10668_v44 = vand.u32 15, %v9008_v54  ;;  %v10736_v30 = vld [vmem:[#allocation53_spill] sm:$0xff] }
 0x257   : > { %10663 = vst [vmem:[#allocation98_spill] sm:$0xff] %v9179_v9  ;;  %v2396_v58 = vld [vmem:[#allocation2 + $0xd9] sm:$0xff]  ;;  %v9211_v14 = vpack.c.bf16 %v3921_v36, %v9021_v19  ;;  %v9214_v53 = vpack.c.bf16 %v3923_v55, %v9042_v48  ;;  %v9217_v5 = vpack.c.bf16 %v3925_v62, %v9083_v63  ;;  %v3927_v20 = vsel %vm9057_vm14, %v2875_v28, 0.0 }
 0x258   : > { %10664 = vst [vmem:[#allocation99_spill] sm:$0xff] %v9187_v26  ;;  %v2876_v8 = vld [vmem:[#allocation2 + $0xd2] sm:$0xff]  ;;  %v2877_v27 = vld [vmem:[#allocation2 + $0xda] sm:$0xff]  ;;  %vm9200_vm2 = vcmp.ge.s32.totalorder %v10665_v42, 1  ;;  %vm9206_vm11 = vcmp.ge.s32.totalorder %v10668_v44, 1  ;;  %v9221_v57 = vpack.c.bf16 %v2396_v58, %v2395_v46  ;;  %v10674_v44 = vand.u32 15, %v9011_v49 }
 0x259   : > { %10671 = vst [vmem:[#allocation100_spill] sm:$0xff] %v9211_v14  ;;  %10672 = vst [vmem:[#allocation101_spill] sm:$0xff] %v9214_v53  ;;  %v2397_v42 = vld [vmem:[#allocation2 + $0xe1] sm:$0xff]  ;;  %v2973_v54 = vsel %vm9103_vm0, %v2877_v27, 0.0  ;;  %v10677_v48 = vand.u32 15, %v9015_v43  ;;  %v9237_v36 = vpack.c.bf16 %v3927_v20, %v2874_v22  ;;  %v3929_v28 = vsel %vm9099_vm15, %v2877_v27, 0.0 }
 0x25a   : > { %10673 = vst [vmem:[#allocation102_spill] sm:$0xff] %v9217_v5  ;;  %vm9227_vm13 = vcmp.ge.s32.totalorder %v10674_v44, 1  ;;  %v9241_v46 = vpack.c.bf16 %v2398_v6, %v2397_v42  ;;  %v2991_v55 = vpack.c.bf16 %v2973_v54, %v2876_v8  ;;  %v2879_v62 = vld [vmem:[#allocation2 + $0xea] sm:$0xff]  ;;  %v10681_v49 = vand.u32 15, %v9018_v23  ;;  %v2878_v6 = vld [vmem:[#allocation2 + $0xe2] sm:$0xff]  ;;  %v9261_v20 = vld [vmem:[#allocation2 + $0x18] sm:$0xff] }
 0x25b   : > { %vm9233_vm12 = vcmp.ge.s32.totalorder %v10677_v48, 1  ;;  %10680 = vst [vmem:[#allocation103_spill] sm:$0xff] %v9237_v36  ;;  %v10684_v43 = vand.u32 15, %v9033_v41  ;;  %v1586_v22 = vand.u32 15, %v9147_v7  ;;  %v1600_v27 = vand.u32 15, %v9150_v31  ;;  %v2224_v42 = vld [vmem:[#allocation2 + $0x8] sm:$0xff] }
 0x25c   : > { %vm9245_vm14 = vcmp.ge.s32.totalorder %v10681_v49, 1  ;;  %vm10687_vm15 = vcmask 130048   ;;  %v2975_v23 = vsel %vm9123_vm4, %v2879_v62, 0.0  ;;  %v3276_v41 = vsel %vm9109_vm1, %v9184_v39, 0.0  ;;  %v2400_v49 = vld [vmem:[#allocation2 + $0xf9] sm:$0xff]  ;;  %v9422_v53 = vld [vmem:[#allocation2 + $0xa8] sm:$0xff] }
 0x25d   : > { %vm9251_vm10 = vcmp.ge.s32.totalorder %v10684_v43, 1  ;;  %6534 = vmatmul.mubr.msk.bf16.gmra.mrb[120].mxu0 %vm10687_vm15, %v9221_v57  ;;  %v2319_v7 = vsel %vm9109_vm1, %v9170_v24, 0.0  ;;  %v10688_v31 = vand.u32 15, %v9071_v18  ;;  %v2992_v48 = vpack.c.bf16 %v2975_v23, %v2878_v6  ;;  %v2881_v43 = vld [vmem:[#allocation2 + $0xfa] sm:$0xff]  ;;  %v10769_v44 = vld [vmem:[#allocation62_spill] sm:$0xff] }
 0x25e   : > { %6537 = vmatprep.mubr.msk.bf16.mxu0 %vm10687_vm15, %v9241_v46  ;;  %vm9281_vm8 = vcmp.ge.s32.totalorder %v1530_v52, 1  ;;  %v10691_v11 = vmov 0  ;;  %vm9287_vm7 = vcmp.ge.s32.totalorder %v1544_v25, 1  ;;  %v10695_v24 = vand.u32 15, %v9093_v38  ;;  %v9300_v52 = vld [vmem:[#allocation2 + $0x30] sm:$0xff]  ;;  %v9405_v36 = vld [vmem:[#allocation2 + $0xe0] sm:$0xff] }
 0x25f   : > { %vm9271_vm9 = vcmp.ge.s32.totalorder %v10688_v31, 1  ;;  %v10692_v11 = vsel %vm9281_vm8, 4294967295, %v10691_v11  ;;  %vm10698_vm6 = vcmask 130048   ;;  %v2880_v31 = vld [vmem:[#allocation2 + $0xf2] sm:$0xff]  ;;  %v2977_v61 = vsel %vm9127_vm5, %v2881_v43, 0.0  ;;  %v9426_v26 = vld [vmem:[#allocation2 + $0x100] sm:$0xff] }
 0x260   : > { %vm9293_vm15 = vcmp.ge.s32.totalorder %v10695_v24, 1  ;;  %6602 = vmatmul.mubr.msk.bf16.gmra.mrb[24].mxu1 %vm10698_vm6, %v2991_v55  ;;  %v10699_v25 = vand.u32 15, %v9096_v32  ;;  %v10700_v34 = vmov 0  ;;  %v9310_v38 = vpack.c.bf16 %v3929_v28, %v2876_v8  ;;  %v2399_v55 = vld [vmem:[#allocation2 + $0xf1] sm:$0xff]  ;;  %v10758_v58 = vld [vmem:[#allocation57_spill] sm:$0xff] }
 0x261   : > { %v3931_v24 = vsel %vm9103_vm0, %v2879_v62, 0.0  ;;  %6605 = vmatprep.mubr.msk.bf16.mxu1 %vm10698_vm6, %v2992_v48  ;;  %v3308_v35 = vpack.c.bf16 %v9261_v20, %v3276_v41  ;;  %v2351_v50 = vpack.c.bf16 %v2224_v42, %v2319_v7  ;;  %v9320_v32 = vld [vmem:[#allocation2 + $0x50] sm:$0xff]  ;;  %vm9322_vm5 = vcmp.ge.s32.totalorder %v1586_v22, 1  ;;  %v9335_v41 = vld [vmem:[#allocation2 + $0x48] sm:$0xff]  ;;  %v9337_v42 = vld [vmem:[#allocation2 + $0x58] sm:$0xff] }
 0x262   : > { %vm9306_vm8 = vcmp.ge.s32.totalorder %v10699_v25, 1  ;;  %10702 = vst [vmem:[#allocation104_spill] sm:$0xff] %v9310_v38  ;;  %v10705_v8 = vmov 0  ;;  %v9330_v28 = vpack.c.bf16 %v2400_v49, %v2399_v55  ;;  %v9339_v7 = vld [vmem:[#allocation2 + $0x60] sm:$0xff]  ;;  %v9341_v22 = vld [vmem:[#allocation2 + $0x70] sm:$0xff]  ;;  %v9343_v48 = vpack.c.bf16 %v3931_v24, %v2878_v6  ;;  %v9347_v49 = vld [vmem:[#allocation2 + $0x68] sm:$0xff] }
 0x263   : > { %v10701_v34 = vsel %vm9306_vm8, 4294967295, %v10700_v34  ;;  %vm9326_vm8 = vcmp.ge.s32.totalorder %v1600_v27, 1  ;;  %v3933_v27 = vsel %vm9123_vm4, %v2881_v43, 0.0  ;;  %v2993_v0 = vpack.c.bf16 %v2977_v61, %v2880_v31  ;;  %v9349_v55 = vld [vmem:[#allocation2 + $0x78] sm:$0xff]  ;;  %v9353_v62 = vld [vmem:[#allocation2 + $0x90] sm:$0xff]  ;;  %v9363_v43 = vld [vmem:[#allocation2 + $0x88] sm:$0xff] }
 0x264   : > { %v10706_v8 = vsel %vm9326_vm8, 4294967295, %v10705_v8  ;;  %10707 = vst [vmem:[#allocation105_spill] sm:$0xff] %v9343_v48  ;;  %v9355_v3 = vpack.c.bf16 %v3933_v27, %v2880_v31  ;;  %v4234_v37 = vsel %vm9109_vm1, %v9277_v4, 0.0  ;;  %v4236_v6 = vsel %vm9142_vm3, %v9300_v52, 0.0  ;;  %v9365_v61 = vld [vmem:[#allocation2 + $0x98] sm:$0xff]  ;;  %v9367_v24 = vld [vmem:[#allocation2 + $0xa0] sm:$0xff]  ;;  %vm10713_vm1 = vmmov %vm10698_vm6 }
 0x265   : > { %v9372_v45 = vpack.c.bf16 %v9316_v13, %v4234_v37  ;;  %v9375_v31 = vpack.c.bf16 %v9302_v1, %v4236_v6  ;;  %v4238_v47 = vsel %vm9200_vm2, %v9318_v60, 0.0  ;;  %v4240_v27 = vsel %vm9206_vm11, %v9320_v32, 0.0  ;;  %v9387_v48 = vld [vmem:[#allocation2 + $0xd0] sm:$0xff]  ;;  %6538 = vmatmul.mubr.msk.bf16.gmra.mrb[124].mxu0 %vm10713_vm1, %v9330_v28  ;;  %v9403_v38 = vld [vmem:[#allocation2 + $0xd8] sm:$0xff]  ;;  %vm10716_vm6 = vmmov %vm10713_vm1 }
 0x266   : > { %10708 = vst [vmem:[#allocation106_spill] sm:$0xff] %v9355_v3  ;;  %v9385_v3 = vld [vmem:[#allocation2 + $0xc0] sm:$0xff]  ;;  %v9390_v37 = vpack.c.bf16 %v9335_v41, %v4238_v47  ;;  %v9393_v6 = vpack.c.bf16 %v9337_v42, %v4240_v27  ;;  %v9407_v47 = vld [vmem:[#allocation2 + $0xf0] sm:$0xff]  ;;  %v4248_v5 = vsel %vm9251_vm10, %v9353_v62, 0.0  ;;  %6543 = vmatprep.mubr.msk.bf16.mxu0 %vm10716_vm6, %v2351_v50  ;;  %v9424_v14 = vld [vmem:[#allocation2 + $0xf8] sm:$0xff]  ;;  %vm10719_vm1 = vnez %v10692_v11 }
 0x267   : > { %10709 = vst [vmem:[#allocation107_spill] sm:$0xff] %v9372_v45  ;;  %10710 = vst [vmem:[#allocation108_spill] sm:$0xff] %v9375_v31  ;;  %v4242_v31 = vsel %vm9227_vm13, %v9339_v7, 0.0  ;;  %v4244_v45 = vsel %vm9233_vm12, %v9341_v22, 0.0  ;;  %v4252_v50 = vsel %vm10719_vm1, %v9369_v2, 0.0  ;;  %v10729_v33 = vsel %vm9142_vm3, %v9184_v39, 0.0 }
 0x268   : > { %10711 = vst [vmem:[#allocation109_spill] sm:$0xff] %v9390_v37  ;;  %10712 = vst [vmem:[#allocation110_spill] sm:$0xff] %v9393_v6  ;;  %v9410_v27 = vpack.c.bf16 %v9347_v49, %v4242_v31  ;;  %v9413_v6 = vpack.c.bf16 %v9349_v55, %v4244_v45  ;;  %v4246_v37 = vsel %vm9245_vm14, %v9351_v40, 0.0  ;;  %v9432_v45 = vpack.c.bf16 %v9365_v61, %v4248_v5  ;;  %v10735_v39 = vld [vmem:[#allocation54_spill] sm:$0xff]  ;;  %v10770_v54 = vld [vmem:[#allocation60_spill] sm:$0xff] }
 0x269   : > { %v9429_v31 = vpack.c.bf16 %v9363_v43, %v4246_v37  ;;  %6606 = vmatmul.mubr.msk.bf16.gmra.mrb[28].mxu1 %vm10716_vm6, %v2993_v0  ;;  %v9447_v37 = vpack.c.bf16 %v9383_v51, %v4252_v50  ;;  %v4254_v5 = vsel %vm9287_vm7, %v9385_v3, 0.0  ;;  %vm10722_vm0 = vmmov %vm10716_vm6  ;;  %vm10725_vm6 = vnez %v10701_v34  ;;  %v10781_v18 = vld [vmem:[#allocation61_spill] sm:$0xff]  ;;  %v10794_v34 = vld [vmem:[#allocation64_spill] sm:$0xff] }
 0x26a   : > { %10714 = vst [vmem:[#allocation111_spill] sm:$0xff] %v9410_v27  ;;  %10715 = vst [vmem:[#allocation112_spill] sm:$0xff] %v9413_v6  ;;  %v4250_v6 = vsel %vm9271_vm9, %v9367_v24, 0.0  ;;  %v9441_v27 = vld [vmem:[#allocation2 + $0xc8] sm:$0xff]  ;;  %6611 = vmatprep.mubr.msk.bf16.mxu1 %vm10722_vm0, %v3308_v35  ;;  %v4258_v50 = vsel %vm10725_vm6, %v9405_v36, 0.0  ;;  %v2323_v35 = vsel %vm9200_vm2, %v9277_v4, 0.0 }
 0x26b   : > { %10717 = vst [vmem:[#allocation113_spill] sm:$0xff] %v9429_v31  ;;  %10718 = vst [vmem:[#allocation114_spill] sm:$0xff] %v9432_v45  ;;  %v9444_v9 = vpack.c.bf16 %v9422_v53, %v4250_v6  ;;  %v4256_v45 = vsel %vm9293_vm15, %v9387_v48, 0.0  ;;  %v9456_v31 = vld [vmem:[#allocation2 + $0xe8] sm:$0xff]  ;;  %v9459_v0 = vpack.c.bf16 %v9441_v27, %v4254_v5  ;;  %v1398_v23 = vadd.s32 240, %v8626_v16 }
 0x26c   : > { %10721 = vst [vmem:[#allocation116_spill] sm:$0xff] %v9447_v37  ;;  %v9462_v6 = vpack.c.bf16 %v9403_v38, %v4256_v45  ;;  %v4260_v37 = vsel %vm9322_vm5, %v9407_v47, 0.0  ;;  %v9476_v5 = vpack.c.bf16 %v9456_v31, %v4258_v50  ;;  %v2352_v50 = vpack.c.bf16 %v9261_v20, %v10729_v33  ;;  %v4537_v25 = vld [vmem:[#allocation2 + $0x49] sm:$0xff] }
 0x26d   : > { %10720 = vst [vmem:[#allocation115_spill] sm:$0xff] %v9444_v9  ;;  %10723 = vst [vmem:[#allocation117_spill] sm:$0xff] %v9459_v0  ;;  %v9473_v9 = vld [vmem:[#allocation2 + $0x108] sm:$0xff]  ;;  %v9479_v45 = vpack.c.bf16 %v9424_v14, %v4260_v37  ;;  %v3278_v0 = vsel %vm9142_vm3, %v9277_v4, 0.0  ;;  %v3280_v37 = vsel %vm9200_vm2, %v9300_v52, 0.0  ;;  %v10737_v20 = vpack.c.bf16 %v10735_v39, %v10736_v30  ;;  %v10748_v39 = vld [vmem:[#allocation56_spill] sm:$0xff] }
 0x26e   : > { %10724 = vst [vmem:[#allocation118_spill] sm:$0xff] %v9462_v6  ;;  %10726 = vst [vmem:[#allocation119_spill] sm:$0xff] %v9476_v5  ;;  %v4262_v6 = vsel %vm9326_vm8, %v9426_v26, 0.0  ;;  %6544 = vmatmul.mubr.msk.bf16.vlgmr.msra.gmra.mrb[96].mxu0 %vm10722_vm0, %v2352_v50  ;;  %v10730_v5 = vld [vmem:[#allocation39_spill] sm:$0xff]  ;;  %v3310_v33 = vpack.c.bf16 %v9302_v1, %v3280_v37  ;;  %v10749_v30 = vpack.c.bf16 %v10747_v56, %v10748_v39 }
 0x26f   : > { %10727 = vst [vmem:[#allocation120_spill] sm:$0xff] %v9479_v45  ;;  %v9488_v59 = vpack.c.bf16 %v9473_v9, %v4262_v6  ;;  %v2353_v45 = vpack.c.bf16 %v9316_v13, %v2323_v35  ;;  %v10731_v4 = vpack.c.bf16 %v8403_v15, %v10730_v5  ;;  %vm10732_vm8 = vmmov %vm10722_vm0  ;;  %v10738_v15 = vld [vmem:[#allocation75_spill] sm:$0xff]  ;;  %v3282_v35 = vsel %vm9206_vm11, %v9318_v60, 0.0  ;;  %v9531_v5 = vld [vmem:[#allocation2 + $0x102] sm:$0xff] }
 0x270   : > { %vm10733_vm3 = vmmov %vm10722_vm0 }
 0x271   : > { %10728 = vst [vmem:[#allocation121_spill] sm:$0xff] %v9488_v59  ;;  %v5512_v6 = vsel %vm10732_vm8, %v10731_v4, 0  ;;  %v3309_v59 = vpack.c.bf16 %v9316_v13, %v3278_v0  ;;  %6547 = vmatprep.mubr.msk.bf16.mxu0 %vm10733_vm3, %v2353_v45  ;;  %vm10734_vm2 = vmmov %vm10722_vm0  ;;  %v2325_v13 = vsel %vm9206_vm11, %v9300_v52, 0.0  ;;  %v2327_v0 = vsel %vm9227_vm13, %v9318_v60, 0.0  ;;  %v10741_v4 = vld [vmem:[#allocation40_spill] sm:$0xff] }
 0x272   : > { %6366 = vmatpush3.bf16.xpose.msra.mxu0 %v5512_v6  ;;  %vm10739_vm8 = vmmov %vm10722_vm0  ;;  %v2354_v45 = vpack.c.bf16 %v9302_v1, %v2325_v13  ;;  %v3284_v52 = vsel %vm9227_vm13, %v9320_v32, 0.0  ;;  %v2355_v50 = vpack.c.bf16 %v9335_v41, %v2327_v0  ;;  %v10742_v6 = vld [vmem:[#allocation38_spill] sm:$0xff]  ;;  %v3288_v0 = vsel %vm9245_vm14, %v9341_v22, 0.0 }
 0x273   : > { %6612 = vmatmul.mubr.msk.bf16.vlgmr.msra.gmra.mrb[0].mxu1 %vm10734_vm2, %v3309_v59  ;;  %7080 = vmatprep.subr.msk.bf16.mxu0 %vm10722_vm0, %v10737_v20  ;;  %v9526_v59 = vld [vmem:[#allocation2 + $0x10a] sm:$0xff]  ;;  %vm10740_vm3 = vmmov %vm10722_vm0  ;;  %v10743_v21 = vpack.c.bf16 %v10741_v4, %v10742_v6  ;;  %v3312_v19 = vpack.c.bf16 %v9337_v42, %v3284_v52  ;;  %v2331_v20 = vsel %vm9245_vm14, %v9339_v7, 0.0  ;;  %v3314_v63 = vpack.c.bf16 %v9349_v55, %v3288_v0 }
 0x274   : > { %6644 = vmatpush3.bf16.msra.mxu1 %v10738_v15  ;;  %6615 = vmatprep.mubr.msk.bf16.mxu1 %vm10739_vm8, %v3310_v33  ;;  %v4891_v37 = vsel %vm9123_vm4, %v9526_v59, 0.0  ;;  %vm10744_vm11 = vmmov %vm10722_vm0  ;;  %v3311_v33 = vpack.c.bf16 %v9335_v41, %v3282_v35  ;;  %v2329_v41 = vsel %vm9233_vm12, %v9320_v32, 0.0  ;;  %v3286_v15 = vsel %vm9233_vm12, %v9339_v7, 0.0  ;;  %v10753_v32 = vld [vmem:[#allocation42_spill] sm:$0xff] }
 0x275   : > { %6677 = vmatprep.subr.bf16.mxu1 %v9508_v12  ;;  %v5515_v60 = vsel %vm10744_vm11, %v10743_v21, 0  ;;  %v9548_v1 = vpack.c.bf16 %v4891_v37, %v9531_v5  ;;  %vm10745_vm13 = vmmov %vm10722_vm0  ;;  %v2356_v13 = vpack.c.bf16 %v9337_v42, %v2329_v41  ;;  %v2357_v35 = vpack.c.bf16 %v9347_v49, %v2331_v20  ;;  %v10759_v42 = vld [vmem:[#allocation55_spill] sm:$0xff] }
 0x276   : > { %6548 = vmatmul.mubr.msk.bf16.gmra.mrb[100].mxu0 %vm10740_vm3, %v2354_v45  ;;  %vm10746_vm2 = vmmov %vm10722_vm0  ;;  %v10752_v45 = vld [vmem:[#allocation44_spill] sm:$0xff]  ;;  %v3313_v37 = vpack.c.bf16 %v9347_v49, %v3286_v15  ;;  %v10760_v7 = vpack.c.bf16 %v10758_v58, %v10759_v42  ;;  %v2333_v4 = vsel %vm9251_vm10, %v9341_v22, 0.0  ;;  %v2335_v49 = vsel %vm9271_vm9, %v9351_v40, 0.0  ;;  %v10765_v22 = vld [vmem:[#allocation41_spill] sm:$0xff] }
 0x277   : > { %6551 = vmatprep.mubr.msk.bf16.mxu0 %vm10745_vm13, %v2355_v50  ;;  %vm10750_vm4 = vmmov %vm10722_vm0  ;;  %v10754_v52 = vpack.c.bf16 %v10752_v45, %v10753_v32  ;;  %v3290_v6 = vsel %vm9251_vm10, %v9351_v40, 0.0  ;;  %v2358_v21 = vpack.c.bf16 %v9349_v55, %v2333_v4  ;;  %v10771_v55 = vpack.c.bf16 %v10769_v44, %v10770_v54 }
 0x278   : > { %vm10751_vm8 = vmmov %vm10722_vm0  ;;  %v2337_v41 = vsel %vm10719_vm1, %v9353_v62, 0.0  ;;  %v3294_v20 = vsel %vm10719_vm1, %v9367_v24, 0.0  ;;  %v3300_v58 = vsel %vm10725_vm6, %v9387_v48, 0.0 }
 0x279   : > { %vm10755_vm3 = vmmov %vm10722_vm0  ;;  %v2360_v15 = vpack.c.bf16 %v9365_v61, %v2337_v41 }
 0x27a   : > { %6368 = vmatpush3.bf16.xpose.msra.mxu0 %v5515_v60  ;;  %v5518_v50 = vsel %vm10755_vm3, %v10754_v52, 0  ;;  %vm10756_vm11 = vmmov %vm10722_vm0  ;;  %v3292_v60 = vsel %vm9271_vm9, %v9353_v62, 0.0  ;;  %v10776_v62 = vld [vmem:[#allocation46_spill] sm:$0xff]  ;;  %v3317_v52 = vpack.c.bf16 %v9422_v53, %v3294_v20  ;;  %v10814_v20 = vld [vmem:[#allocation49_spill] sm:$0xff] }
 0x27b   : > { %6616 = vmatmul.mubr.msk.bf16.gmra.mrb[4].mxu1 %vm10746_vm2, %v3311_v33  ;;  %7081 = vmatprep.subr.msk.bf16.mxu0 %vm10750_vm4, %v10749_v30  ;;  %vm10757_vm12 = vmmov %vm10722_vm0  ;;  %v2359_v33 = vpack.c.bf16 %v9363_v43, %v2335_v49  ;;  %v3315_v30 = vpack.c.bf16 %v9363_v43, %v3290_v6  ;;  %v3316_v40 = vpack.c.bf16 %v9365_v61, %v3292_v60  ;;  %v2339_v43 = vsel %vm9287_vm7, %v9367_v24, 0.0  ;;  %v10782_v61 = vld [vmem:[#allocation59_spill] sm:$0xff] }
 0x27c   : > { %6619 = vmatprep.mubr.msk.bf16.mxu1 %vm10722_vm0, %v3312_v19  ;;  %vm10761_vm14 = vmmov %vm10722_vm0  ;;  %v10764_v19 = vld [vmem:[#allocation43_spill] sm:$0xff]  ;;  %v2361_v0 = vpack.c.bf16 %v9422_v53, %v2339_v43  ;;  %v10783_v24 = vpack.c.bf16 %v10781_v18, %v10782_v61  ;;  %v2343_v53 = vsel %vm10725_vm6, %v9385_v3, 0.0  ;;  %v1614_v60 = vand.u32 15, %v1398_v23  ;;  %v10861_v23 = vld [vmem:[#allocation100_spill] sm:$0xff] }
 0x27d   : > { %vm10762_vm13 = vmmov %vm10722_vm0  ;;  %v10766_v56 = vpack.c.bf16 %v10764_v19, %v10765_v22  ;;  %v2363_v42 = vpack.c.bf16 %v9441_v27, %v2343_v53  ;;  %v10813_v43 = vld [vmem:[#allocation51_spill] sm:$0xff] }
 0x27e   : > { %6552 = vmatmul.mubr.msk.bf16.gmra.mrb[104].mxu0 %vm10751_vm8, %v2356_v13  ;;  %vm10763_vm2 = vmmov %vm10722_vm0  ;;  %v3296_v13 = vsel %vm9287_vm7, %v9369_v2, 0.0  ;;  %v3605_v18 = vld [vmem:[#allocation2 + $0x109] sm:$0xff]  ;;  %v3872_v61 = vld [vmem:[#allocation2 + $0x12] sm:$0xff] }
 0x27f   : > { %6555 = vmatprep.mubr.msk.bf16.mxu0 %vm10756_vm11, %v2357_v35  ;;  %vm10767_vm4 = vmmov %vm10722_vm0  ;;  %v10775_v35 = vld [vmem:[#allocation48_spill] sm:$0xff]  ;;  %v3318_v11 = vpack.c.bf16 %v9383_v51, %v3296_v13  ;;  %v10842_v53 = vld [vmem:[#allocation67_spill] sm:$0xff] }
 0x280   : > { %v5521_v39 = vsel %vm10767_vm4, %v10766_v56, 0  ;;  %vm10768_vm10 = vmmov %vm10722_vm0  ;;  %v10777_v45 = vpack.c.bf16 %v10775_v35, %v10776_v62  ;;  %v10818_v35 = vld [vmem:[#allocation69_spill] sm:$0xff]  ;;  %v10826_v62 = vld [vmem:[#allocation83_spill] sm:$0xff] }
 0x281   : > { %vm10772_vm9 = vmmov %vm10722_vm0 }
 0x282   : > { %6370 = vmatpush3.bf16.xpose.msra.mxu0 %v5518_v50  ;;  %vm10773_vm8 = vmmov %vm10722_vm0  ;;  %v2341_v50 = vsel %vm9293_vm15, %v9369_v2, 0.0  ;;  %v10788_v2 = vld [vmem:[#allocation45_spill] sm:$0xff] }
 0x283   : > { %6620 = vmatmul.mubr.msk.bf16.gmra.mrb[8].mxu1 %vm10757_vm12, %v3313_v37  ;;  %7082 = vmatprep.subr.msk.bf16.mxu0 %vm10761_vm14, %v10760_v7  ;;  %vm10774_vm3 = vmmov %vm10722_vm0  ;;  %v3298_v37 = vsel %vm9293_vm15, %v9385_v3, 0.0  ;;  %v10787_v7 = vld [vmem:[#allocation47_spill] sm:$0xff]  ;;  %v3320_v3 = vpack.c.bf16 %v9403_v38, %v3300_v58  ;;  %v7164_v58 = vld [vmem:[%s10401_s7 + $0x38] sm:$0xff]  }
 0x284   : > { %6623 = vmatprep.mubr.msk.bf16.mxu1 %vm10762_vm13, %v3314_v63  ;;  %vm10778_vm11 = vmmov %vm10722_vm0  ;;  %v2362_v63 = vpack.c.bf16 %v9383_v51, %v2341_v50  ;;  %v10789_v4 = vpack.c.bf16 %v10787_v7, %v10788_v2  ;;  %v3319_v6 = vpack.c.bf16 %v9441_v27, %v3298_v37  ;;  %v10793_v51 = vld [vmem:[#allocation66_spill] sm:$0xff]  ;;  %v2345_v27 = vsel %vm9322_vm5, %v9387_v48, 0.0  ;;  %v10799_v48 = vld [vmem:[#allocation52_spill] sm:$0xff] }
 0x285   : > { %v5524_v32 = vsel %vm10778_vm11, %v10777_v45, 0  ;;  %vm10779_vm12 = vmmov %vm10722_vm0  ;;  %v2364_v19 = vpack.c.bf16 %v9403_v38, %v2345_v27  ;;  %v10807_v38 = vld [vmem:[#allocation65_spill] sm:$0xff]  ;;  %v10827_v45 = vld [vmem:[#allocation84_spill] sm:$0xff] }
 0x286   : > { %6556 = vmatmul.mubr.msk.bf16.gmra.mrb[108].mxu0 %vm10763_vm2, %v2358_v21  ;;  %vm10780_vm1 = vmmov %vm10722_vm0  ;;  %v10795_v21 = vpack.c.bf16 %v10793_v51, %v10794_v34  ;;  %v10850_v7 = vld [vmem:[#allocation74_spill] sm:$0xff]  ;;  %v10853_v2 = vld [vmem:[#allocation96_spill] sm:$0xff] }
 0x287   : > { %6559 = vmatprep.mubr.msk.bf16.mxu0 %vm10722_vm0, %v2359_v33  ;;  %vm10784_vm7 = vmmov %vm10722_vm0  ;;  %v3302_v33 = vsel %vm9322_vm5, %v9405_v36, 0.0  ;;  %v10865_v51 = vld [vmem:[#allocation102_spill] sm:$0xff]  ;;  %v10869_v34 = vld [vmem:[#allocation104_spill] sm:$0xff] }
 0x288   : > { %vm10785_vm14 = vmmov %vm10722_vm0  ;;  %v3321_v44 = vpack.c.bf16 %v9456_v31, %v3302_v33  ;;  %v10873_v27 = vld [vmem:[#allocation106_spill] sm:$0xff] }
 0x289   : > { %vm10786_vm13 = vmmov %vm10722_vm0 }
 0x28a   : > { %6372 = vmatpush3.bf16.xpose.msra.mxu0 %v5521_v39  ;;  %vm10790_vm2 = vmmov %vm10722_vm0  ;;  %v10800_v39 = vld [vmem:[#allocation50_spill] sm:$0xff] }
 0x28b   : > { %6624 = vmatmul.mubr.msk.bf16.gmra.mrb[12].mxu1 %vm10768_vm10, %v3315_v30  ;;  %7083 = vmatprep.subr.msk.bf16.mxu0 %vm10772_vm9, %v10771_v55  ;;  %v5527_v49 = vsel %vm10790_vm2, %v10789_v4, 0  ;;  %vm10791_vm15 = vmmov %vm10722_vm0  ;;  %vm10797_vm10 = vnez %v10706_v8  ;;  %v10801_v30 = vpack.c.bf16 %v10799_v48, %v10800_v39  ;;  %v10808_v8 = vld [vmem:[#allocation63_spill] sm:$0xff]  ;;  %v10855_v4 = vld [vmem:[#allocation97_spill] sm:$0xff] }
 0x28c   : > { %6627 = vmatprep.mubr.msk.bf16.mxu1 %vm10773_vm8, %v3316_v40  ;;  %vm10792_vm4 = vmmov %vm10722_vm0  ;;  %v2347_v16 = vsel %vm10797_vm10, %v9405_v36, 0.0  ;;  %v3304_v22 = vsel %vm10797_vm10, %v9407_v47, 0.0  ;;  %v10809_v54 = vpack.c.bf16 %v10807_v38, %v10808_v8  ;;  %v10880_v48 = vld [vmem:[#allocation108_spill] sm:$0xff]  ;;  %v10882_v39 = vld [vmem:[#allocation109_spill] sm:$0xff] }
 0x28d   : > { %vm10796_vm6 = vmmov %vm10722_vm0  ;;  %v2365_v56 = vpack.c.bf16 %v9456_v31, %v2347_v16  ;;  %v3322_v36 = vpack.c.bf16 %v9424_v14, %v3304_v22  ;;  %v10874_v16 = vmov 0.0   ;;  %v10878_v22 = vld [vmem:[#allocation107_spill] sm:$0xff] }
 0x28e   : > { %6560 = vmatmul.mubr.msk.bf16.gmra.mrb[112].mxu0 %vm10774_vm3, %v2360_v15  ;;  %vm10798_vm9 = vmmov %vm10722_vm0  ;;  %vm9691_vm3 = vcmp.ge.s32.totalorder %v1614_v60, 1  ;;  %v10815_v15 = vpack.c.bf16 %v10813_v43, %v10814_v20  ;;  %v10875_v60 = vld [vmem:[#allocation95_spill] sm:$0xff] }
 0x28f   : > { %6563 = vmatprep.mubr.msk.bf16.mxu0 %vm10779_vm12, %v2361_v0  ;;  %vm10802_vm8 = vmmov %vm10722_vm0  ;;  %v2349_v31 = vsel %vm9691_vm3, %v9407_v47, 0.0  ;;  %v3306_v55 = vsel %vm9691_vm3, %v9426_v26, 0.0  ;;  %v7163_v26 = vld [vmem:[%s10401_s7 + $0x30] sm:$0xff]   ;;  %v10822_v47 = vld [vmem:[#allocation80_spill] sm:$0xff] }
 0x290   : > { %v5530_v40 = vsel %vm10802_vm8, %v10801_v30, 0  ;;  %vm10805_vm5 = vmmov %vm10722_vm0  ;;  %v2366_v41 = vpack.c.bf16 %v9424_v14, %v2349_v31  ;;  %v3323_v0 = vpack.c.bf16 %v9473_v9, %v3306_v55  ;;  %v10820_v14 = vld [vmem:[#allocation72_spill] sm:$0xff]  ;;  %v10824_v9 = vld [vmem:[#allocation81_spill] sm:$0xff] }
 0x291   : > { %vm10806_vm11 = vmmov %vm10722_vm0  ;;  %v10888_v30 = vld [vmem:[#allocation112_spill] sm:$0xff]  ;;  %v10894_v31 = vld [vmem:[#allocation115_spill] sm:$0xff] }
 0x292   : > { %6374 = vmatpush3.bf16.xpose.msra.mxu0 %v5524_v32  ;;  %vm10810_vm12 = vmmov %vm10722_vm0  ;;  %v10829_v32 = vld [vmem:[#allocation86_spill] sm:$0xff] }
 0x293   : > { %6628 = vmatmul.mubr.msk.bf16.gmra.mrb[16].mxu1 %vm10780_vm1, %v3317_v52  ;;  %7084 = vmatprep.subr.msk.bf16.mxu0 %vm10784_vm7, %v10783_v24  ;;  %vm10811_vm1 = vmmov %vm10722_vm0  ;;  %v10831_v52 = vld [vmem:[#allocation87_spill] sm:$0xff]  ;;  %v3604_v24 = vld [vmem:[#allocation2 + $0x101] sm:$0xff] }
 0x294   : > { %6631 = vmatprep.mubr.msk.bf16.mxu1 %vm10785_vm14, %v3318_v11  ;;  %vm10812_vm7 = vmmov %vm10722_vm0  ;;  %v10835_v11 = vld [vmem:[#allocation91_spill] sm:$0xff]  ;;  %v9751_v50 = vpack.c.bf16 %v3605_v18, %v3604_v24  ;;  %v10905_v18 = vld [vmem:[#allocation121_spill] sm:$0xff] }
 0x295   : > { %vm10816_vm14 = vmmov %vm10722_vm0 }
 0x296   : > { %6564 = vmatmul.mubr.msk.bf16.gmra.mrb[116].mxu0 %vm10786_vm13, %v2362_v63  ;;  %v5533_v13 = vsel %vm10816_vm14, %v10815_v15, 0  ;;  %vm10817_vm13 = vmmov %vm10722_vm0  ;;  %v10896_v15 = vld [vmem:[#allocation116_spill] sm:$0xff] }
 0x297   : > { %6567 = vmatprep.mubr.msk.bf16.mxu0 %vm10791_vm15, %v2363_v42  ;;  %vm10819_vm2 = vmmov %vm10722_vm0 }
 0x298   : > { %vm10821_vm15 = vmmov %vm10722_vm0 }
 0x299   : > { %vm10828_vm10 = vmmov %vm10722_vm0 }
 0x29a   : > { %6376 = vmatpush3.bf16.xpose.msra.mxu0 %v5527_v49  ;;  %vm10832_vm8 = vmmov %vm10722_vm0  ;;  %v10857_v49 = vld [vmem:[#allocation98_spill] sm:$0xff] }
 0x29b   : > { %6632 = vmatmul.mubr.msk.bf16.gmra.mrb[20].mxu1 %vm10792_vm4, %v3319_v6  ;;  %7085 = vmatprep.subr.msk.bf16.mxu0 %vm10796_vm6, %v10795_v21  ;;  %vm10823_vm4 = vmmov %vm10722_vm0  ;;  %v10859_v6 = vld [vmem:[#allocation99_spill] sm:$0xff]  ;;  %v10871_v21 = vld [vmem:[#allocation105_spill] sm:$0xff] }
 0x29c   : > { %6635 = vmatprep.mubr.msk.bf16.mxu1 %vm10722_vm0, %v3320_v3  ;;  %vm10825_vm6 = vmmov %vm10722_vm0  ;;  %v10863_v3 = vld [vmem:[#allocation101_spill] sm:$0xff] }
 0x29d   : > { %vm10840_vm14 = vmmov %vm10722_vm0 }
 0x29e   : > { %6568 = vmatmul.mubr.msk.bf16.gmra.mrb[120].mxu0 %vm10798_vm9, %v2364_v19  ;;  %vm10830_vm9 = vmmov %vm10722_vm0 }
 0x29f   : > { %6571 = vmatprep.mubr.msk.bf16.mxu0 %vm10805_vm5, %v2365_v56  ;;  %vm10834_vm5 = vmmov %vm10722_vm0  ;;  %v7165_v56 = vld [vmem:[%s10401_s7 + $0x40] sm:$0xff]  }
 0x2a2   : > { %6378 = vmatpush3.bf16.xpose.msra.mxu0 %v5530_v40  ;;  %v10890_v40 = vld [vmem:[#allocation113_spill] sm:$0xff] }
 0x2a3   : > { %6636 = vmatmul.mubr.msk.bf16.gmra.mrb[24].mxu1 %vm10806_vm11, %v3321_v44  ;;  %7086 = vmatprep.subr.msk.bf16.mxu0 %vm10810_vm12, %v10809_v54  ;;  %vm10836_vm11 = vmmov %vm10722_vm0  ;;  %v10892_v54 = vld [vmem:[#allocation114_spill] sm:$0xff] }
 0x2a4   : > { %6639 = vmatprep.mubr.msk.bf16.mxu1 %vm10811_vm1, %v3322_v36  ;;  %vm10837_vm12 = vmmov %vm10722_vm0 }
 0x2a5   : > { %vm10838_vm1 = vmmov %vm10722_vm0 }
 0x2a6   : > { %6572 = vmatmul.mubr.msk.bf16.gmra.mrb[124].mxu0 %vm10812_vm7, %v2366_v41  ;;  %vm10839_vm7 = vmmov %vm10722_vm0 }
 0x2aa   : > { %6380 = vmatpush3.bf16.xpose.msra.mxu0 %v5533_v13  ;;  %v10897_v13 = vld [vmem:[#allocation117_spill] sm:$0xff] }
 0x2ab   : > { %6640 = vmatmul.mubr.msk.bf16.gmra.mrb[28].mxu1 %vm10817_vm13, %v3323_v0  ;;  %vm10841_vm13 = vmmov %vm10722_vm0 }
 0x2ac   : > { %6645 = vmatprep.mubr.msk.bf16.mxu1 %vm10819_vm2, %v10818_v35  ;;  %vm10843_vm2 = vnez %v10842_v53  ;;  %v4839_v53 = vld [vmem:[#allocation2 + $0x6a] sm:$0xff] }
 0x2b3   : > { %6646 = vmatmul.mubr.msk.bf16.vlgmr.msra.gmra.mrb[0].mxu1 %vm10821_vm15, %v10820_v14  ;;  %vm10846_vm15 = vmmov %vm10722_vm0 }
 0x2b4   : > { %6678 = vmatpush3.bf16.msra.mxu1 %v9508_v12  ;;  %6649 = vmatprep.mubr.msk.bf16.mxu1 %vm10823_vm4, %v10822_v47  ;;  %v10833_v12 = vld [vmem:[#allocation90_spill] sm:$0xff]  ;;  %vm10847_vm4 = vmmov %vm10722_vm0 }
 0x2b5   : > { %6711 = vmatprep.subr.bf16.mxu1 %v7163_v26  ;;  %v10899_v47 = vld [vmem:[#allocation118_spill] sm:$0xff] }
 0x2bb   : > { %6650 = vmatmul.mubr.msk.bf16.gmra.mrb[4].mxu1 %vm10825_vm6, %v10824_v9  ;;  %v10901_v9 = vld [vmem:[#allocation119_spill] sm:$0xff] }
 0x2bc   : > { %6653 = vmatprep.mubr.msk.bf16.mxu1 %vm10722_vm0, %v10826_v62 }
 0x2c3   : > { %6654 = vmatmul.mubr.msk.bf16.gmra.mrb[8].mxu1 %vm10828_vm10, %v10827_v45  ;;  %vm10851_vm10 = vmmov %vm10722_vm0 }
 0x2c4   : > { %6657 = vmatprep.mubr.msk.bf16.mxu1 %vm10830_vm9, %v10829_v32  ;;  %vm10852_vm9 = vmmov %vm10722_vm0 }
 0x2cb   : > { %6658 = vmatmul.mubr.msk.bf16.gmra.mrb[12].mxu1 %vm10832_vm8, %v10831_v52  ;;  %vm10854_vm8 = vmmov %vm10722_vm0 }
 0x2cc   : > { %6661 = vmatprep.mubr.msk.bf16.mxu1 %vm10834_vm5, %v10833_v12  ;;  %vm10856_vm5 = vmmov %vm10722_vm0  ;;  %v10903_v12 = vld [vmem:[#allocation120_spill] sm:$0xff] }
 0x2d3   : > { %6662 = vmatmul.mubr.msk.bf16.gmra.mrb[16].mxu1 %vm10836_vm11, %v10835_v11  ;;  %vm10858_vm11 = vmmov %vm10722_vm0  ;;  %v4232_v11 = vld [vmem:[#allocation2 + $0x110] sm:$0xff] }
 0x2d4   : > { %6665 = vmatprep.mubr.msk.bf16.mxu1 %vm10837_vm12, %v9090_v10  ;;  %v10844_v10 = vld [vmem:[#allocation68_spill] sm:$0xff]  ;;  %vm10860_vm12 = vmmov %vm10722_vm0 }
 0x2d5   : > { %v10845_v37 = vsel %vm10843_vm2, %v10844_v10, 0.0 }
 0x2d6   : > { %v3936_v63 = vpack.c.bf16 %v10845_v37, %v3872_v61  ;;  %v4233_v37 = vld [vmem:[#allocation2 + $0x118] sm:$0xff] }
 0x2db   : > { %6666 = vmatmul.mubr.msk.bf16.gmra.mrb[20].mxu1 %vm10838_vm1, %v9121_v29  ;;  %v3877_v29 = vld [vmem:[#allocation2 + $0x3a] sm:$0xff]  ;;  %vm10862_vm1 = vmmov %vm10722_vm0 }
 0x2dc   : > { %6669 = vmatprep.mubr.msk.bf16.mxu1 %vm10839_vm7, %v9221_v57  ;;  %v3876_v57 = vld [vmem:[#allocation2 + $0x32] sm:$0xff]  ;;  %vm10864_vm7 = vmmov %vm10722_vm0 }
 0x2e3   : > { %6670 = vmatmul.mubr.msk.bf16.gmra.mrb[24].mxu1 %vm10840_vm14, %v9241_v46  ;;  %v10848_v46 = vld [vmem:[#allocation70_spill] sm:$0xff]  ;;  %vm10866_vm14 = vmmov %vm10722_vm0 }
 0x2e4   : > { %6673 = vmatprep.mubr.msk.bf16.mxu1 %vm10841_vm13, %v9330_v28  ;;  %vm10849_vm6 = vnez %v10848_v46  ;;  %vm10868_vm13 = vmmov %vm10722_vm0 }
 0x2e5   : > { %v3909_v28 = vsel %vm10849_vm6, %v3877_v29, 0.0 }
 0x2e6   : > { %v3938_v42 = vpack.c.bf16 %v3909_v28, %v3876_v57  ;;  %v4533_v57 = vld [vmem:[#allocation2 + $0x29] sm:$0xff] }
 0x2eb   : > { %6674 = vmatmul.mubr.msk.bf16.gmra.mrb[28].mxu1 %vm10846_vm15, %v9751_v50  ;;  %vm10870_vm15 = vmmov %vm10722_vm0 }
 0x2ec   : > { %6679 = vmatprep.mubr.msk.bf16.mxu1 %vm10847_vm4, %v3936_v63  ;;  %vm10872_vm4 = vmmov %vm10722_vm0  ;;  %v4264_v63 = vsel %vm9691_vm3, %v4232_v11, 0.0  ;;  %v4549_v11 = vld [vmem:[#allocation2 + $0xa9] sm:$0xff] }
 0x2ed   : > { %v4281_v28 = vpack.c.bf16 %v4233_v37, %v4264_v63  ;;  %vm10909_vm3 = vmmov %vm10722_vm0  ;;  %v4548_v63 = vld [vmem:[#allocation2 + $0xa1] sm:$0xff] }
 0x2f3   : > { %6680 = vmatmul.mubr.msk.bf16.vlgmr.msra.gmra.mrb[0].mxu1 %vm10722_vm0, %v10850_v7 }
 0x2f4   : > { %6712 = vmatpush3.bf16.msra.mxu1 %v7163_v26  ;;  %6683 = vmatprep.mubr.msk.bf16.mxu1 %vm10851_vm10, %v3938_v42  ;;  %vm1725_vm10 = vcmask 123904  }
 0x2f5   : > { %6745 = vmatprep.subr.bf16.mxu1 %v7164_v58  ;;  %1726 = vst.msk [vmem:[#allocation2 + $0x120] sm:$0x3] %vm1725_vm10, %v10874_v16  ;;  %vm10898_vm10 = vmmov %vm10722_vm0  ;;  %v4539_v16 = vld [vmem:[#allocation2 + $0x59] sm:$0xff] }
 0x2fb   : > { %6684 = vmatmul.mubr.msk.bf16.gmra.mrb[4].mxu1 %vm10852_vm9, %v9158_v17  ;;  %v10867_v17 = vld [vmem:[#allocation103_spill] sm:$0xff]  ;;  %vm10876_vm9 = vnez %v10875_v60 }
 0x2fc   : > { %6687 = vmatprep.mubr.msk.bf16.mxu1 %vm10854_vm8, %v10853_v2  ;;  %v3935_v33 = vsel %vm10876_vm9, %v9526_v59, 0.0  ;;  %vm10877_vm8 = vmmov %vm10722_vm0  ;;  %v10884_v59 = vld [vmem:[#allocation110_spill] sm:$0xff] }
 0x2fd   : > { %v3951_v19 = vpack.c.bf16 %v3935_v33, %v9531_v5  ;;  %v10886_v5 = vld [vmem:[#allocation111_spill] sm:$0xff] }
 0x303   : > { %6688 = vmatmul.mubr.msk.bf16.gmra.mrb[8].mxu1 %vm10856_vm5, %v10855_v4  ;;  %vm10879_vm5 = vmmov %vm10722_vm0 }
 0x304   : > { %6691 = vmatprep.mubr.msk.bf16.mxu1 %vm10858_vm11, %v10857_v49  ;;  %vm10881_vm11 = vmmov %vm10722_vm0  ;;  %v4535_v49 = vld [vmem:[#allocation2 + $0x39] sm:$0xff] }
 0x30b   : > { %6692 = vmatmul.mubr.msk.bf16.gmra.mrb[12].mxu1 %vm10860_vm12, %v10859_v6  ;;  %vm10883_vm12 = vmmov %vm10722_vm0 }
 0x30c   : > { %6695 = vmatprep.mubr.msk.bf16.mxu1 %vm10862_vm1, %v10861_v23  ;;  %vm10885_vm1 = vmmov %vm10722_vm0  ;;  %v4534_v23 = vld [vmem:[#allocation2 + $0x31] sm:$0xff] }
 0x313   : > { %6696 = vmatmul.mubr.msk.bf16.gmra.mrb[16].mxu1 %vm10864_vm7, %v10863_v3  ;;  %vm10887_vm7 = vmmov %vm10722_vm0  ;;  %v4565_v3 = vpack.c.bf16 %v4535_v49, %v4534_v23 }
 0x314   : > { %6699 = vmatprep.mubr.msk.bf16.mxu1 %vm10866_vm14, %v10865_v51  ;;  %vm10889_vm14 = vmmov %vm10722_vm0  ;;  %v4536_v51 = vld [vmem:[#allocation2 + $0x41] sm:$0xff] }
 0x31b   : > { %6700 = vmatmul.mubr.msk.bf16.gmra.mrb[20].mxu1 %vm10868_vm13, %v10867_v17  ;;  %vm10891_vm13 = vmmov %vm10722_vm0  ;;  %v4566_v17 = vpack.c.bf16 %v4537_v25, %v4536_v51  ;;  %v4552_v25 = vld [vmem:[#allocation2 + $0xc1] sm:$0xff]  ;;  %v4557_v51 = vld [vmem:[#allocation2 + $0xe9] sm:$0xff] }
 0x31c   : > { %6703 = vmatprep.mubr.msk.bf16.mxu1 %vm10870_vm15, %v10869_v34  ;;  %vm10893_vm15 = vmmov %vm10722_vm0 }
 0x323   : > { %6704 = vmatmul.mubr.msk.bf16.gmra.mrb[24].mxu1 %vm10872_vm4, %v10871_v21  ;;  %vm10895_vm4 = vmmov %vm10722_vm0 }
 0x324   : > { %6707 = vmatprep.mubr.msk.bf16.mxu1 %vm10722_vm0, %v10873_v27 }
 0x32b   : > { %6708 = vmatmul.mubr.msk.bf16.gmra.mrb[28].mxu1 %vm10877_vm8, %v3951_v19  ;;  %vm10900_vm8 = vmmov %vm10722_vm0  ;;  %v4541_v19 = vld [vmem:[#allocation2 + $0x69] sm:$0xff] }
 0x32c   : > { %6713 = vmatprep.mubr.msk.bf16.mxu1 %vm10879_vm5, %v10878_v22  ;;  %vm10902_vm5 = vmmov %vm10722_vm0  ;;  %v4538_v22 = vld [vmem:[#allocation2 + $0x51] sm:$0xff] }
 0x333   : > { %6714 = vmatmul.mubr.msk.bf16.vlgmr.msra.gmra.mrb[0].mxu1 %vm10881_vm11, %v10880_v48  ;;  %vm10904_vm11 = vmmov %vm10722_vm0  ;;  %v4567_v48 = vpack.c.bf16 %v4539_v16, %v4538_v22 }
 0x334   : > { %6746 = vmatpush3.bf16.msra.mxu1 %v7164_v58  ;;  %6717 = vmatprep.mubr.msk.bf16.mxu1 %vm10883_vm12, %v10882_v39  ;;  %vm10906_vm12 = vmmov %vm10722_vm0  ;;  %v4532_v58 = vld [vmem:[#allocation2 + $0x21] sm:$0xff] }
 0x335   : > { %6779 = vmatprep.subr.bf16.mxu1 %v7165_v56  ;;  %v4564_v42 = vpack.c.bf16 %v4533_v57, %v4532_v58  ;;  %v4540_v39 = vld [vmem:[#allocation2 + $0x61] sm:$0xff]  ;;  %v4572_v57 = vpack.c.bf16 %v4549_v11, %v4548_v63  ;;  %v4553_v58 = vld [vmem:[#allocation2 + $0xc9] sm:$0xff] }
 0x336   : > { %v4574_v23 = vpack.c.bf16 %v4553_v58, %v4552_v25  ;;  %v4835_v11 = vld [vmem:[#allocation2 + $0x4a] sm:$0xff]  ;;  %v10929_v58 = vld [vmem:[#allocation73_spill] sm:$0xff] }
 0x33b   : > { %6718 = vmatmul.mubr.msk.bf16.gmra.mrb[4].mxu1 %vm10885_vm1, %v10884_v59  ;;  %vm10907_vm1 = vmmov %vm10722_vm0  ;;  %v4568_v59 = vpack.c.bf16 %v4541_v19, %v4540_v39  ;;  %v4556_v19 = vld [vmem:[#allocation2 + $0xe1] sm:$0xff]  ;;  %v4558_v39 = vld [vmem:[#allocation2 + $0xf1] sm:$0xff] }
 0x33c   : > { %6721 = vmatprep.mubr.msk.bf16.mxu1 %vm10887_vm7, %v10886_v5  ;;  %vm10908_vm7 = vmmov %vm10722_vm0  ;;  %v4576_v22 = vpack.c.bf16 %v4557_v51, %v4556_v19  ;;  %v4841_v51 = vld [vmem:[#allocation2 + $0x7a] sm:$0xff]  ;;  %v10935_v19 = vld [vmem:[#allocation78_spill] sm:$0xff] }
 0x341   : > { %v9815_v44 = vpop.f32.mrb[96].mxu0 }
 0x342   : > { %v9817_v36 = vpop.f32.mrb[97].mxu0 }
 0x343   : > { %6722 = vmatmul.mubr.msk.bf16.gmra.mrb[8].mxu1 %vm10889_vm14, %v10888_v30  ;;  %v9819_v38 = vpop.f32.mrb[98].mxu0  ;;  %vm10910_vm14 = vmmov %vm10722_vm0 }
 0x344   : > { %6725 = vmatprep.mubr.msk.bf16.mxu1 %vm10891_vm13, %v10890_v40  ;;  %v9821_v8 = vpop.f32.mrb[99].mxu0  ;;  %vm10911_vm13 = vmmov %vm10722_vm0  ;;  %v4543_v40 = vld [vmem:[#allocation2 + $0x79] sm:$0xff] }
 0x349   : > { %v9827_v55 = vpop.f32.mrb[100].mxu0 }
 0x34a   : > { %v9829_v41 = vpop.f32.mrb[101].mxu0 }
 0x34b   : > { %6726 = vmatmul.mubr.msk.bf16.gmra.mrb[12].mxu1 %vm10893_vm15, %v10892_v54  ;;  %v9831_v43 = vpop.f32.mrb[102].mxu0  ;;  %vm10912_vm15 = vmmov %vm10722_vm0 }
 0x34c   : > { %6729 = vmatprep.mubr.msk.bf16.mxu1 %vm10895_vm4, %v10894_v31  ;;  %v9833_v20 = vpop.f32.mrb[103].mxu0  ;;  %v4545_v31 = vld [vmem:[#allocation2 + $0x89] sm:$0xff]  ;;  %vm10913_vm4 = vmmov %vm10722_vm0 }
 0x351   : > { %v9839_v0 = vpop.f32.mrb[104].mxu0 }
 0x352   : > { %v9841_v35 = vpop.f32.mrb[105].mxu0 }
 0x353   : > { %6730 = vmatmul.mubr.msk.bf16.gmra.mrb[16].mxu1 %vm10722_vm0, %v10896_v15  ;;  %v9843_v26 = vpop.f32.mrb[106].mxu0  ;;  %v4542_v15 = vld [vmem:[#allocation2 + $0x71] sm:$0xff] }
 0x354   : > { %6733 = vmatprep.mubr.msk.bf16.mxu1 %vm10898_vm10, %v10897_v13  ;;  %v9845_v14 = vpop.f32.mrb[107].mxu0  ;;  %v4569_v13 = vpack.c.bf16 %v4543_v40, %v4542_v15  ;;  %vm10914_vm10 = vmmov %vm10722_vm0  ;;  %v4562_v40 = vld [vmem:[#allocation2 + $0x111] sm:$0xff] }
 0x359   : > { %v9851_v62 = vpop.f32.mrb[108].mxu0 }
 0x35a   : > { %v9853_v45 = vpop.f32.mrb[109].mxu0 }
 0x35b   : > { %6734 = vmatmul.mubr.msk.bf16.gmra.mrb[20].mxu1 %vm10900_vm8, %v10899_v47  ;;  %v9855_v32 = vpop.f32.mrb[110].mxu0  ;;  %v4544_v47 = vld [vmem:[#allocation2 + $0x81] sm:$0xff]  ;;  %vm10915_vm8 = vmmov %vm10722_vm0 }
 0x35c   : > { %6737 = vmatprep.mubr.msk.bf16.mxu1 %vm10902_vm5, %v10901_v9  ;;  %v9857_v52 = vpop.f32.mrb[111].mxu0  ;;  %v4570_v9 = vpack.c.bf16 %v4545_v31, %v4544_v47  ;;  %vm10916_vm5 = vmmov %vm10722_vm0  ;;  %v4563_v31 = vld [vmem:[#allocation2 + $0x119] sm:$0xff]  ;;  %v10922_v47 = vld [vmem:[#allocation71_spill] sm:$0xff] }
 0x35d   : > { %v4579_v15 = vpack.c.bf16 %v4563_v31, %v4562_v40  ;;  %v4842_v40 = vld [vmem:[#allocation2 + $0x82] sm:$0xff] }
 0x361   : > { %v9863_v61 = vpop.f32.mrb[112].mxu0 }
 0x362   : > { %v9865_v24 = vpop.f32.mrb[113].mxu0 }
 0x363   : > { %6738 = vmatmul.mubr.msk.bf16.gmra.mrb[24].mxu1 %vm10904_vm11, %v10903_v12  ;;  %v9867_v10 = vpop.f32.mrb[114].mxu0  ;;  %v4547_v12 = vld [vmem:[#allocation2 + $0x99] sm:$0xff]  ;;  %vm10917_vm11 = vmmov %vm10722_vm0 }
 0x364   : > { %6741 = vmatprep.mubr.msk.bf16.mxu1 %vm10906_vm12, %v10905_v18  ;;  %v9871_v29 = vpop.f32.mrb[115].mxu0  ;;  %v4546_v18 = vld [vmem:[#allocation2 + $0x91] sm:$0xff]  ;;  %vm10918_vm12 = vmmov %vm10722_vm0 }
 0x365   : > { %v4571_v37 = vpack.c.bf16 %v4547_v12, %v4546_v18  ;;  %v4867_v18 = vsel %vm10849_vm6, %v4835_v11, 0.0  ;;  %v10943_v11 = vld [vmem:[#allocation85_spill] sm:$0xff] }
 0x369   : > { %v9875_v7 = vpop.f32.mrb[116].mxu0 }
 0x36a   : > { %v9877_v2 = vpop.f32.mrb[117].mxu0 }
 0x36b   : > { %6742 = vmatmul.mubr.msk.bf16.gmra.mrb[28].mxu1 %vm10907_vm1, %v4281_v28  ;;  %v9879_v4 = vpop.f32.mrb[118].mxu0  ;;  %v4551_v28 = vld [vmem:[#allocation2 + $0xb9] sm:$0xff]  ;;  %vm10919_vm1 = vmmov %vm10722_vm0 }
 0x36c   : > { %6747 = vmatprep.mubr.msk.bf16.mxu1 %vm10908_vm7, %v4564_v42  ;;  %v9881_v6 = vpop.f32.mrb[119].mxu0  ;;  %v4550_v42 = vld [vmem:[#allocation2 + $0xb1] sm:$0xff]  ;;  %vm10920_vm7 = vmmov %vm10722_vm0 }
 0x36d   : > { %v4573_v49 = vpack.c.bf16 %v4551_v28, %v4550_v42  ;;  %v4836_v28 = vld [vmem:[#allocation2 + $0x52] sm:$0xff]  ;;  %vm10933_vm6 = vmmov %vm10919_vm1 }
 0x371   : > { %v9885_v34 = vpop.f32.mrb[120].mxu0 }
 0x372   : > { %v9887_v21 = vpop.f32.mrb[121].mxu0 }
 0x373   : > { %6748 = vmatmul.mubr.msk.bf16.vlgmr.msra.gmra.mrb[0].mxu1 %vm10909_vm3, %v4565_v3  ;;  %v9889_v27 = vpop.f32.mrb[122].mxu0  ;;  %v4555_v3 = vld [vmem:[#allocation2 + $0xd9] sm:$0xff]  ;;  %vm10921_vm3 = vmmov %vm10722_vm0 }
 0x374   : > { %6780 = vmatpush3.bf16.msra.mxu1 %v7165_v56  ;;  %6751 = vmatprep.mubr.msk.bf16.mxu1 %vm10910_vm14, %v4566_v17  ;;  %v9891_v33 = vpop.f32.mrb[123].mxu0  ;;  %v4554_v17 = vld [vmem:[#allocation2 + $0xd1] sm:$0xff]  ;;  %vm10924_vm14 = vmmov %vm10722_vm0 }
 0x375   : > { %v4575_v16 = vpack.c.bf16 %v4555_v3, %v4554_v17  ;;  %v4838_v3 = vld [vmem:[#allocation2 + $0x62] sm:$0xff]  ;;  %v4843_v17 = vld [vmem:[#allocation2 + $0x8a] sm:$0xff] }
 0x379   : > { %v9895_v56 = vpop.f32.mrb[124].mxu0 }
 0x37a   : > { %v9897_v5 = vpop.f32.mrb[125].mxu0 }
 0x37b   : > { %6752 = vmatmul.mubr.msk.bf16.gmra.mrb[4].mxu1 %vm10911_vm13, %v4567_v48  ;;  %v9899_v30 = vpop.f32.mrb[126].mxu0  ;;  %v4559_v48 = vld [vmem:[#allocation2 + $0xf9] sm:$0xff]  ;;  %vm10925_vm13 = vmmov %vm10722_vm0 }
 0x37c   : > { %6755 = vmatprep.mubr.msk.bf16.mxu1 %vm10912_vm15, %v4568_v59  ;;  %v9901_v54 = vpop.f32.mrb[127].mxu0  ;;  %v4577_v59 = vpack.c.bf16 %v4559_v48, %v4558_v39  ;;  %vm10927_vm15 = vmmov %vm10722_vm0  ;;  %v10937_v48 = vld [vmem:[#allocation79_spill] sm:$0xff] }
 0x383   : > { %6756 = vmatmul.mubr.msk.bf16.gmra.mrb[8].mxu1 %vm10913_vm4, %v4569_v13  ;;  %v4830_v13 = vld [vmem:[#allocation2 + $0x22] sm:$0xff]  ;;  %vm10928_vm4 = vmmov %vm10722_vm0 }
 0x384   : > { %6759 = vmatprep.mubr.msk.bf16.mxu1 %vm10722_vm0, %v4570_v9  ;;  %v10923_v9 = vsel %vm10843_vm2, %v10922_v47, 0.0  ;;  %vm10930_vm2 = vnez %v10929_v58  ;;  %v4844_v47 = vld [vmem:[#allocation2 + $0x92] sm:$0xff] }
 0x385   : > { %v4894_v12 = vpack.c.bf16 %v10923_v9, %v4830_v13  ;;  %v4847_v13 = vld [vmem:[#allocation2 + $0xaa] sm:$0xff]  ;;  %v10946_v58 = vld [vmem:[#allocation88_spill] sm:$0xff] }
 0x386   : > { %v10941_v9 = vld [vmem:[#allocation82_spill] sm:$0xff] }
 0x38b   : > { %6760 = vmatmul.mubr.msk.bf16.gmra.mrb[12].mxu1 %vm10914_vm10, %v4571_v37  ;;  %v4834_v37 = vld [vmem:[#allocation2 + $0x42] sm:$0xff]  ;;  %vm10934_vm10 = vmmov %vm10919_vm1 }
 0x38c   : > { %6763 = vmatprep.mubr.msk.bf16.mxu1 %vm10915_vm8, %v4572_v57  ;;  %v4896_v63 = vpack.c.bf16 %v4867_v18, %v4834_v37  ;;  %v4837_v57 = vld [vmem:[#allocation2 + $0x5a] sm:$0xff]  ;;  %vm10936_vm8 = vnez %v10935_v19 }
 0x38d   : > { %v4869_v42 = vsel %vm10930_vm2, %v4837_v57, 0.0  ;;  %v4849_v57 = vld [vmem:[#allocation2 + $0xba] sm:$0xff]  ;;  %vm10951_vm2 = vmmov %vm10921_vm3 }
 0x38e   : > { %v10952_v19 = vld [vmem:[#allocation92_spill] sm:$0xff] }
 0x393   : > { %6764 = vmatmul.mubr.msk.bf16.gmra.mrb[16].mxu1 %vm10916_vm5, %v4573_v49  ;;  %v10931_v49 = vld [vmem:[#allocation76_spill] sm:$0xff]  ;;  %vm10938_vm5 = vnez %v10937_v48  ;;  %v10954_v48 = vld [vmem:[#allocation93_spill] sm:$0xff] }
 0x394   : > { %6767 = vmatprep.mubr.msk.bf16.mxu1 %vm10917_vm11, %v4574_v23  ;;  %vm10932_vm0 = vnez %v10931_v49  ;;  %v4897_v23 = vpack.c.bf16 %v4869_v42, %v4836_v28  ;;  %v4875_v39 = vsel %vm10938_vm5, %v4843_v17, 0.0  ;;  %vm10939_vm11 = vmmov %vm10919_vm1  ;;  %v4848_v28 = vld [vmem:[#allocation2 + $0xb2] sm:$0xff]  ;;  %v10948_v49 = vld [vmem:[#allocation89_spill] sm:$0xff] }
 0x395   : > { %v4871_v25 = vsel %vm10932_vm0, %v4839_v53, 0.0  ;;  %v4900_v31 = vpack.c.bf16 %v4875_v39, %v4842_v40  ;;  %v4851_v53 = vld [vmem:[#allocation2 + $0xca] sm:$0xff]  ;;  %vm10953_vm0 = vnez %v10952_v19  ;;  %v4854_v40 = vld [vmem:[#allocation2 + $0xe2] sm:$0xff] }
 0x396   : > { %v4898_v46 = vpack.c.bf16 %v4871_v25, %v4838_v3  ;;  %v4850_v3 = vld [vmem:[#allocation2 + $0xc2] sm:$0xff]  ;;  %v4855_v17 = vld [vmem:[#allocation2 + $0xea] sm:$0xff] }
 0x39b   : > { %6768 = vmatmul.mubr.msk.bf16.gmra.mrb[20].mxu1 %vm10918_vm12, %v4575_v16  ;;  %v4840_v16 = vld [vmem:[#allocation2 + $0x72] sm:$0xff]  ;;  %vm10940_vm12 = vmmov %vm10919_vm1 }
 0x39c   : > { %6771 = vmatprep.mubr.msk.bf16.mxu1 %vm10919_vm1, %v4576_v22  ;;  %v4873_v22 = vsel %vm10936_vm8, %v4841_v51, 0.0  ;;  %vm10942_vm1 = vnez %v10941_v9  ;;  %v4853_v51 = vld [vmem:[#allocation2 + $0xda] sm:$0xff]  ;;  %vm10957_vm8 = vmmov %vm10951_vm2 }
 0x3a3   : > { %6772 = vmatmul.mubr.msk.bf16.gmra.mrb[24].mxu1 %vm10920_vm7, %v4577_v59  ;;  %v4899_v59 = vpack.c.bf16 %v4873_v22, %v4840_v16  ;;  %vm10944_vm7 = vnez %v10943_v11  ;;  %v4852_v16 = vld [vmem:[#allocation2 + $0xd2] sm:$0xff]  ;;  %v4885_v22 = vsel %vm10953_vm0, %v4853_v51, 0.0  ;;  %v4861_v11 = vld [vmem:[#allocation2 + $0x11a] sm:$0xff] }
 0x3a4   : > { %6775 = vmatprep.mubr.msk.bf16.mxu1 %vm10921_vm3, %v9751_v50  ;;  %v10926_v50 = vld [vmem:[#allocation77_spill] sm:$0xff]  ;;  %v4879_v18 = vsel %vm10944_vm7, %v4847_v13, 0.0  ;;  %v4856_v13 = vld [vmem:[#allocation2 + $0xf2] sm:$0xff] }
 0x3ab   : > { %6776 = vmatmul.mubr.msk.bf16.gmra.mrb[28].mxu1 %vm10924_vm14, %v4579_v15  ;;  %v4845_v15 = vld [vmem:[#allocation2 + $0x9a] sm:$0xff]  ;;  %vm10945_vm14 = vmmov %vm10921_vm3 }
 0x3ac   : > { %6781 = vmatprep.mubr.msk.bf16.mxu1 %vm10925_vm13, %v4894_v12  ;;  %v4877_v12 = vsel %vm10942_vm1, %v4845_v15, 0.0  ;;  %vm10947_vm13 = vnez %v10946_v58  ;;  %v4857_v15 = vld [vmem:[#allocation2 + $0xfa] sm:$0xff]  ;;  %vm10962_vm1 = vmmov %vm10951_vm2 }
 0x3ad   : > { %v4901_v37 = vpack.c.bf16 %v4877_v12, %v4844_v47  ;;  %v4881_v42 = vsel %vm10947_vm13, %v4849_v57, 0.0  ;;  %v10958_v47 = vld [vmem:[#allocation94_spill] sm:$0xff]  ;;  %vm10963_vm7 = vmmov %vm10962_vm1 }
 0x3ae   : > { %vm10959_vm5 = vnez %v10958_v47  ;;  %vm10967_vm13 = vmmov %vm10962_vm1 }
 0x3af   : > { %v4889_v9 = vsel %vm10959_vm5, %v4857_v15, 0.0  ;;  %vm10995_vm0 = vmmov %vm10962_vm1 }
 0x3b0   : > { %v4907_v12 = vpack.c.bf16 %v4889_v9, %v4856_v13  ;;  %v10003_v13 = vld [vmem:[%s10403_s9] sm:$0xff]   ;;  %vm11007_vm5 = vmmov %vm10995_vm0 }
 0x3b3   : > { %6782 = vmatmul.mubr.msk.bf16.vlgmr.msra.gmra.mrb[0].mxu1 %vm10927_vm15, %v10926_v50  ;;  %vm10949_vm15 = vnez %v10948_v49 }
 0x3b4   : > { %6785 = vmatprep.mubr.msk.bf16.mxu1 %vm10928_vm4, %v4896_v63  ;;  %v4846_v63 = vld [vmem:[#allocation2 + $0xa2] sm:$0xff]  ;;  %v4883_v25 = vsel %vm10949_vm15, %v4851_v53, 0.0  ;;  %vm10950_vm4 = vmmov %vm10921_vm3 }
 0x3b5   : > { %v4902_v50 = vpack.c.bf16 %v4879_v18, %v4846_v63  ;;  %v4860_v18 = vld [vmem:[#allocation2 + $0x112] sm:$0xff]  ;;  %vm10990_vm15 = vmmov %vm10962_vm1 }
 0x3bb   : > { %6786 = vmatmul.mubr.msk.bf16.gmra.mrb[4].mxu1 %vm10933_vm6, %v4897_v23  ;;  %v4903_v23 = vpack.c.bf16 %v4881_v42, %v4848_v28  ;;  %vm10955_vm6 = vnez %v10954_v48 }
 0x3bc   : > { %6789 = vmatprep.mubr.msk.bf16.mxu1 %vm10934_vm10, %v4898_v46  ;;  %v4904_v46 = vpack.c.bf16 %v4883_v25, %v4850_v3  ;;  %v4887_v39 = vsel %vm10955_vm6, %v4855_v17, 0.0  ;;  %vm10956_vm10 = vmmov %vm10951_vm2 }
 0x3bd   : > { %vm10996_vm6 = vmmov %vm10995_vm0 }
 0x3c3   : > { %6790 = vmatmul.mubr.msk.bf16.gmra.mrb[8].mxu1 %vm10939_vm11, %v4899_v59  ;;  %v4905_v59 = vpack.c.bf16 %v4885_v22, %v4852_v16  ;;  %vm10960_vm11 = vmmov %vm10951_vm2 }
 0x3c4   : > { %6793 = vmatprep.mubr.msk.bf16.mxu1 %vm10940_vm12, %v4900_v31  ;;  %v4906_v31 = vpack.c.bf16 %v4887_v39, %v4854_v40  ;;  %vm10961_vm12 = vmmov %vm10951_vm2 }
 0x3cb   : > { %6794 = vmatmul.mubr.msk.bf16.gmra.mrb[12].mxu1 %vm10921_vm3, %v4901_v37  ;;  %v4893_v37 = vsel %vm10876_vm9, %v4861_v11, 0.0  ;;  %vm10964_vm3 = vmmov %vm10962_vm1 }
 0x3cc   : > { %6797 = vmatprep.mubr.msk.bf16.mxu1 %vm10945_vm14, %v4902_v50  ;;  %v4909_v63 = vpack.c.bf16 %v4893_v37, %v4860_v18  ;;  %v7166_v50 = vld [vmem:[%s10404_s10] sm:$0xff]   ;;  %vm10965_vm9 = vmmov %vm10962_vm1 }
 0x3cd   : > { %6381 = vmatprep.mubr.msk.bf16.mxu0 %vm10963_vm7, %v7166_v50  ;;  %vm10966_vm14 = vmmov %vm10962_vm1 }
 0x3ce   : > { %6382 = vmatmul.mubr.msk.bf16.vlgmr.msra.gmra.mrb[128].mxu0 %vm10964_vm3, %v7166_v50  ;;  %vm11011_vm7 = vmmov %vm10995_vm0 }
 0x3cf   : > { %vm11012_vm3 = vmmov %vm10995_vm0 }
 0x3d3   : > { %6798 = vmatmul.mubr.msk.bf16.gmra.mrb[16].mxu1 %vm10950_vm4, %v4903_v23  ;;  %v7167_v23 = vld [vmem:[%s10404_s10 + $0x8] sm:$0xff]   ;;  %vm10991_vm4 = vmmov %vm10962_vm1 }
 0x3d4   : > { %6801 = vmatprep.mubr.msk.bf16.mxu1 %vm10951_vm2, %v4904_v46  ;;  %6383 = vmatprep.mubr.msk.bf16.mxu0 %vm10965_vm9, %v7167_v23  ;;  %vm10992_vm2 = vmmov %vm10962_vm1 }
 0x3d5   : > { %vm11013_vm9 = vmmov %vm10995_vm0 }
 0x3d6   : > { %6384 = vmatmul.mubr.msk.bf16.gmra.mrb[132].mxu0 %vm10966_vm14, %v7167_v23  ;;  %vm11014_vm14 = vmmov %vm10995_vm0 }
 0x3d7   : > { %6401 = vmatprep.mubr.msk.bf16.mxu0 %vm10967_vm13, %v10003_v13  ;;  %vm11015_vm13 = vmmov %vm10995_vm0 }
 0x3db   : > { %6802 = vmatmul.mubr.msk.bf16.gmra.mrb[20].mxu1 %vm10956_vm10, %v4905_v59  ;;  %vm11001_vm10 = vmmov %vm10995_vm0 }
 0x3dc   : > { %6805 = vmatprep.mubr.msk.bf16.mxu1 %vm10957_vm8, %v4906_v31  ;;  %vm11002_vm8 = vmmov %vm10995_vm0 }
 0x3e3   : > { %6806 = vmatmul.mubr.msk.bf16.gmra.mrb[24].mxu1 %vm10960_vm11, %v4907_v12  ;;  %vm11008_vm11 = vmmov %vm10995_vm0 }
 0x3e4   : > { %6809 = vmatprep.mubr.msk.bf16.mxu1 %vm10961_vm12, %v9548_v1  ;;  %v9971_v1 = vld [vmem:[%s10402_s8] ss:$0 sm:$0xff]  ;;  %vm11009_vm12 = vmmov %vm10995_vm0 }
 0x3eb   : > { %6810 = vmatmul.mubr.msk.bf16.gmra.mrb[28].mxu1 %vm10962_vm1, %v4909_v63  ;;  %vm11010_vm1 = vmmov %vm10995_vm0 }
 0x486   : > { %v6783_v57 = vpop.f32.mrb[0].mxu1 }
 0x487   : > { %v6813_v60 = vadd.f32 %v6783_v57, %v9815_v44  ;;  %v5001_v53 = vpop.f32.mrb[1].mxu1 }
 0x488   : > { %v6814_v28 = vadd.f32 %v5001_v53, %v9817_v36  ;;  %v6784_v58 = vpop.f32.mrb[2].mxu1 }
 0x489   : > { %v9976_v42 = vadd.f32 %v6813_v60, %v9971_v1  ;;  %v6815_v49 = vadd.f32 %v6784_v58, %v9819_v38  ;;  %v5004_v25 = vpop.f32.mrb[3].mxu1 }
 0x48a   : > { %v9983_v3 = vadd.f32 %v6814_v28, %v9971_v1  ;;  %v6816_v46 = vadd.f32 %v5004_v25, %v9821_v8 }
 0x48b   : > { %v5201_v44 = vsub.f32 0.0, %v9976_v42  ;;  %v9988_v36 = vadd.f32 %v6815_v49, %v9971_v1 }
 0x48c   : > { %v5199_v51 = vsub.f32 0.0, %v9983_v3  ;;  %v9993_v38 = vadd.f32 %v6816_v46, %v9971_v1 }
 0x48d   : > { %v5235_v17 = vmul.f32 1.442695, %v5201_v44  ;;  %v5202_v16 = vsub.f32 0.0, %v9988_v36 }
 0x48e   : > { %v5231_v19 = vmul.f32 1.442695, %v5199_v51  ;;  %v5200_v8 = vsub.f32 0.0, %v9993_v38  ;;  %v6787_v22 = vpop.f32.mrb[4].mxu1 }
 0x48f   : > { %7554 = vpow2.f32 %v5235_v17  ;;  %v5237_v48 = vmul.f32 1.442695, %v5202_v16  ;;  %v6817_v39 = vadd.f32 %v6787_v22, %v9827_v55  ;;  %v5017_v59 = vpop.f32.mrb[5].mxu1 }
 0x490   : > { %7556 = vpow2.f32 %v5231_v19  ;;  %v5233_v40 = vmul.f32 1.442695, %v5200_v8  ;;  %v6818_v31 = vadd.f32 %v5017_v59, %v9829_v41  ;;  %v6788_v15 = vpop.f32.mrb[6].mxu1 }
 0x491   : > { %7558 = vpow2.f32 %v5237_v48  ;;  %v10006_v47 = vadd.f32 %v6817_v39, %v9971_v1  ;;  %v6819_v9 = vadd.f32 %v6788_v15, %v9831_v43  ;;  %v5020_v12 = vpop.f32.mrb[7].mxu1 }
 0x492   : > { %7560 = vpow2.f32 %v5233_v40  ;;  %v10010_v55 = vadd.f32 %v6818_v31, %v9971_v1  ;;  %v6820_v11 = vadd.f32 %v5020_v12, %v9833_v20 }
 0x493   : > { %v5205_v41 = vsub.f32 0.0, %v10006_v47  ;;  %v10017_v18 = vadd.f32 %v6819_v9, %v9971_v1 }
 0x494   : > { %v5203_v37 = vsub.f32 0.0, %v10010_v55  ;;  %v10021_v63 = vadd.f32 %v6820_v11, %v9971_v1 }
 0x495   : > { %v5243_v43 = vmul.f32 1.442695, %v5205_v41  ;;  %v5206_v50 = vsub.f32 0.0, %v10017_v18 }
 0x496   : > { %v5239_v57 = vmul.f32 1.442695, %v5203_v37  ;;  %v5204_v60 = vsub.f32 0.0, %v10021_v63  ;;  %v6791_v20 = vpop.f32.mrb[8].mxu1 }
 0x497   : > { %7562 = vpow2.f32 %v5243_v43  ;;  %v5245_v53 = vmul.f32 1.442695, %v5206_v50  ;;  %v6821_v28 = vadd.f32 %v6791_v20, %v9839_v0  ;;  %v5033_v58 = vpop.f32.mrb[9].mxu1 }
 0x498   : > { %7564 = vpow2.f32 %v5239_v57  ;;  %v5241_v49 = vmul.f32 1.442695, %v5204_v60  ;;  %v6822_v25 = vadd.f32 %v5033_v58, %v9841_v35  ;;  %v6792_v23 = vpop.f32.mrb[10].mxu1  ;;  %v5729_v57 = vld [vmem:[%s10405_s11] sm:$0xff]  ;;  %v5731_v58 = vld [vmem:[%s10405_s11 + $0x10] sm:$0xff] }
 0x499   : > { %v7555_v46 = vpop.eup %7554  ;;  %7566 = vpow2.f32 %v5245_v53  ;;  %v10028_v44 = vadd.f32 %v6821_v28, %v9971_v1  ;;  %v6823_v51 = vadd.f32 %v6792_v23, %v9843_v26  ;;  %v5036_v17 = vpop.f32.mrb[11].mxu1  ;;  %v7779_v28 = vmov 0  }
 0x49a   : > { %v7557_v16 = vpop.eup %7556  ;;  %v5297_v19 = vadd.f32 1.0, %v7555_v46  ;;  %7568 = vpow2.f32 %v5241_v49  ;;  %v10032_v8 = vadd.f32 %v6822_v25, %v9971_v1  ;;  %v6824_v0 = vadd.f32 %v5036_v17, %v9845_v14  ;;  %7138 = vset.pattern.permute.xlu0 %v7779_v28  ;;  %7139 = vset.pattern.permute.xlu1 %v7779_v28 }
 0x49b   : > { %v7559_v22 = vpop.eup %7558  ;;  %v5295_v48 = vadd.f32 1.0, %v7557_v16  ;;  %v5209_v35 = vsub.f32 0.0, %v10028_v44  ;;  %v10037_v39 = vadd.f32 %v6823_v51, %v9971_v1  ;;  %5735 = vperm.xlu0 %7138, %v5729_v57   ;;  %5745 = vperm.xlu1 %7139, %v5731_v58   ;;  %v5730_v16 = vld [vmem:[%s10405_s11 + $0x8] sm:$0xff] }
 0x49c   : > { %v7561_v59 = vpop.eup %7560  ;;  %7570 = vrcp.f32 %v5297_v19  ;;  %v5298_v40 = vadd.f32 1.0, %v7559_v22  ;;  %v5207_v26 = vsub.f32 0.0, %v10032_v8  ;;  %v10041_v31 = vadd.f32 %v6824_v0, %v9971_v1  ;;  %v5732_v19 = vld [vmem:[%s10405_s11 + $0x18] sm:$0xff] }
 0x49d   : > { %7572 = vrcp.f32 %v5295_v48  ;;  %v5296_v15 = vadd.f32 1.0, %v7561_v59  ;;  %v5251_v9 = vmul.f32 1.442695, %v5209_v35  ;;  %v5210_v14 = vsub.f32 0.0, %v10037_v39 }
 0x49e   : > { %7574 = vrcp.f32 %v5298_v40  ;;  %v5247_v12 = vmul.f32 1.442695, %v5207_v26  ;;  %v5208_v11 = vsub.f32 0.0, %v10041_v31  ;;  %v6795_v41 = vpop.f32.mrb[12].mxu1 }
 0x49f   : > { %7576 = vrcp.f32 %v5296_v15  ;;  %v5253_v37 = vmul.f32 1.442695, %v5210_v14  ;;  %v6825_v43 = vadd.f32 %v6795_v41, %v9851_v62  ;;  %v5049_v50 = vpop.f32.mrb[13].mxu1  ;;  %5740 = vperm.xlu0 %7138, %v5730_v16   ;;  %5750 = vperm.xlu1 %7139, %v5732_v19  }
 0x4a0   : > { %7578 = vpow2.f32 %v5251_v9  ;;  %v5249_v60 = vmul.f32 1.442695, %v5208_v11  ;;  %v6826_v20 = vadd.f32 %v5049_v50, %v9853_v45  ;;  %v6796_v53 = vpop.f32.mrb[14].mxu1 }
 0x4a1   : > { %v7563_v49 = vpop.eup %7562  ;;  %7580 = vpow2.f32 %v5247_v12  ;;  %v10054_v62 = vadd.f32 %v6825_v43, %v9971_v1  ;;  %v6827_v25 = vadd.f32 %v6796_v53, %v9855_v32  ;;  %v5052_v23 = vpop.f32.mrb[15].mxu1 }
 0x4a2   : > { %v7565_v46 = vpop.eup %7564  ;;  %v5301_v45 = vadd.f32 1.0, %v7563_v49  ;;  %7582 = vpow2.f32 %v5253_v37  ;;  %v10058_v51 = vadd.f32 %v6826_v20, %v9971_v1  ;;  %v6828_v17 = vadd.f32 %v5052_v23, %v9857_v52 }
 0x4a3   : > { %v7567_v32 = vpop.eup %7566  ;;  %v5299_v0 = vadd.f32 1.0, %v7565_v46  ;;  %7584 = vpow2.f32 %v5249_v60  ;;  %v5213_v22 = vsub.f32 0.0, %v10054_v62  ;;  %v10069_v48 = vadd.f32 %v6827_v25, %v9971_v1 }
 0x4a4   : > { %v7569_v35 = vpop.eup %7568  ;;  %7586 = vrcp.f32 %v5301_v45  ;;  %v5302_v59 = vadd.f32 1.0, %v7567_v32  ;;  %v5211_v52 = vsub.f32 0.0, %v10058_v51  ;;  %v10073_v40 = vadd.f32 %v6828_v17, %v9971_v1 }
 0x4a5   : > { %7588 = vrcp.f32 %v5299_v0  ;;  %v5300_v26 = vadd.f32 1.0, %v7569_v35  ;;  %v5259_v15 = vmul.f32 1.442695, %v5213_v22  ;;  %v5214_v9 = vsub.f32 0.0, %v10069_v48 }
 0x4a6   : > { %v7571_v14 = vpop.eup %7570  ;;  %7590 = vrcp.f32 %v5302_v59  ;;  %v5255_v12 = vmul.f32 1.442695, %v5211_v52  ;;  %v5212_v11 = vsub.f32 0.0, %v10073_v40  ;;  %v6799_v41 = vpop.f32.mrb[16].mxu1 }
 0x4a7   : > { %v7573_v37 = vpop.eup %7572  ;;  %7592 = vrcp.f32 %v5300_v26  ;;  %v5261_v43 = vmul.f32 1.442695, %v5214_v9  ;;  %v6829_v50 = vadd.f32 %v6799_v41, %v9863_v61  ;;  %v5065_v57 = vpop.f32.mrb[17].mxu1  ;;  %v5393_v46 = vmul.f32 %v7571_v14, %v9976_v42 }
 0x4a8   : > { %v7575_v60 = vpop.eup %7574  ;;  %7594 = vpow2.f32 %v5259_v15  ;;  %v5257_v20 = vmul.f32 1.442695, %v5212_v11  ;;  %v6830_v53 = vadd.f32 %v5065_v57, %v9865_v24  ;;  %v6800_v28 = vpop.f32.mrb[18].mxu1  ;;  %v5391_v45 = vmul.f32 %v7573_v37, %v9983_v3 }
 0x4a9   : > { %v7577_v58 = vpop.eup %7576  ;;  %7596 = vpow2.f32 %v5255_v12  ;;  %v10080_v49 = vadd.f32 %v6829_v50, %v9971_v1  ;;  %v5068_v25 = vpop.f32.mrb[19].mxu1  ;;  %v5394_v16 = vmul.f32 %v7575_v60, %v9988_v36  ;;  %v6831_v42 = vadd.f32 %v6800_v28, %v9867_v10  ;;  %v10968_v60 = vld [vmem:[#allocation6_spill] sm:$0xff] }
 0x4aa   : > { %v7579_v23 = vpop.eup %7578  ;;  %7598 = vpow2.f32 %v5261_v43  ;;  %v10085_v61 = vadd.f32 %v6830_v53, %v9971_v1  ;;  %v5392_v0 = vmul.f32 %v7577_v58, %v9993_v38  ;;  %v6832_v26 = vadd.f32 %v5068_v25, %v9871_v29  ;;  %v10969_v53 = vld [vmem:[#allocation7_spill] sm:$0xff] }
 0x4ab   : > { %v7581_v17 = vpop.eup %7580  ;;  %v5305_v24 = vadd.f32 1.0, %v7579_v23  ;;  %7600 = vpow2.f32 %v5257_v20  ;;  %v5217_v19 = vsub.f32 0.0, %v10080_v49  ;;  %v10094_v14 = vadd.f32 %v6831_v42, %v9971_v1  ;;  %v10970_v23 = vld [vmem:[#allocation8_spill] sm:$0xff] }
 0x4ac   : > { %v7583_v32 = vpop.eup %7582  ;;  %v5303_v22 = vadd.f32 1.0, %v7581_v17  ;;  %v5215_v35 = vsub.f32 0.0, %v10085_v61  ;;  %v10097_v11 = vadd.f32 %v6832_v26, %v9971_v1  ;;  %v10103_v20 = vadd.f32 %v5393_v46, %v10968_v60  ;;  %v10972_v60 = vld [vmem:[#allocation10_spill] sm:$0xff] }
 0x4ad   : > { %v7585_v3 = vpop.eup %7584  ;;  %7602 = vrcp.f32 %v5305_v24  ;;  %v5306_v59 = vadd.f32 1.0, %v7583_v32  ;;  %v5267_v52 = vmul.f32 1.442695, %v5217_v19  ;;  %v5218_v29 = vsub.f32 0.0, %v10094_v14  ;;  %v10971_v24 = vld [vmem:[#allocation9_spill] sm:$0xff] }
 0x4ae   : > { %v7587_v15 = vpop.eup %7586  ;;  %7604 = vrcp.f32 %v5303_v22  ;;  %v5304_v36 = vadd.f32 1.0, %v7585_v3  ;;  %v5263_v9 = vmul.f32 1.442695, %v5215_v35  ;;  %v6803_v12 = vpop.f32.mrb[20].mxu1  ;;  %v10106_v28 = vadd.f32 %v5391_v45, %v10969_v53 }
 0x4af   : > { %v7589_v38 = vpop.eup %7588  ;;  %7606 = vrcp.f32 %v5306_v59  ;;  %v6833_v10 = vadd.f32 %v6803_v12, %v9875_v7  ;;  %v5081_v41 = vpop.f32.mrb[21].mxu1  ;;  %v5216_v58 = vsub.f32 0.0, %v10097_v11  ;;  %v10110_v17 = vadd.f32 %v5394_v16, %v10970_v23 }
 0x4b0   : > { %v7591_v37 = vpop.eup %7590  ;;  %7608 = vrcp.f32 %v5304_v36  ;;  %v6834_v43 = vadd.f32 %v5081_v41, %v9877_v2  ;;  %v6804_v50 = vpop.f32.mrb[22].mxu1  ;;  %v10113_v19 = vadd.f32 %v5392_v0, %v10971_v24  ;;  %v5269_v2 = vmul.f32 1.442695, %v5218_v29 }
 0x4b1   : > { %v7593_v57 = vpop.eup %7592  ;;  %7610 = vpow2.f32 %v5267_v52  ;;  %v5084_v25 = vpop.f32.mrb[23].mxu1  ;;  %v5397_v46 = vmul.f32 %v7587_v15, %v10006_v47  ;;  %v5395_v22 = vmul.f32 %v7589_v38, %v10010_v55  ;;  %v10118_v35 = vadd.f32 %v6833_v10, %v9971_v1 }
 0x4b2   : > { %v7595_v7 = vpop.eup %7594  ;;  %7612 = vpow2.f32 %v5263_v9  ;;  %v5265_v59 = vmul.f32 1.442695, %v5216_v58  ;;  %v10121_v16 = vadd.f32 %v6834_v43, %v9971_v1  ;;  %v6835_v47 = vadd.f32 %v6804_v50, %v9879_v4 }
 0x4b3   : > { %v7597_v32 = vpop.eup %7596  ;;  %v5309_v45 = vadd.f32 1.0, %v7595_v7  ;;  %7614 = vpow2.f32 %v5269_v2  ;;  %v5221_v26 = vsub.f32 0.0, %v10118_v35  ;;  %v6836_v36 = vadd.f32 %v5084_v25, %v9881_v6  ;;  %v10973_v2 = vld [vmem:[#allocation12_spill] sm:$0xff] }
 0x4b4   : > { %v7599_v42 = vpop.eup %7598  ;;  %v5307_v3 = vadd.f32 1.0, %v7597_v32  ;;  %v5219_v15 = vsub.f32 0.0, %v10121_v16  ;;  %v10128_v10 = vadd.f32 %v6835_v47, %v9971_v1  ;;  %v10132_v53 = vadd.f32 %v5397_v46, %v10972_v60 }
 0x4b5   : > { %v7601_v0 = vpop.eup %7600  ;;  %7616 = vrcp.f32 %v5309_v45  ;;  %v5310_v52 = vadd.f32 1.0, %v7599_v42  ;;  %v5275_v38 = vmul.f32 1.442695, %v5221_v26  ;;  %v10135_v50 = vadd.f32 %v6836_v36, %v9971_v1 }
 0x4b6   : > { %7618 = vrcp.f32 %v5307_v3  ;;  %v5308_v55 = vadd.f32 1.0, %v7601_v0  ;;  %v6807_v9 = vpop.f32.mrb[24].mxu1  ;;  %v5271_v4 = vmul.f32 1.442695, %v5219_v15  ;;  %v5398_v25 = vmul.f32 %v7591_v37, %v10017_v18 }
 0x4b7   : > { %v7603_v12 = vpop.eup %7602  ;;  %7620 = vrcp.f32 %v5310_v52  ;;  %v6837_v41 = vadd.f32 %v6807_v9, %v9885_v34  ;;  %v5097_v29 = vpop.f32.mrb[25].mxu1  ;;  %v5222_v7 = vsub.f32 0.0, %v10128_v10  ;;  %v10143_v32 = vadd.f32 %v5395_v22, %v10973_v2  ;;  %v10977_v2 = vld [vmem:[#allocation15_spill] sm:$0xff] }
 0x4b8   : > { %v7605_v43 = vpop.eup %7604  ;;  %7622 = vrcp.f32 %v5308_v55  ;;  %v6808_v6 = vpop.f32.mrb[26].mxu1  ;;  %v5396_v46 = vmul.f32 %v7593_v57, %v10021_v63  ;;  %v5220_v45 = vsub.f32 0.0, %v10135_v50  ;;  %v5401_v3 = vmul.f32 %v7603_v12, %v10028_v44 }
 0x4b9   : > { %v7607_v58 = vpop.eup %7606  ;;  %7624 = vpow2.f32 %v5265_v59  ;;  %v10140_v23 = vadd.f32 %v6837_v41, %v9971_v1  ;;  %v5100_v34 = vpop.f32.mrb[27].mxu1  ;;  %v5399_v18 = vmul.f32 %v7605_v43, %v10032_v8  ;;  %v5277_v37 = vmul.f32 1.442695, %v5222_v7  ;;  %v10974_v43 = vld [vmem:[#allocation11_spill] sm:$0xff] }
 0x4ba   : > { %v7609_v24 = vpop.eup %7608  ;;  %7626 = vpow2.f32 %v5275_v38  ;;  %v5402_v0 = vmul.f32 %v7607_v58, %v10037_v39  ;;  %v5273_v26 = vmul.f32 1.442695, %v5220_v45  ;;  %v6838_v57 = vadd.f32 %v5097_v29, %v9887_v21 }
 0x4bb   : > { %v7611_v42 = vpop.eup %7610  ;;  %7628 = vpow2.f32 %v5271_v4  ;;  %v5225_v22 = vsub.f32 0.0, %v10140_v23  ;;  %v5400_v47 = vmul.f32 %v7609_v24, %v10041_v31  ;;  %v6839_v8 = vadd.f32 %v6808_v6, %v9889_v27  ;;  %v10975_v4 = vld [vmem:[#allocation13_spill] sm:$0xff] }
 0x4bc   : > { %v7613_v59 = vpop.eup %7612  ;;  %v5313_v52 = vadd.f32 1.0, %v7611_v42  ;;  %7630 = vpow2.f32 %v5277_v37  ;;  %v6840_v15 = vadd.f32 %v5100_v34, %v9891_v33  ;;  %v10156_v12 = vadd.f32 %v6838_v57, %v9971_v1  ;;  %v10976_v34 = vld [vmem:[#allocation14_spill] sm:$0xff] }
 0x4bd   : > { %v5311_v63 = vadd.f32 1.0, %v7613_v59  ;;  %v7615_v55 = vpop.eup %7614  ;;  %v5283_v44 = vmul.f32 1.442695, %v5225_v22  ;;  %v10160_v21 = vadd.f32 %v5398_v25, %v10974_v43  ;;  %v10163_v29 = vadd.f32 %v6839_v8, %v9971_v1 }
 0x4be   : > { %7632 = vrcp.f32 %v5313_v52  ;;  %v6811_v36 = vpop.f32.mrb[28].mxu1  ;;  %v5314_v39 = vadd.f32 1.0, %v7615_v55  ;;  %v10166_v27 = vadd.f32 %v6840_v15, %v9971_v1  ;;  %v10169_v6 = vadd.f32 %v5396_v46, %v10975_v4  ;;  %v10978_v46 = vld [vmem:[#allocation16_spill] sm:$0xff]  ;;  %v10979_v52 = vld [vmem:[#allocation17_spill] sm:$0xff] }
 0x4bf   : > { %v7617_v9 = vpop.eup %7616  ;;  %7634 = vrcp.f32 %v5311_v63  ;;  %v6841_v31 = vadd.f32 %v6811_v36, %v9895_v56  ;;  %v5113_v38 = vpop.f32.mrb[29].mxu1  ;;  %v5223_v56 = vsub.f32 0.0, %v10156_v12  ;;  %v10176_v24 = vadd.f32 %v5401_v3, %v10976_v34 }
 0x4c0   : > { %v7619_v41 = vpop.eup %7618  ;;  %7636 = vpow2.f32 %v5273_v26  ;;  %v6812_v33 = vpop.f32.mrb[30].mxu1  ;;  %v10179_v45 = vadd.f32 %v5399_v18, %v10977_v2  ;;  %v5226_v42 = vsub.f32 0.0, %v10163_v29  ;;  %v10183_v59 = vadd.f32 %v5402_v0, %v10978_v46  ;;  %v10980_v46 = vld [vmem:[#allocation20_spill] sm:$0xff] }
 0x4c1   : > { %v7621_v60 = vpop.eup %7620  ;;  %7638 = vrcp.f32 %v5314_v39  ;;  %v10173_v58 = vadd.f32 %v6841_v31, %v9971_v1  ;;  %v5116_v25 = vpop.f32.mrb[31].mxu1  ;;  %v10186_v26 = vadd.f32 %v5400_v47, %v10979_v52  ;;  %v5279_v22 = vmul.f32 1.442695, %v5223_v56 }
 0x4c2   : > { %v7623_v7 = vpop.eup %7622  ;;  %7640 = vpow2.f32 %v5283_v44  ;;  %v5224_v63 = vsub.f32 0.0, %v10166_v27  ;;  %v5406_v3 = vmul.f32 %v7621_v60, %v10069_v48  ;;  %v5285_v36 = vmul.f32 1.442695, %v5226_v42 }
 0x4c3   : > { %v7625_v37 = vpop.eup %7624  ;;  %v5404_v55 = vmul.f32 %v7623_v7, %v10073_v40  ;;  %v5229_v44 = vsub.f32 0.0, %v10173_v58  ;;  %7642 = vpow2.f32 %v5279_v22  ;;  %v6842_v31 = vadd.f32 %v5113_v38, %v9897_v5 }
 0x4c4   : > { %v7627_v57 = vpop.eup %7626  ;;  %v5312_v18 = vadd.f32 1.0, %v7625_v37  ;;  %v5281_v0 = vmul.f32 1.442695, %v5224_v63  ;;  %v6843_v4 = vadd.f32 %v6812_v33, %v9899_v30  ;;  %v6844_v48 = vadd.f32 %v5116_v25, %v9901_v54 }
 0x4c5   : > { %v7629_v8 = vpop.eup %7628  ;;  %v5317_v15 = vadd.f32 1.0, %v7627_v57  ;;  %v5291_v47 = vmul.f32 1.442695, %v5229_v44  ;;  %v5459_v40 = vpack.c.bf16 %v10113_v19, %v10106_v28  ;;  %v10198_v7 = vadd.f32 %v6842_v31, %v9971_v1  ;;  %v10981_v57 = vld [vmem:[#allocation21_spill] sm:$0xff] }
 0x4c6   : > { %7644 = vrcp.f32 %v5312_v18  ;;  %v5315_v39 = vadd.f32 1.0, %v7629_v8  ;;  %v7631_v43 = vpop.eup %7630  ;;  %v5460_v34 = vpack.c.bf16 %v10110_v17, %v10103_v20  ;;  %v10204_v30 = vadd.f32 %v6843_v4, %v9971_v1  ;;  %v10999_v20 = vld [vmem:[#allocation31_spill] sm:$0xff] }
 0x4c7   : > { %7646 = vrcp.f32 %v5317_v15  ;;  %v5318_v56 = vadd.f32 1.0, %v7631_v43  ;;  %v10207_v54 = vadd.f32 %v6844_v48, %v9971_v1  ;;  %v5405_v33 = vmul.f32 %v7617_v9, %v10054_v62  ;;  %v10984_v43 = vld [vmem:[#allocation19_spill] sm:$0xff] }
 0x4c8   : > { %v7633_v60 = vpop.eup %7632  ;;  %7648 = vrcp.f32 %v5315_v39  ;;  %v5403_v25 = vmul.f32 %v7619_v41, %v10058_v51  ;;  %v5227_v42 = vsub.f32 0.0, %v10198_v7  ;;  %v10213_v52 = vadd.f32 %v5406_v3, %v10980_v46  ;;  %v10982_v51 = vld [vmem:[#allocation22_spill] sm:$0xff]  ;;  %v10983_v3 = vld [vmem:[#allocation24_spill] sm:$0xff]  ;;  %v10986_v46 = vld [vmem:[#allocation23_spill] sm:$0xff] }
 0x4c9   : > { %v7635_v2 = vpop.eup %7634  ;;  %v5409_v5 = vmul.f32 %v7633_v60, %v10080_v49  ;;  %7650 = vpow2.f32 %v5285_v36  ;;  %v5230_v22 = vsub.f32 0.0, %v10204_v30  ;;  %v10217_v1 = vadd.f32 %v5404_v55, %v10981_v57 }
 0x4ca   : > { %v7637_v38 = vpop.eup %7636  ;;  %7652 = vrcp.f32 %v5318_v56  ;;  %v5287_v62 = vmul.f32 1.442695, %v5227_v42  ;;  %v5228_v44 = vsub.f32 0.0, %v10207_v54  ;;  %v5461_v36 = vpack.c.bf16 %v10169_v6, %v10143_v32 }
 0x4cb   : > { %v7639_v37 = vpop.eup %7638  ;;  %v5316_v49 = vadd.f32 1.0, %v7637_v38  ;;  %7654 = vpow2.f32 %v5281_v0  ;;  %v5441_v9 = vadd.f32 %v5409_v5, %v10982_v51  ;;  %v5293_v41 = vmul.f32 1.442695, %v5230_v22  ;;  %v10985_v5 = vld [vmem:[#allocation18_spill] sm:$0xff]  ;;  %v10987_v22 = vld [vmem:[#allocation25_spill] sm:$0xff] }
 0x4cc   : > { %v7641_v63 = vpop.eup %7640  ;;  %v5410_v18 = vmul.f32 %v7639_v37, %v10094_v14  ;;  %7656 = vpow2.f32 %v5291_v47  ;;  %v5407_v55 = vmul.f32 %v7635_v2, %v10085_v61  ;;  %v5289_v39 = vmul.f32 1.442695, %v5228_v44 }
 0x4cd   : > { %7658 = vrcp.f32 %v5316_v49  ;;  %v5321_v15 = vadd.f32 1.0, %v7641_v63  ;;  %v7643_v0 = vpop.eup %7642  ;;  %v5462_v14 = vpack.c.bf16 %v10160_v21, %v10132_v53  ;;  %v5463_v47 = vpack.c.bf16 %v10186_v26, %v10179_v45 }
 0x4ce   : > { %v5442_v8 = vadd.f32 %v5410_v18, %v10983_v3  ;;  %7660 = vpow2.f32 %v5287_v62  ;;  %v10231_v4 = vadd.f32 %v5403_v25, %v10984_v43  ;;  %v5319_v48 = vadd.f32 1.0, %v7643_v0 }
 0x4cf   : > { %7662 = vpow2.f32 %v5293_v41  ;;  %v10234_v38 = vadd.f32 %v5405_v33, %v10985_v5  ;;  %v5464_v42 = vpack.c.bf16 %v10183_v59, %v10176_v24  ;;  %v5439_v49 = vadd.f32 %v5407_v55, %v10986_v46  ;;  %v10989_v55 = vld [vmem:[#allocation28_spill] sm:$0xff]  ;;  %v10993_v5 = vld [vmem:[#allocation27_spill] sm:$0xff]  ;;  %v7169_v24 = vld [vmem:[%s10403_s9 + $0x8] sm:$0xff]  }
 0x4d0   : > { %v7645_v31 = vpop.eup %7644  ;;  %v5468_v60 = vpack.c.bf16 %v5442_v8, %v5441_v9  ;;  %7664 = vpow2.f32 %v5289_v39  ;;  %v5465_v37 = vpack.c.bf16 %v10217_v1, %v10231_v4 }
 0x4d1   : > { %v7647_v56 = vpop.eup %7646  ;;  %v5408_v61 = vmul.f32 %v7645_v31, %v10097_v11  ;;  %7666 = vrcp.f32 %v5321_v15  ;;  %v5466_v33 = vpack.c.bf16 %v10213_v52, %v10234_v38  ;;  %v10988_v15 = vld [vmem:[#allocation26_spill] sm:$0xff]  ;;  %v5629_v31 = vsel %vm10991_vm4, %v5459_v40, 0  ;;  %vm11017_vm4 = vmmov %vm10995_vm0 }
 0x4d2   : > { %v7649_v2 = vpop.eup %7648  ;;  %v5413_v57 = vmul.f32 %v7647_v56, %v10118_v35  ;;  %7668 = vrcp.f32 %v5319_v48  ;;  %v5647_v53 = vsel %vm11013_vm9, %v5465_v37, 0 }
 0x4d3   : > { %v7651_v25 = vpop.eup %7650  ;;  %v5440_v63 = vadd.f32 %v5408_v61, %v10987_v22  ;;  %v5411_v44 = vmul.f32 %v7649_v2, %v10121_v16  ;;  %v10994_v2 = vld [vmem:[#allocation29_spill] sm:$0xff]  ;;  %v5650_v21 = vsel %vm11015_vm13, %v5466_v33, 0 }
 0x4d4   : > { %v7653_v11 = vpop.eup %7652  ;;  %v5322_v18 = vadd.f32 1.0, %v7651_v25  ;;  %v5445_v0 = vadd.f32 %v5413_v57, %v10988_v15 }
 0x4d5   : > { %v7655_v62 = vpop.eup %7654  ;;  %v5414_v51 = vmul.f32 %v7653_v11, %v10128_v10  ;;  %v5467_v9 = vpack.c.bf16 %v5440_v63, %v5439_v49  ;;  %v5443_v61 = vadd.f32 %v5411_v44, %v10993_v5  ;;  %v11006_v5 = vld [vmem:[#allocation37_spill] sm:$0xff] }
 0x4d6   : > { %v7657_v41 = vpop.eup %7656  ;;  %7670 = vrcp.f32 %v5322_v18  ;;  %v5320_v3 = vadd.f32 1.0, %v7655_v62 }
 0x4d7   : > { %v7659_v8 = vpop.eup %7658  ;;  %v5446_v35 = vadd.f32 %v5414_v51, %v10989_v55  ;;  %v5325_v39 = vadd.f32 1.0, %v7657_v41  ;;  %7087 = vmatprep.subr.msk.bf16.mxu0 %vm10990_vm15, %v5467_v9  ;;  %v10997_v51 = vld [vmem:[#allocation30_spill] sm:$0xff]  ;;  %v10998_v41 = vld [vmem:[#allocation32_spill] sm:$0xff]  ;;  %v5635_v55 = vsel %vm11001_vm10, %v5461_v36, 0  ;;  %v5644_v36 = vsel %vm11011_vm7, %v5464_v42, 0  ;;  %vm11016_vm15 = vmmov %vm10995_vm0 }
 0x4d8   : > { %v7661_v10 = vpop.eup %7660  ;;  %v5412_v43 = vmul.f32 %v7659_v8, %v10135_v50  ;;  %7672 = vrcp.f32 %v5320_v3  ;;  %6386 = vmatpush3.bf16.xpose.msra.mxu0 %v5629_v31 }
 0x4d9   : > { %7674 = vrcp.f32 %v5325_v39  ;;  %v5323_v16 = vadd.f32 1.0, %v7661_v10  ;;  %7088 = vmatprep.subr.msk.bf16.mxu0 %vm10992_vm2, %v5468_v60  ;;  %v5470_v48 = vpack.c.bf16 %v5446_v35, %v5445_v0  ;;  %v7663_v56 = vpop.eup %7662  ;;  %v5632_v60 = vsel %vm10995_vm0, %v5460_v34, 0  ;;  %v11000_v34 = vld [vmem:[#allocation33_spill] sm:$0xff]  ;;  %v11003_v10 = vld [vmem:[#allocation34_spill] sm:$0xff]  ;;  %vm11018_vm2 = vmmov %vm10995_vm0 }
 0x4da   : > { %v5444_v25 = vadd.f32 %v5412_v43, %v10994_v2  ;;  %v7665_v46 = vpop.eup %7664  ;;  %v5326_v28 = vadd.f32 1.0, %v7663_v56  ;;  %v11005_v56 = vld [vmem:[#allocation35_spill] sm:$0xff] }
 0x4db   : > { %7676 = vrcp.f32 %v5323_v16  ;;  %v7667_v19 = vpop.eup %7666  ;;  %v5324_v40 = vadd.f32 1.0, %v7665_v46 }
 0x4dc   : > { %v5469_v49 = vpack.c.bf16 %v5444_v25, %v5443_v61  ;;  %7678 = vrcp.f32 %v5326_v28  ;;  %v7669_v50 = vpop.eup %7668  ;;  %v5417_v22 = vmul.f32 %v7667_v19, %v10140_v23 }
 0x4dd   : > { %7680 = vrcp.f32 %v5324_v40  ;;  %v5415_v57 = vmul.f32 %v7669_v50, %v10156_v12 }
 0x4de   : > { %v5449_v9 = vadd.f32 %v5417_v22, %v10997_v51 }
 0x4df   : > { %v5447_v17 = vadd.f32 %v5415_v57, %v10999_v20 }
 0x4e0   : > { %v7671_v63 = vpop.eup %7670  ;;  %6388 = vmatpush3.bf16.xpose.msra.mxu0 %v5632_v60 }
 0x4e1   : > { %v5418_v11 = vmul.f32 %v7671_v63, %v10163_v29  ;;  %7089 = vmatprep.subr.msk.bf16.mxu0 %vm10996_vm6, %v5469_v49 }
 0x4e2   : > { %v7673_v18 = vpop.eup %7672 }
 0x4e3   : > { %v7675_v62 = vpop.eup %7674  ;;  %v5450_v44 = vadd.f32 %v5418_v11, %v10998_v41  ;;  %v5416_v23 = vmul.f32 %v7673_v18, %v10166_v27 }
 0x4e4   : > { %v5421_v12 = vmul.f32 %v7675_v62, %v10173_v58  ;;  %v11004_v58 = vld [vmem:[#allocation36_spill] sm:$0xff] }
 0x4e5   : > { %v7677_v3 = vpop.eup %7676  ;;  %v5448_v8 = vadd.f32 %v5416_v23, %v11000_v34  ;;  %v5472_v15 = vpack.c.bf16 %v5450_v44, %v5449_v9 }
 0x4e6   : > { %v7679_v0 = vpop.eup %7678  ;;  %v5419_v29 = vmul.f32 %v7677_v3, %v10198_v7  ;;  %v5453_v43 = vadd.f32 %v5421_v12, %v11003_v10 }
 0x4e7   : > { %v5471_v35 = vpack.c.bf16 %v5448_v8, %v5447_v17  ;;  %v7681_v39 = vpop.eup %7680  ;;  %v5422_v27 = vmul.f32 %v7679_v0, %v10204_v30  ;;  %v5638_v30 = vsel %vm11007_vm5, %v5462_v14, 0 }
 0x4e8   : > { %6390 = vmatpush3.bf16.xpose.msra.mxu0 %v5635_v55  ;;  %v5420_v31 = vmul.f32 %v7681_v39, %v10207_v54  ;;  %v5451_v7 = vadd.f32 %v5419_v29, %v11005_v56  ;;  %v5641_v54 = vsel %vm11009_vm12, %v5463_v47, 0 }
 0x4e9   : > { %7090 = vmatprep.subr.msk.bf16.mxu0 %vm11002_vm8, %v5470_v48  ;;  %v5454_v16 = vadd.f32 %v5422_v27, %v11004_v58 }
 0x4ea   : > { %v5452_v61 = vadd.f32 %v5420_v31, %v11006_v5 }
 0x4eb   : > { %v5474_v32 = vpack.c.bf16 %v5454_v16, %v5453_v43 }
 0x4ec   : > { %v5473_v6 = vpack.c.bf16 %v5452_v61, %v5451_v7 }
 0x4f0   : > { %6392 = vmatpush3.bf16.xpose.msra.mxu0 %v5638_v30 }
 0x4f1   : > { %7091 = vmatprep.subr.msk.bf16.mxu0 %vm11008_vm11, %v5471_v35 }
 0x4f8   : > { %6394 = vmatpush3.bf16.xpose.msra.mxu0 %v5641_v54 }
 0x4f9   : > { %7092 = vmatprep.subr.msk.bf16.mxu0 %vm11010_vm1, %v5472_v15 }
 0x500   : > { %6396 = vmatpush3.bf16.xpose.msra.mxu0 %v5644_v36 }
 0x501   : > { %7093 = vmatprep.subr.msk.bf16.mxu0 %vm11012_vm3, %v5473_v6 }
 0x508   : > { %6398 = vmatpush3.bf16.xpose.msra.mxu0 %v5647_v53 }
 0x509   : > { %7094 = vmatprep.subr.msk.bf16.mxu0 %vm11014_vm14, %v5474_v32 }
 0x510   : > { %6400 = vmatpush3.bf16.xpose.msra.mxu0 %v5650_v21 }
 0x517   : > { %6402 = vmatmul.mubr.msk.bf16.vlgmr.msra.gmra.mrb[128].mxu0 %vm11016_vm15, %v10003_v13 }
 0x518   : > { %6403 = vmatprep.mubr.msk.bf16.mxu0 %vm11017_vm4, %v7169_v24 }
 0x51a   : > { %v5736_v45 = vpop.permute.xlu0 %5735  ;;  %v5746_v37 = vpop.permute.xlu1 %5745 }
 0x51e   : > { %v5741_v26 = vpop.permute.xlu0 %5740  ;;  %v5751_v22 = vpop.permute.xlu1 %5750 }
 0x51f   : > { %6404 = vmatmul.mubr.msk.bf16.gmra.mrb[132].mxu0 %vm11018_vm2, %v7169_v24 }
 0x5ea   : > { %v5710_v59 = vpop.f32.mrb[128].mxu0 }
 0x5eb   : > { %v10316_v1 = vadd.f32 %v5736_v45, %v5710_v59  ;;  %v5712_v52 = vpop.f32.mrb[129].mxu0 }
 0x5ec   : > { %v10318_v14 = vadd.f32 %v5736_v45, %v5712_v52  ;;  %v5714_v47 = vpop.f32.mrb[130].mxu0 }
 0x5ed   : > { %v5761_v4 = vsub.f32 0.0, %v10316_v1  ;;  %v10321_v38 = vadd.f32 %v5741_v26, %v5714_v47  ;;  %v5716_v42 = vpop.f32.mrb[131].mxu0 }
 0x5ee   : > { %v5762_v13 = vsub.f32 0.0, %v10318_v14  ;;  %v10324_v33 = vadd.f32 %v5741_v26, %v5716_v42 }
 0x5ef   : > { %v5769_v48 = vmul.f32 1.442695, %v5761_v4  ;;  %v5763_v2 = vsub.f32 0.0, %v10321_v38 }
 0x5f0   : > { %v5771_v25 = vmul.f32 1.442695, %v5762_v13  ;;  %v5764_v46 = vsub.f32 0.0, %v10324_v33 }
 0x5f1   : > { %7682 = vpow2.f32 %v5769_v48  ;;  %v5773_v28 = vmul.f32 1.442695, %v5763_v2 }
 0x5f2   : > { %7684 = vpow2.f32 %v5771_v25  ;;  %v5775_v19 = vmul.f32 1.442695, %v5764_v46  ;;  %v5720_v40 = vpop.f32.mrb[132].mxu0 }
 0x5f3   : > { %7686 = vpow2.f32 %v5773_v28  ;;  %v10328_v49 = vadd.f32 %v5746_v37, %v5720_v40  ;;  %v5722_v50 = vpop.f32.mrb[133].mxu0 }
 0x5f4   : > { %7688 = vpow2.f32 %v5775_v19  ;;  %v5758_v60 = vadd.f32 %v5746_v37, %v5722_v50  ;;  %v5724_v63 = vpop.f32.mrb[134].mxu0 }
 0x5f5   : > { %v5765_v57 = vsub.f32 0.0, %v10328_v49  ;;  %v5759_v11 = vadd.f32 %v5751_v22, %v5724_v63  ;;  %v5726_v18 = vpop.f32.mrb[135].mxu0 }
 0x5f6   : > { %v5766_v62 = vsub.f32 0.0, %v5758_v60  ;;  %v10331_v51 = vadd.f32 %v5751_v22, %v5726_v18 }
 0x5f7   : > { %v5777_v9 = vmul.f32 1.442695, %v5765_v57  ;;  %v5767_v41 = vsub.f32 0.0, %v5759_v11 }
 0x5f8   : > { %v5779_v44 = vmul.f32 1.442695, %v5766_v62  ;;  %v5768_v23 = vsub.f32 0.0, %v10331_v51 }
 0x5f9   : > { %7690 = vpow2.f32 %v5777_v9  ;;  %v5781_v3 = vmul.f32 1.442695, %v5767_v41 }
 0x5fa   : > { %7692 = vpow2.f32 %v5779_v44  ;;  %v5783_v20 = vmul.f32 1.442695, %v5768_v23 }
 0x5fb   : > { %v7683_v17 = vpop.eup %7682  ;;  %7694 = vpow2.f32 %v5781_v3 }
 0x5fc   : > { %v7685_v34 = vpop.eup %7684  ;;  %v5785_v8 = vadd.f32 1.0, %v7683_v17  ;;  %7696 = vpow2.f32 %v5783_v20 }
 0x5fd   : > { %v7687_v15 = vpop.eup %7686  ;;  %v5786_v12 = vadd.f32 1.0, %v7685_v34 }
 0x5fe   : > { %v7689_v0 = vpop.eup %7688  ;;  %7698 = vrcp.f32 %v5785_v8  ;;  %v5787_v29 = vadd.f32 1.0, %v7687_v15 }
 0x5ff   : > { %7700 = vrcp.f32 %v5786_v12  ;;  %v5788_v55 = vadd.f32 1.0, %v7689_v0 }
 0x600   : > { %7702 = vrcp.f32 %v5787_v29 }
 0x601   : > { %7704 = vrcp.f32 %v5788_v55 }
 0x603   : > { %v7691_v35 = vpop.eup %7690 }
 0x604   : > { %v7693_v39 = vpop.eup %7692  ;;  %v5789_v27 = vadd.f32 1.0, %v7691_v35 }
 0x605   : > { %v7695_v31 = vpop.eup %7694  ;;  %v5790_v10 = vadd.f32 1.0, %v7693_v39 }
 0x606   : > { %v7697_v43 = vpop.eup %7696  ;;  %7706 = vrcp.f32 %v5789_v27  ;;  %v5791_v58 = vadd.f32 1.0, %v7695_v31 }
 0x607   : > { %7708 = vrcp.f32 %v5790_v10  ;;  %v5792_v16 = vadd.f32 1.0, %v7697_v43 }
 0x608   : > { %v7699_v56 = vpop.eup %7698  ;;  %7710 = vrcp.f32 %v5791_v58 }
 0x609   : > { %v7701_v7 = vpop.eup %7700  ;;  %v5809_v5 = vmul.f32 %v7699_v56, %v10316_v1  ;;  %7712 = vrcp.f32 %v5792_v16 }
 0x60a   : > { %v7703_v61 = vpop.eup %7702  ;;  %v5810_v32 = vmul.f32 %v7701_v7, %v10318_v14 }
 0x60b   : > { %v7705_v6 = vpop.eup %7704  ;;  %5817 = vst [vmem:[%s406_s16] sm:$0xff] %v5809_v5  ;;  %v5811_v30 = vmul.f32 %v7703_v61, %v10321_v38 }
 0x60c   : > { %5818 = vst [vmem:[%s406_s16 + $0x8] sm:$0xff] %v5810_v32  ;;  %v5812_v54 = vmul.f32 %v7705_v6, %v10324_v33 }
 0x60d   : > { %5819 = vst [vmem:[%s406_s16 + $0x10] sm:$0xff] %v5811_v30 }
 0x60e   : > { %5820 = vst [vmem:[%s406_s16 + $0x18] sm:$0xff] %v5812_v54 }
 0x610   : > { %v7707_v36 = vpop.eup %7706 }
 0x611   : > { %v7709_v53 = vpop.eup %7708  ;;  %v5813_v21 = vmul.f32 %v7707_v36, %v10328_v49 }
 0x612   : > { %v7711_v24 = vpop.eup %7710  ;;  %v5814_v45 = vmul.f32 %v7709_v53, %v5758_v60 }
 0x613   : > { %v7713_v59 = vpop.eup %7712  ;;  %5821 = vst [vmem:[%s406_s16 + $0x20] sm:$0xff] %v5813_v21  ;;  %v5815_v26 = vmul.f32 %v7711_v24, %v5759_v11 }
 0x614   : > { %5822 = vst [vmem:[%s406_s16 + $0x28] sm:$0xff] %v5814_v45  ;;  %v5816_v1 = vmul.f32 %v7713_v59, %v10331_v51 }
 0x615   : > { %5823 = vst [vmem:[%s406_s16 + $0x30] sm:$0xff] %v5815_v26 }
 0x616   : > { %5824 = vst [vmem:[%s406_s16 + $0x38] sm:$0xff] %v5816_v1 }
 0x617   : > { %7727 = shalt.err (!%p7724_p3)
}
 0x618   : > { %s7728_s29 = scalar_lea.hbm %s10346_s26, 1024  ;;  %s7732_s15 = scalar_lea.hbm %s10406_s12, 2048 }
 0x619   : > { %p7729_p4 = scmp.ne.s32.totalorder %s10346_s26, %s7728_s29  ;;  %p7733_p9 = scmp.lt.u32.totalorder %s10346_s26, %s10406_s12 }
 0x61a   : > { %p7734_p10 = scmp.lt.u32.totalorder %s7732_s15, %s7728_s29  ;;  %p7736_p12 = scmp.lt.u32.totalorder %s7728_s29, %s10346_s26 }
 0x61b   : > { %p7730_p7 = pnand %p7729_p4, %p7886_p5 }
 0x61c   : > { %p7735_p11 = por %p7734_p10, %p7733_p9 }
 0x61d   : > { %p7731_p8 = pneg %p7730_p7 }
 0x61e   : > { %p7737_p13 = por %p7736_p12, %p7735_p11 }
 0x620   : > { %p7738_p0 = pnand %p7737_p13, %p7731_p8 }
 0x622   : > { %7741 = shalt.err (!%p7738_p0)
}
 0x623   : > { %s7781_s28 = smov 256   ;;  %s7782_s19 = smov 16  }
 0x624   : > { %7095 = dma.vmem_to_hbm [thread:$0]  (%p7886_p5), %s10348_s18, 1024, %s10346_s26, %s10353_s25, %s7781_s28, %s7781_s28, %s7782_s19  }
 0x625 PF: > { %p7101_p1 = scmp.ge.s32.totalorder %s7776_s24, 2  ;;  %s5854_s0 = sand.u32 1, %s7764_s21  }
 0x626   : > { %s5855_s29 = scalar_lea.sflag [#allocation4], %s5854_s0 }
 0x627   : > { %p7098_p2 = pnand %p7101_p1, %p7890_p6 }
 0x629   : > { %7759 = dma.done.wait (!%p7098_p2), %s5855_s29, 1024  }
 0x62a   : > { %7761 = vsyncadd (!%p7098_p2), %s5855_s29, 4294966272  ;;  %p22_p3 = scmp.ge.s32.totalorder %s7873_s27, 4   ;;  %s11019_s21 = smov %s7768_s22 }
 0x62b   : > { %s11020_s22 = smov %s7772_s23  ;;  %s11021_s23 = smov %s7884_s30 }
 0x62c   : > { %s11022_s24 = smov %s7873_s27  ;;  %24 = sbr.rel (!%p22_p3) target bundleno = 5 (0x5), region = 111 }
 0x633   :  { %5860 = vsyncpa [#allocation4], 1 }
 0x634   :  { %5862 = vsyncpa [#allocation4 + $0x1], 1 }

</bundles_post_ra>
